<compile_context>
chip_gen: v6e
topology: v6e:2x2x1
jax: 0.10.0
libtpu: 0.0.40
codegen_flags: <defaults>
</compile_context>

<pallas_src>
import functools

import jax
import jax.numpy as jnp
from jax.experimental import pallas as pl
from jax.experimental.pallas import tpu as pltpu

EPS = 1e-5
LANES = 128
VMEM_LIMIT_BYTES = 48 * 1024 * 1024   # explicit scoped-VMEM budget (headroom under v7x 64 MiB)


# ------------------------------ small helpers ------------------------------

def _cparams(sem):
    return pltpu.CompilerParams(dimension_semantics=sem,
                                vmem_limit_bytes=VMEM_LIMIT_BYTES)


def _round_up(n, m=LANES):
    return ((n + m - 1) // m) * m


def _pad_last(a, target):
    pad = target - a.shape[-1]
    if pad == 0:
        return a
    return jnp.pad(a, [(0, 0)] * (a.ndim - 1) + [(0, pad)])


def _pad2d(a, rows, cols):
    return jnp.pad(a, ((0, rows - a.shape[0]), (0, cols - a.shape[1])))


def _pick_tile_m(m, target=512):
    """Largest divisor of m (multiple of 8) that is <= target; m itself if m <= target."""
    if m <= target:
        return m
    for step in (32, 16, 8):
        for t in range(target - target % step, step - 1, -step):
            if t and m % t == 0:
                return t
    return m


def _pick_tile_rows(ho, wo, target=256):
    """Largest divisor of ho with ~target output pixels per row tile."""
    want = max(1, target // max(wo, 1))
    th = 1
    for t in range(1, min(ho, want) + 1):
        if ho % t == 0:
            th = t
    return th


def _split_tiles(tiles):
    """Leading 'parallel' factor so both v7x TensorCores get work on stats passes."""
    return (2, tiles // 2) if (tiles % 2 == 0 and tiles >= 2) else (1, tiles)


def _scale_shift(s1, s2, g, b, count):
    """Fold training-mode BN (batch stats) into a single per-channel FMA."""
    # TODO(synk): E[x^2]-E[x]^2 in f32; move to a Welford-style per-tile combine if
    # cancellation ever matters at very large N*H*W.
    mean = s1 / count
    var = jnp.maximum(s2 / count - mean * mean, 0.0)
    scale = g * jax.lax.rsqrt(var + EPS)
    shift = b - mean * scale
    return scale, shift


def _row_spec(tm, c):
    return pl.BlockSpec((tm, c), lambda i: (i, 0))


def _rep_spec(shape):
    nd = len(shape)
    return pl.BlockSpec(shape, lambda *_, _nd=nd: (0,) * _nd)


# ------------------------------ Pallas kernels ------------------------------

def _mm_stats_kernel(x_ref, w_ref, y_ref, s1_ref, s2_ref):
    """y = x @ w (bf16 MXU, f32 acc) stored bf16; per-channel partial sum/sum-sq in f32."""
    y = jnp.dot(x_ref[...], w_ref[...], preferred_element_type=jnp.float32)
    y_ref[...] = y.astype(y_ref.dtype)

    @pl.when(pl.program_id(1) == 0)
    def _():
        s1_ref[...] = jnp.zeros_like(s1_ref)
        s2_ref[...] = jnp.zeros_like(s2_ref)

    s1_ref[...] += jnp.sum(y, axis=0, keepdims=True)[None]
    s2_ref[...] += jnp.sum(y * y, axis=0, keepdims=True)[None]


def _bn_relu_kernel(y_ref, s1_ref, s2_ref, g_ref, b_ref, a_ref, *, count):
    """a = relu(bn(y)) with exact batch stats (partials summed here); bf16 out."""
    s1 = jnp.sum(s1_ref[...], axis=0)
    s2 = jnp.sum(s2_ref[...], axis=0)
    scale, shift = _scale_shift(s1, s2, g_ref[...], b_ref[...], count)
    a = jnp.maximum(y_ref[...].astype(jnp.float32) * scale + shift, 0.0)
    a_ref[...] = a.astype(a_ref.dtype)


def _conv3x3_stats_kernel(xq_ref, w_ref, y_ref, s1_ref, s2_ref, *, taps, th, wo, cp):
    """Row-tiled 3x3 conv: 9 accumulated tap matmuls from the VMEM-resident image
    (no materialized im2col) + per-image BN2 partial stats."""
    t = pl.program_id(1)
    r0 = t * th
    acc = jnp.zeros((th * wo, cp), jnp.float32)
    for k, (rh, rw, g) in enumerate(taps):
        xs = xq_ref[0, pl.ds(r0 + rh, th), pl.ds(rw, wo), pl.ds(g * cp, cp)]
        acc += jnp.dot(xs.reshape(th * wo, cp), w_ref[k],
                       preferred_element_type=jnp.float32)
    y_ref[...] = acc.reshape(1, th, wo, cp).astype(y_ref.dtype)

    @pl.when(t == 0)
    def _():
        s1_ref[...] = jnp.zeros_like(s1_ref)
        s2_ref[...] = jnp.zeros_like(s2_ref)

    s1_ref[...] += jnp.sum(acc, axis=0, keepdims=True)[None]
    s2_ref[...] += jnp.sum(acc * acc, axis=0, keepdims=True)[None]


def _bn_relu_mm_stats_kernel(y2_ref, s1_ref, s2_ref, g_ref, b_ref, w_ref,
                             y3_ref, o1_ref, o2_ref, *, count):
    """a2 = relu(bn2(y2)); y3 = a2 @ w3 (bf16 store); accumulate BN3 partial stats."""
    s1 = jnp.sum(s1_ref[...], axis=0)
    s2 = jnp.sum(s2_ref[...], axis=0)
    scale, shift = _scale_shift(s1, s2, g_ref[...], b_ref[...], count)
    a2 = jnp.maximum(y2_ref[...].astype(jnp.float32) * scale + shift, 0.0).astype(jnp.bfloat16)
    y3 = jnp.dot(a2, w_ref[...], preferred_element_type=jnp.float32)
    y3_ref[...] = y3.astype(y3_ref.dtype)

    @pl.when(pl.program_id(1) == 0)
    def _():
        o1_ref[...] = jnp.zeros_like(o1_ref)
        o2_ref[...] = jnp.zeros_like(o2_ref)

    o1_ref[...] += jnp.sum(y3, axis=0, keepdims=True)[None]
    o2_ref[...] += jnp.sum(y3 * y3, axis=0, keepdims=True)[None]


def _bn_shortcut_add_relu_kernel(y3_ref, s1_ref, s2_ref, g_ref, b_ref,
                                 xs_ref, ws_ref, o_ref, *, count):
    """out = relu(bn3(y3) + xs @ ws) — 1x1 projection shortcut fused into the kernel."""
    s1 = jnp.sum(s1_ref[...], axis=0)
    s2 = jnp.sum(s2_ref[...], axis=0)
    scale, shift = _scale_shift(s1, s2, g_ref[...], b_ref[...], count)
    short = jnp.dot(xs_ref[...], ws_ref[...], preferred_element_type=jnp.float32)
    o_ref[...] = jnp.maximum(y3_ref[...].astype(jnp.float32) * scale + shift + short, 0.0)


def _bn_add_relu_kernel(y3_ref, s1_ref, s2_ref, g_ref, b_ref, short_ref, o_ref, *, count):
    """out = relu(bn3(y3) + shortcut) — identity shortcut."""
    s1 = jnp.sum(s1_ref[...], axis=0)
    s2 = jnp.sum(s2_ref[...], axis=0)
    scale, shift = _scale_shift(s1, s2, g_ref[...], b_ref[...], count)
    o_ref[...] = jnp.maximum(y3_ref[...].astype(jnp.float32) * scale + shift
                             + short_ref[...].astype(jnp.float32), 0.0)


# ------------------------------ pallas_call wrappers ------------------------------

def c1_stats(x2d, w):
    m, k = x2d.shape
    n = w.shape[1]
    tm = _pick_tile_m(m)
    pdim, sdim = _split_tiles(m // tm)
    row_in = pl.BlockSpec((tm, k), lambda p, s, _s=sdim: (p * _s + s, 0))
    row_out = pl.BlockSpec((tm, n), lambda p, s, _s=sdim: (p * _s + s, 0))
    stat_out = pl.BlockSpec((1, 1, n), lambda p, s: (p, 0, 0))
    return pl.pallas_call(
        _mm_stats_kernel,
        out_shape=(jax.ShapeDtypeStruct((m, n), jnp.bfloat16),
                   jax.ShapeDtypeStruct((pdim, 1, n), jnp.float32),
                   jax.ShapeDtypeStruct((pdim, 1, n), jnp.float32)),
        grid=(pdim, sdim),
        in_specs=[row_in, _rep_spec((k, n))],
        out_specs=(row_out, stat_out, stat_out),
        compiler_params=_cparams(("parallel", "arbitrary")),
    )(x2d, w)


def bn_relu(y, s1, s2, g, b, count):
    m, c = y.shape
    tm = _pick_tile_m(m)
    return pl.pallas_call(
        functools.partial(_bn_relu_kernel, count=float(count)),
        out_shape=jax.ShapeDtypeStruct((m, c), jnp.bfloat16),
        grid=(m // tm,),
        in_specs=[_row_spec(tm, c), _rep_spec(s1.shape), _rep_spec(s2.shape),
                  _rep_spec((1, c)), _rep_spec((1, c))],
        out_specs=_row_spec(tm, c),
        compiler_params=_cparams(("parallel",)),
    )(y, s1, s2, g, b)


def conv3x3_stats(xq, w2, taps, ho, wo, cp, th):
    n, hq, wq, gc = xq.shape
    return pl.pallas_call(
        functools.partial(_conv3x3_stats_kernel, taps=tuple(taps), th=th, wo=wo, cp=cp),
        out_shape=(jax.ShapeDtypeStruct((n, ho, wo, cp), jnp.bfloat16),
                   jax.ShapeDtypeStruct((n, 1, cp), jnp.float32),
                   jax.ShapeDtypeStruct((n, 1, cp), jnp.float32)),
        grid=(n, ho // th),
        in_specs=[pl.BlockSpec((1, hq, wq, gc), lambda i, t: (i, 0, 0, 0)),
                  _rep_spec((9, cp, cp))],
        out_specs=(pl.BlockSpec((1, th, wo, cp), lambda i, t: (i, t, 0, 0)),
                   pl.BlockSpec((1, 1, cp), lambda i, t: (i, 0, 0)),
                   pl.BlockSpec((1, 1, cp), lambda i, t: (i, 0, 0))),
        compiler_params=_cparams(("parallel", "arbitrary")),
    )(xq, w2)


def bn_relu_mm_stats(y2, s1, s2, g, b, w3, count):
    m, c = y2.shape
    ncol = w3.shape[1]
    tm = _pick_tile_m(m)
    pdim, sdim = _split_tiles(m // tm)
    row_in = pl.BlockSpec((tm, c), lambda p, s, _s=sdim: (p * _s + s, 0))
    row_out = pl.BlockSpec((tm, ncol), lambda p, s, _s=sdim: (p * _s + s, 0))
    stat_out = pl.BlockSpec((1, 1, ncol), lambda p, s: (p, 0, 0))
    return pl.pallas_call(
        functools.partial(_bn_relu_mm_stats_kernel, count=float(count)),
        out_shape=(jax.ShapeDtypeStruct((m, ncol), jnp.bfloat16),
                   jax.ShapeDtypeStruct((pdim, 1, ncol), jnp.float32),
                   jax.ShapeDtypeStruct((pdim, 1, ncol), jnp.float32)),
        grid=(pdim, sdim),
        in_specs=[row_in, _rep_spec(s1.shape), _rep_spec(s2.shape),
                  _rep_spec((1, c)), _rep_spec((1, c)), _rep_spec((c, ncol))],
        out_specs=(row_out, stat_out, stat_out),
        compiler_params=_cparams(("parallel", "arbitrary")),
    )(y2, s1, s2, g, b, w3)


def bn_shortcut_add_relu(y3, s1, s2, g, b, xs, ws, count):
    m, n = y3.shape
    k = xs.shape[1]
    tm = _pick_tile_m(m)
    return pl.pallas_call(
        functools.partial(_bn_shortcut_add_relu_kernel, count=float(count)),
        out_shape=jax.ShapeDtypeStruct((m, n), jnp.float32),
        grid=(m // tm,),
        in_specs=[_row_spec(tm, n), _rep_spec(s1.shape), _rep_spec(s2.shape),
                  _rep_spec((1, n)), _rep_spec((1, n)),
                  _row_spec(tm, k), _rep_spec((k, n))],
        out_specs=_row_spec(tm, n),
        compiler_params=_cparams(("parallel",)),
    )(y3, s1, s2, g, b, xs, ws)


def bn_add_relu(y3, s1, s2, g, b, short, count):
    m, n = y3.shape
    tm = _pick_tile_m(m)
    return pl.pallas_call(
        functools.partial(_bn_add_relu_kernel, count=float(count)),
        out_shape=jax.ShapeDtypeStruct((m, n), jnp.float32),
        grid=(m // tm,),
        in_specs=[_row_spec(tm, n), _rep_spec(s1.shape), _rep_spec(s2.shape),
                  _rep_spec((1, n)), _rep_spec((1, n)), _row_spec(tm, n)],
        out_specs=_row_spec(tm, n),
        compiler_params=_cparams(("parallel",)),
    )(y3, s1, s2, g, b, short)


# ------------------------------ glue: conv-input arrangement ------------------------------

def _prep_conv_input(a_nhwc, stride):
    """Arrange the BN1+ReLU'd activation (bf16) so every 3x3 tap is a CONTIGUOUS slice.

    stride 1: spatial zero-pad by 1; tap (dh, dw) -> rows dh:dh+Ho, cols dw:dw+Wo.
    stride 2: spatial pad + 2x2 space-to-depth; tap (dh, dw) -> rows dh//2:+Ho,
              cols dw//2:+Wo, channel group (dh%2)*2 + dw%2 (no strided loads needed).
    TODO(synk): fold this pad / space-to-depth into the producing Pallas pass
    (offset output index_map / in-kernel parity split) to avoid the HBM round trip.
    """
    n, h, w, c = a_nhwc.shape
    ho = (h + 2 - 3) // stride + 1
    wo = (w + 2 - 3) // stride + 1
    if stride == 1:
        xq = jnp.pad(a_nhwc, ((0, 0), (1, 1), (1, 1), (0, 0)))
        taps = [(dh, dw, 0) for dh in range(3) for dw in range(3)]
        return xq, ho, wo, taps
    hp = _round_up(h + 2, 2)
    wp = _round_up(w + 2, 2)
    xp = jnp.pad(a_nhwc, ((0, 0), (1, hp - h - 1), (1, wp - w - 1), (0, 0)))
    xq = xp.reshape(n, hp // 2, 2, wp // 2, 2, c)
    xq = xq.transpose(0, 1, 3, 2, 4, 5).reshape(n, hp // 2, wp // 2, 4 * c)
    taps = [(dh // 2, dw // 2, (dh % 2) * 2 + (dw % 2))
            for dh in range(3) for dw in range(3)]
    return xq, ho, wo, taps


# ------------------------------ full forward ------------------------------

def bottleneck_forward(x_nchw, p, half_res):
    stride = 2 if half_res else 1
    if p['ws'] is None and stride != 1:
        raise ValueError("identity shortcut requires stride 1 (indim == outdim with half_res "
                         "is inconsistent in the reference module as well)")

    n, cin, h, w = x_nchw.shape
    bdim = p['w1'].shape[-1]
    outdim = p['w3'].shape[-1]
    cinp, bp, outp = _round_up(cin), _round_up(bdim), _round_up(outdim)
    # TODO(synk): for stages with bdim < 128, run the 3x3 tap matmuls at the true channel
    # width (full-dim block shapes are legal) instead of zero-padding K and N to 128.

    # channel-padded bf16 weights for the MXU; padded gamma/beta are 0 so the padded
    # channels stay exactly zero through every stage and are sliced off at the end.
    w1 = _pad2d(p['w1'].reshape(cin, bdim), cinp, bp).astype(jnp.bfloat16)
    w2 = jnp.pad(p['w2'].reshape(9, bdim, bdim),
                 ((0, 0), (0, bp - bdim), (0, bp - bdim))).astype(jnp.bfloat16)
    w3 = _pad2d(p['w3'].reshape(bdim, outdim), bp, outp).astype(jnp.bfloat16)
    g1, b1 = _pad_last(p['g1'], bp), _pad_last(p['b1'], bp)
    g2, b2 = _pad_last(p['g2'], bp), _pad_last(p['b2'], bp)
    g3, b3 = _pad_last(p['g3'], outp), _pad_last(p['b3'], outp)

    # entry glue (network edge): NCHW->NHWC + channel pad + bf16 cast, one fused XLA pass.
    xb = _pad_last(jnp.transpose(x_nchw, (0, 2, 3, 1)), cinp).astype(jnp.bfloat16)
    m1 = n * h * w

    # --- C1 (1x1) + BN1 partial statistics (parallel x arbitrary grid) ---------------
    y1, s11, s12 = c1_stats(xb.reshape(m1, cinp), w1)
    # --- BN1 apply + ReLU (exact batch stats), bf16 activation for C2 ----------------
    a1 = bn_relu(y1, s11, s12, g1, b1, count=m1)
    # --- C2 (3x3, stride, pad 1) + BN2 per-image stats — row-tiled, no im2col --------
    # NOTE: C2's conv bias is dropped; a per-channel constant before training-mode
    #       BatchNorm is exactly cancelled by the mean subtraction.
    xq, ho, wo, taps = _prep_conv_input(a1.reshape(n, h, w, bp), stride)
    th = _pick_tile_rows(ho, wo)
    y2, s21, s22 = conv3x3_stats(xq, w2, taps, ho, wo, bp, th)
    m2 = n * ho * wo
    # --- BN2 apply + ReLU + C3 (1x1) + BN3 partial stats, one tiled pass --------------
    y3, s31, s32 = bn_relu_mm_stats(y2.reshape(m2, bp), s21, s22, g2, b2, w3, count=m2)
    # --- BN3 apply + residual add + ReLU (1x1 shortcut matmul fused in) ----------------
    if p['ws'] is not None:
        # TODO(synk): do the stride-2 subsample with a row-strided BlockSpec inside the
        # final kernel instead of materializing the strided slice here.
        xs = xb[:, ::stride, ::stride, :].reshape(m2, cinp)
        ws = _pad2d(p['ws'].reshape(cin, outdim), cinp, outp).astype(jnp.bfloat16)
        out = bn_shortcut_add_relu(y3, s31, s32, g3, b3, xs, ws, count=m2)
    else:
        out = bn_add_relu(y3, s31, s32, g3, b3, xb.reshape(m2, cinp), count=m2)

    # exit glue (network edge); when stacking blocks keep the padded NHWC layout instead.
    out = out.reshape(n, ho, wo, outp)[:, :, :, :outdim]
    return jnp.transpose(out, (0, 3, 1, 2))                           # back to NCHW


# ------------------------------ deterministic param init ------------------------------

def init_params(indim, outdim, half_res, key):
    bdim = outdim // 4
    k = jax.random.split(key, 6)
    p = {
        # Kaiming-He style: std = sqrt(2 / (kh*kw*out_channels)); weights stored HWIO
        'w1': jax.random.normal(k[0], (1, 1, indim, bdim), jnp.float32) * (2.0 / (1 * 1 * bdim)) ** 0.5,
        'w2': jax.random.normal(k[1], (3, 3, bdim, bdim), jnp.float32) * (2.0 / (3 * 3 * bdim)) ** 0.5,
        'w3': jax.random.normal(k[2], (1, 1, bdim, outdim), jnp.float32) * (2.0 / (1 * 1 * outdim)) ** 0.5,
        'bias2': jax.random.normal(k[3], (1, bdim), jnp.float32) * 0.1,  # C2 bias (cancelled by BN2)
        'g1': jnp.ones((1, bdim), jnp.float32), 'b1': jnp.zeros((1, bdim), jnp.float32),
        'g2': jnp.ones((1, bdim), jnp.float32), 'b2': jnp.zeros((1, bdim), jnp.float32),
        'g3': jnp.ones((1, outdim), jnp.float32), 'b3': jnp.zeros((1, outdim), jnp.float32),
    }
    if indim != outdim:
        p['ws'] = jax.random.normal(k[4], (1, 1, indim, outdim), jnp.float32) * (2.0 / (1 * 1 * outdim)) ** 0.5
    else:
        p['ws'] = None
    return p


# ------------------------------ pure-JAX f32 reference ------------------------------

def ref_forward(x_nchw, p, half_res):
    stride = 2 if half_res else 1

    def conv(x, w, s, pad):
        return jax.lax.conv_general_dilated(x, w, (s, s), pad,
                                            dimension_numbers=('NHWC', 'HWIO', 'NHWC'),
                                            precision=jax.lax.Precision.HIGHEST)

    def bn(y, g, b):
        mean = y.mean(axis=(0, 1, 2), keepdims=True)
        var = ((y - mean) ** 2).mean(axis=(0, 1, 2), keepdims=True)
        return (y - mean) * jax.lax.rsqrt(var + EPS) * g.reshape(1, 1, 1, -1) + b.reshape(1, 1, 1, -1)

    x = jnp.transpose(x_nchw, (0, 2, 3, 1)).astype(jnp.float32)
    short = x if p['ws'] is None else conv(x, p['ws'], stride, 'VALID')
    o = jnp.maximum(bn(conv(x, p['w1'], 1, 'VALID'), p['g1'], p['b1']), 0.0)
    o = conv(o, p['w2'], stride, ((1, 1), (1, 1))) + p['bias2'].reshape(1, 1, 1, -1)
    o = jnp.maximum(bn(o, p['g2'], p['b2']), 0.0)
    o = bn(conv(o, p['w3'], 1, 'VALID'), p['g3'], p['b3'])
    o = jnp.maximum(o + short, 0.0)
    return jnp.transpose(o, (0, 3, 1, 2))


# ------------------------------ main ------------------------------

if __name__ == "__main__":
    key = jax.random.PRNGKey(0)
    kx, kp = jax.random.split(key)

    indim, outdim, half_res = 4, 8, True          # bottleneckdim = 2, 1x1 stride-2 shortcut
    x = jax.random.normal(kx, (2, indim, 16, 16), jnp.float32)       # NCHW, like PyTorch

    params = init_params(indim, outdim, half_res, kp)

    fwd = jax.jit(functools.partial(bottleneck_forward, half_res=half_res))
    out = jax.block_until_ready(fwd(x, params))

    ref = jax.block_until_ready(ref_forward(x, params, half_res))
    assert out.shape == ref.shape, (out.shape, ref.shape)
    err = float(jnp.max(jnp.abs(out - ref)))
    # matmuls run with bf16 MXU inputs (f32 accumulation) and bf16 intermediates, so
    # compare to the f32 reference with a bf16-appropriate tolerance
    assert jnp.allclose(out, ref, atol=7.5e-2, rtol=7.5e-2), err
    print("KERNEL_OK")
</pallas_src>

<mosaic_0001>
module attributes {stable_mosaic.version = 11 : i64} {
  func.func @_mm_stats_kernel(%arg0: i32, %arg1: i32, %arg2: memref<512x128xbf16, #tpu.memory_space<vmem>>, %arg3: memref<128x128xbf16, #tpu.memory_space<vmem>>, %arg4: memref<512x128xbf16, #tpu.memory_space<vmem>>, %arg5: memref<1x1x128xf32, #tpu.memory_space<vmem>>, %arg6: memref<1x1x128xf32, #tpu.memory_space<vmem>>) attributes {dimension_semantics = [#tpu.dimension_semantics<parallel>, #tpu.dimension_semantics<arbitrary>], iteration_bounds = array<i64: 1, 1>, scalar_prefetch = 0 : i64, scratch_operands = 0 : i64, tpu.core_type = #tpu.core_type<tc>, window_params = [{transform_indices = @transform_0, window_bounds = array<i64: 512, 128>}, {pipeline_mode = #tpu.pipeline_mode<synchronous>, transform_indices = @transform_1, window_bounds = array<i64: 128, 128>}, {transform_indices = @transform_2, window_bounds = array<i64: 512, 128>}, {transform_indices = @transform_3, window_bounds = array<i64: 1, 1, 128>}, {transform_indices = @transform_4, window_bounds = array<i64: 1, 1, 128>}]} {
    %c0 = arith.constant 0 : index
    %c0_0 = arith.constant 0 : index
    %0 = vector.load %arg2[%c0, %c0_0] : memref<512x128xbf16, #tpu.memory_space<vmem>>, vector<512x128xbf16>
    %c0_1 = arith.constant 0 : index
    %c0_2 = arith.constant 0 : index
    %1 = vector.load %arg3[%c0_1, %c0_2] : memref<128x128xbf16, #tpu.memory_space<vmem>>, vector<128x128xbf16>
    %cst = arith.constant dense<0.000000e+00> : vector<512x128xf32>
    %2 = tpu.matmul %0, %1, %cst {dimension_numbers = #tpu.dot_dimension_numbers<[1], [0], [0], [1], [0, 0, 1, 1], [], []>} : vector<512x128xbf16>, vector<128x128xbf16>, vector<512x128xf32> -> vector<512x128xf32>
    %3 = arith.truncf %2 : vector<512x128xf32> to vector<512x128xbf16>
    %c0_3 = arith.constant 0 : index
    %c0_4 = arith.constant 0 : index
    %4 = vector.load %arg4[%c0_3, %c0_4] : memref<512x128xbf16, #tpu.memory_space<vmem>>, vector<512x128xbf16>
    tpu.vector_store %arg4[%c0_3, %c0_4], %3 {strides = array<i32>} : memref<512x128xbf16, #tpu.memory_space<vmem>>, vector<512x128xbf16>,
    %c0_i32 = arith.constant 0 : i32
    %5 = arith.cmpi eq, %arg1, %c0_i32 : i32
    %6 = arith.extui %5 : i1 to i32
    %c0_i32_5 = arith.constant 0 : i32
    %7 = arith.cmpi ne, %6, %c0_i32_5 : i32
    scf.if %7 {
      %cst_20 = arith.constant 0.000000e+00 : f32
      %21 = vector.broadcast %cst_20 : f32 to vector<1x1x128xf32>
      %c0_21 = arith.constant 0 : index
      %c0_22 = arith.constant 0 : index
      %c0_23 = arith.constant 0 : index
      %22 = vector.load %arg5[%c0_21, %c0_22, %c0_23] : memref<1x1x128xf32, #tpu.memory_space<vmem>>, vector<1x1x128xf32>
      tpu.vector_store %arg5[%c0_21, %c0_22, %c0_23], %21 {strides = array<i32>} : memref<1x1x128xf32, #tpu.memory_space<vmem>>, vector<1x1x128xf32>,
      %cst_24 = arith.constant 0.000000e+00 : f32
      %23 = vector.broadcast %cst_24 : f32 to vector<1x1x128xf32>
      %c0_25 = arith.constant 0 : index
      %c0_26 = arith.constant 0 : index
      %c0_27 = arith.constant 0 : index
      %24 = vector.load %arg6[%c0_25, %c0_26, %c0_27] : memref<1x1x128xf32, #tpu.memory_space<vmem>>, vector<1x1x128xf32>
      tpu.vector_store %arg6[%c0_25, %c0_26, %c0_27], %23 {strides = array<i32>} : memref<1x1x128xf32, #tpu.memory_space<vmem>>, vector<1x1x128xf32>,
    } else {
    }
    %c0_6 = arith.constant 0 : index
    %c0_7 = arith.constant 0 : index
    %c0_8 = arith.constant 0 : index
    %8 = vector.load %arg5[%c0_6, %c0_7, %c0_8] : memref<1x1x128xf32, #tpu.memory_space<vmem>>, vector<1x1x128xf32>
    %cst_9 = arith.constant dense<0.000000e+00> : vector<128xf32>
    %9 = vector.multi_reduction <add>, %2, %cst_9 [0] : vector<512x128xf32> to vector<128xf32>
    %10 = vector.shape_cast %9 : vector<128xf32> to vector<1x128xf32>
    %11 = vector.shape_cast %10 : vector<1x128xf32> to vector<1x1x128xf32>
    %12 = arith.addf %8, %11 : vector<1x1x128xf32>
    %c0_10 = arith.constant 0 : index
    %c0_11 = arith.constant 0 : index
    %c0_12 = arith.constant 0 : index
    %13 = vector.load %arg5[%c0_10, %c0_11, %c0_12] : memref<1x1x128xf32, #tpu.memory_space<vmem>>, vector<1x1x128xf32>
    tpu.vector_store %arg5[%c0_10, %c0_11, %c0_12], %12 {strides = array<i32>} : memref<1x1x128xf32, #tpu.memory_space<vmem>>, vector<1x1x128xf32>,
    %c0_13 = arith.constant 0 : index
    %c0_14 = arith.constant 0 : index
    %c0_15 = arith.constant 0 : index
    %14 = vector.load %arg6[%c0_13, %c0_14, %c0_15] : memref<1x1x128xf32, #tpu.memory_space<vmem>>, vector<1x1x128xf32>
    %15 = arith.mulf %2, %2 : vector<512x128xf32>
    %cst_16 = arith.constant dense<0.000000e+00> : vector<128xf32>
    %16 = vector.multi_reduction <add>, %15, %cst_16 [0] : vector<512x128xf32> to vector<128xf32>
    %17 = vector.shape_cast %16 : vector<128xf32> to vector<1x128xf32>
    %18 = vector.shape_cast %17 : vector<1x128xf32> to vector<1x1x128xf32>
    %19 = arith.addf %14, %18 : vector<1x1x128xf32>
    %c0_17 = arith.constant 0 : index
    %c0_18 = arith.constant 0 : index
    %c0_19 = arith.constant 0 : index
    %20 = vector.load %arg6[%c0_17, %c0_18, %c0_19] : memref<1x1x128xf32, #tpu.memory_space<vmem>>, vector<1x1x128xf32>
    tpu.vector_store %arg6[%c0_17, %c0_18, %c0_19], %19 {strides = array<i32>} : memref<1x1x128xf32, #tpu.memory_space<vmem>>, vector<1x1x128xf32>,
    return
  }
  func.func @transform_0(%arg0: i32, %arg1: i32) -> (i32, i32) {
    %c1_i32 = arith.constant 1 : i32
    %0 = arith.muli %arg0, %c1_i32 : i32
    %1 = arith.addi %0, %arg1 : i32
    %c0_i32 = arith.constant 0 : i32
    %c0_i32_0 = arith.constant 0 : i32
    return %1, %c0_i32 : i32, i32
  }
  func.func @transform_1(%arg0: i32, %arg1: i32) -> (i32, i32) {
    %c0_i32 = arith.constant 0 : i32
    %c0_i32_0 = arith.constant 0 : i32
    %c0_i32_1 = arith.constant 0 : i32
    return %c0_i32, %c0_i32_0 : i32, i32
  }
  func.func @transform_2(%arg0: i32, %arg1: i32) -> (i32, i32) {
    %c1_i32 = arith.constant 1 : i32
    %0 = arith.muli %arg0, %c1_i32 : i32
    %1 = arith.addi %0, %arg1 : i32
    %c0_i32 = arith.constant 0 : i32
    %c0_i32_0 = arith.constant 0 : i32
    return %1, %c0_i32 : i32, i32
  }
  func.func @transform_3(%arg0: i32, %arg1: i32) -> (i32, i32, i32) {
    %c0_i32 = arith.constant 0 : i32
    %c0_i32_0 = arith.constant 0 : i32
    %c0_i32_1 = arith.constant 0 : i32
    return %arg0, %c0_i32, %c0_i32_0 : i32, i32, i32
  }
  func.func @transform_4(%arg0: i32, %arg1: i32) -> (i32, i32, i32) {
    %c0_i32 = arith.constant 0 : i32
    %c0_i32_0 = arith.constant 0 : i32
    %c0_i32_1 = arith.constant 0 : i32
    return %arg0, %c0_i32, %c0_i32_0 : i32, i32, i32
  }
}

module attributes {stable_mosaic.version = 11 : i64} {
  func.func @_bn_relu_kernel(%arg0: i32, %arg1: memref<512x128xbf16, #tpu.memory_space<vmem>>, %arg2: memref<1x1x128xf32, #tpu.memory_space<vmem>>, %arg3: memref<1x1x128xf32, #tpu.memory_space<vmem>>, %arg4: memref<1x128xf32, #tpu.memory_space<vmem>>, %arg5: memref<1x128xf32, #tpu.memory_space<vmem>>, %arg6: memref<512x128xbf16, #tpu.memory_space<vmem>>) attributes {dimension_semantics = [#tpu.dimension_semantics<parallel>], iteration_bounds = array<i64: 1>, scalar_prefetch = 0 : i64, scratch_operands = 0 : i64, tpu.core_type = #tpu.core_type<tc>, window_params = [{transform_indices = @transform_0, window_bounds = array<i64: 512, 128>}, {pipeline_mode = #tpu.pipeline_mode<synchronous>, transform_indices = @transform_1, window_bounds = array<i64: 1, 1, 128>}, {pipeline_mode = #tpu.pipeline_mode<synchronous>, transform_indices = @transform_2, window_bounds = array<i64: 1, 1, 128>}, {pipeline_mode = #tpu.pipeline_mode<synchronous>, transform_indices = @transform_3, window_bounds = array<i64: 1, 128>}, {pipeline_mode = #tpu.pipeline_mode<synchronous>, transform_indices = @transform_4, window_bounds = array<i64: 1, 128>}, {transform_indices = @transform_5, window_bounds = array<i64: 512, 128>}]} {
    %c0 = arith.constant 0 : index
    %c0_0 = arith.constant 0 : index
    %c0_1 = arith.constant 0 : index
    %0 = vector.load %arg2[%c0, %c0_0, %c0_1] : memref<1x1x128xf32, #tpu.memory_space<vmem>>, vector<1x1x128xf32>
    %cst = arith.constant dense<0.000000e+00> : vector<1x128xf32>
    %1 = vector.multi_reduction <add>, %0, %cst [0] : vector<1x1x128xf32> to vector<1x128xf32>
    %c0_2 = arith.constant 0 : index
    %c0_3 = arith.constant 0 : index
    %c0_4 = arith.constant 0 : index
    %2 = vector.load %arg3[%c0_2, %c0_3, %c0_4] : memref<1x1x128xf32, #tpu.memory_space<vmem>>, vector<1x1x128xf32>
    %cst_5 = arith.constant dense<0.000000e+00> : vector<1x128xf32>
    %3 = vector.multi_reduction <add>, %2, %cst_5 [0] : vector<1x1x128xf32> to vector<1x128xf32>
    %c0_6 = arith.constant 0 : index
    %c0_7 = arith.constant 0 : index
    %4 = vector.load %arg4[%c0_6, %c0_7] : memref<1x128xf32, #tpu.memory_space<vmem>>, vector<1x128xf32>
    %c0_8 = arith.constant 0 : index
    %c0_9 = arith.constant 0 : index
    %5 = vector.load %arg5[%c0_8, %c0_9] : memref<1x128xf32, #tpu.memory_space<vmem>>, vector<1x128xf32>
    %cst_10 = arith.constant 5.120000e+02 : f32
    %6 = vector.broadcast %cst_10 : f32 to vector<1x128xf32>
    %7 = arith.divf %1, %6 : vector<1x128xf32>
    %cst_11 = arith.constant 5.120000e+02 : f32
    %8 = vector.broadcast %cst_11 : f32 to vector<1x128xf32>
    %9 = arith.divf %3, %8 : vector<1x128xf32>
    %10 = arith.mulf %7, %7 : vector<1x128xf32>
    %11 = arith.subf %9, %10 : vector<1x128xf32>
    %cst_12 = arith.constant 0.000000e+00 : f32
    %12 = vector.broadcast %cst_12 : f32 to vector<1x128xf32>
    %13 = arith.maximumf %11, %12 : vector<1x128xf32>
    %cst_13 = arith.constant 9.99999974E-6 : f32
    %14 = vector.broadcast %cst_13 : f32 to vector<1x128xf32>
    %15 = arith.addf %13, %14 : vector<1x128xf32>
    %16 = math.rsqrt %15 : vector<1x128xf32>
    %17 = arith.mulf %4, %16 : vector<1x128xf32>
    %18 = arith.mulf %7, %17 : vector<1x128xf32>
    %19 = arith.subf %5, %18 : vector<1x128xf32>
    %c0_14 = arith.constant 0 : index
    %c0_15 = arith.constant 0 : index
    %20 = vector.load %arg1[%c0_14, %c0_15] : memref<512x128xbf16, #tpu.memory_space<vmem>>, vector<512x128xbf16>
    %21 = arith.extf %20 : vector<512x128xbf16> to vector<512x128xf32>
    %22 = vector.broadcast %17 : vector<1x128xf32> to vector<512x128xf32>
    %23 = arith.mulf %21, %22 : vector<512x128xf32>
    %24 = vector.broadcast %19 : vector<1x128xf32> to vector<512x128xf32>
    %25 = arith.addf %23, %24 : vector<512x128xf32>
    %cst_16 = arith.constant 0.000000e+00 : f32
    %26 = vector.broadcast %cst_16 : f32 to vector<512x128xf32>
    %27 = arith.maximumf %25, %26 : vector<512x128xf32>
    %28 = arith.truncf %27 : vector<512x128xf32> to vector<512x128xbf16>
    %c0_17 = arith.constant 0 : index
    %c0_18 = arith.constant 0 : index
    %29 = vector.load %arg6[%c0_17, %c0_18] : memref<512x128xbf16, #tpu.memory_space<vmem>>, vector<512x128xbf16>
    tpu.vector_store %arg6[%c0_17, %c0_18], %28 {strides = array<i32>} : memref<512x128xbf16, #tpu.memory_space<vmem>>, vector<512x128xbf16>,
    return
  }
  func.func @transform_0(%arg0: i32) -> (i32, i32) {
    %c0_i32 = arith.constant 0 : i32
    %c0_i32_0 = arith.constant 0 : i32
    return %arg0, %c0_i32 : i32, i32
  }
  func.func @transform_1(%arg0: i32) -> (i32, i32, i32) {
    %c0_i32 = arith.constant 0 : i32
    %c0_i32_0 = arith.constant 0 : i32
    %c0_i32_1 = arith.constant 0 : i32
    %c0_i32_2 = arith.constant 0 : i32
    return %c0_i32, %c0_i32_0, %c0_i32_1 : i32, i32, i32
  }
  func.func @transform_2(%arg0: i32) -> (i32, i32, i32) {
    %c0_i32 = arith.constant 0 : i32
    %c0_i32_0 = arith.constant 0 : i32
    %c0_i32_1 = arith.constant 0 : i32
    %c0_i32_2 = arith.constant 0 : i32
    return %c0_i32, %c0_i32_0, %c0_i32_1 : i32, i32, i32
  }
  func.func @transform_3(%arg0: i32) -> (i32, i32) {
    %c0_i32 = arith.constant 0 : i32
    %c0_i32_0 = arith.constant 0 : i32
    %c0_i32_1 = arith.constant 0 : i32
    return %c0_i32, %c0_i32_0 : i32, i32
  }
  func.func @transform_4(%arg0: i32) -> (i32, i32) {
    %c0_i32 = arith.constant 0 : i32
    %c0_i32_0 = arith.constant 0 : i32
    %c0_i32_1 = arith.constant 0 : i32
    return %c0_i32, %c0_i32_0 : i32, i32
  }
  func.func @transform_5(%arg0: i32) -> (i32, i32) {
    %c0_i32 = arith.constant 0 : i32
    %c0_i32_0 = arith.constant 0 : i32
    return %arg0, %c0_i32 : i32, i32
  }
}

module attributes {stable_mosaic.version = 11 : i64} {
  func.func @_conv3x3_stats_kernel(%arg0: i32, %arg1: i32, %arg2: memref<1x9x9x512xbf16, #tpu.memory_space<vmem>>, %arg3: memref<9x128x128xbf16, #tpu.memory_space<vmem>>, %arg4: memref<1x8x8x128xbf16, #tpu.memory_space<vmem>>, %arg5: memref<1x1x128xf32, #tpu.memory_space<vmem>>, %arg6: memref<1x1x128xf32, #tpu.memory_space<vmem>>) attributes {dimension_semantics = [#tpu.dimension_semantics<parallel>, #tpu.dimension_semantics<arbitrary>], iteration_bounds = array<i64: 2, 1>, scalar_prefetch = 0 : i64, scratch_operands = 0 : i64, tpu.core_type = #tpu.core_type<tc>, window_params = [{transform_indices = @transform_0, window_bounds = array<i64: 1, 9, 9, 512>}, {pipeline_mode = #tpu.pipeline_mode<synchronous>, transform_indices = @transform_1, window_bounds = array<i64: 9, 128, 128>}, {transform_indices = @transform_2, window_bounds = array<i64: 1, 8, 8, 128>}, {transform_indices = @transform_3, window_bounds = array<i64: 1, 1, 128>}, {transform_indices = @transform_4, window_bounds = array<i64: 1, 1, 128>}]} {
    %c8_i32 = arith.constant 8 : i32
    %0 = arith.muli %arg1, %c8_i32 : i32
    %cst = arith.constant 0.000000e+00 : f32
    %1 = vector.broadcast %cst : f32 to vector<64x128xf32>
    %c0_i32 = arith.constant 0 : i32
    %2 = arith.addi %0, %c0_i32 : i32
    %c0 = arith.constant 0 : index
    %3 = arith.index_cast %2 : i32 to index
    %c0_0 = arith.constant 0 : index
    %c0_1 = arith.constant 0 : index
    %4 = vector.load %arg2[%c0, %3, %c0_0, %c0_1] : memref<1x9x9x512xbf16, #tpu.memory_space<vmem>>, vector<1x8x8x128xbf16>
    %5 = vector.shape_cast %4 : vector<1x8x8x128xbf16> to vector<8x8x128xbf16>
    %6 = vector.shape_cast %5 : vector<8x8x128xbf16> to vector<64x128xbf16>
    %c0_2 = arith.constant 0 : index
    %c0_3 = arith.constant 0 : index
    %c0_4 = arith.constant 0 : index
    %7 = vector.load %arg3[%c0_2, %c0_3, %c0_4] : memref<9x128x128xbf16, #tpu.memory_space<vmem>>, vector<1x128x128xbf16>
    %8 = vector.shape_cast %7 : vector<1x128x128xbf16> to vector<128x128xbf16>
    %cst_5 = arith.constant dense<0.000000e+00> : vector<64x128xf32>
    %9 = tpu.matmul %6, %8, %cst_5 {dimension_numbers = #tpu.dot_dimension_numbers<[1], [0], [0], [1], [0, 0, 1, 1], [], []>} : vector<64x128xbf16>, vector<128x128xbf16>, vector<64x128xf32> -> vector<64x128xf32>
    %10 = arith.addf %1, %9 : vector<64x128xf32>
    %c0_i32_6 = arith.constant 0 : i32
    %11 = arith.addi %0, %c0_i32_6 : i32
    %c0_7 = arith.constant 0 : index
    %12 = arith.index_cast %11 : i32 to index
    %c0_8 = arith.constant 0 : index
    %c128 = arith.constant 128 : index
    %13 = vector.load %arg2[%c0_7, %12, %c0_8, %c128] : memref<1x9x9x512xbf16, #tpu.memory_space<vmem>>, vector<1x8x8x128xbf16>
    %14 = vector.shape_cast %13 : vector<1x8x8x128xbf16> to vector<8x8x128xbf16>
    %15 = vector.shape_cast %14 : vector<8x8x128xbf16> to vector<64x128xbf16>
    %c1 = arith.constant 1 : index
    %c0_9 = arith.constant 0 : index
    %c0_10 = arith.constant 0 : index
    %16 = vector.load %arg3[%c1, %c0_9, %c0_10] : memref<9x128x128xbf16, #tpu.memory_space<vmem>>, vector<1x128x128xbf16>
    %17 = vector.shape_cast %16 : vector<1x128x128xbf16> to vector<128x128xbf16>
    %cst_11 = arith.constant dense<0.000000e+00> : vector<64x128xf32>
    %18 = tpu.matmul %15, %17, %cst_11 {dimension_numbers = #tpu.dot_dimension_numbers<[1], [0], [0], [1], [0, 0, 1, 1], [], []>} : vector<64x128xbf16>, vector<128x128xbf16>, vector<64x128xf32> -> vector<64x128xf32>
    %19 = arith.addf %10, %18 : vector<64x128xf32>
    %c0_i32_12 = arith.constant 0 : i32
    %20 = arith.addi %0, %c0_i32_12 : i32
    %c0_13 = arith.constant 0 : index
    %21 = arith.index_cast %20 : i32 to index
    %c1_14 = arith.constant 1 : index
    %c0_15 = arith.constant 0 : index
    %22 = vector.load %arg2[%c0_13, %21, %c1_14, %c0_15] : memref<1x9x9x512xbf16, #tpu.memory_space<vmem>>, vector<1x8x8x128xbf16>
    %23 = vector.shape_cast %22 : vector<1x8x8x128xbf16> to vector<8x8x128xbf16>
    %24 = vector.shape_cast %23 : vector<8x8x128xbf16> to vector<64x128xbf16>
    %c2 = arith.constant 2 : index
    %c0_16 = arith.constant 0 : index
    %c0_17 = arith.constant 0 : index
    %25 = vector.load %arg3[%c2, %c0_16, %c0_17] : memref<9x128x128xbf16, #tpu.memory_space<vmem>>, vector<1x128x128xbf16>
    %26 = vector.shape_cast %25 : vector<1x128x128xbf16> to vector<128x128xbf16>
    %cst_18 = arith.constant dense<0.000000e+00> : vector<64x128xf32>
    %27 = tpu.matmul %24, %26, %cst_18 {dimension_numbers = #tpu.dot_dimension_numbers<[1], [0], [0], [1], [0, 0, 1, 1], [], []>} : vector<64x128xbf16>, vector<128x128xbf16>, vector<64x128xf32> -> vector<64x128xf32>
    %28 = arith.addf %19, %27 : vector<64x128xf32>
    %c0_i32_19 = arith.constant 0 : i32
    %29 = arith.addi %0, %c0_i32_19 : i32
    %c0_20 = arith.constant 0 : index
    %30 = arith.index_cast %29 : i32 to index
    %c0_21 = arith.constant 0 : index
    %c256 = arith.constant 256 : index
    %31 = vector.load %arg2[%c0_20, %30, %c0_21, %c256] : memref<1x9x9x512xbf16, #tpu.memory_space<vmem>>, vector<1x8x8x128xbf16>
    %32 = vector.shape_cast %31 : vector<1x8x8x128xbf16> to vector<8x8x128xbf16>
    %33 = vector.shape_cast %32 : vector<8x8x128xbf16> to vector<64x128xbf16>
    %c3 = arith.constant 3 : index
    %c0_22 = arith.constant 0 : index
    %c0_23 = arith.constant 0 : index
    %34 = vector.load %arg3[%c3, %c0_22, %c0_23] : memref<9x128x128xbf16, #tpu.memory_space<vmem>>, vector<1x128x128xbf16>
    %35 = vector.shape_cast %34 : vector<1x128x128xbf16> to vector<128x128xbf16>
    %cst_24 = arith.constant dense<0.000000e+00> : vector<64x128xf32>
    %36 = tpu.matmul %33, %35, %cst_24 {dimension_numbers = #tpu.dot_dimension_numbers<[1], [0], [0], [1], [0, 0, 1, 1], [], []>} : vector<64x128xbf16>, vector<128x128xbf16>, vector<64x128xf32> -> vector<64x128xf32>
    %37 = arith.addf %28, %36 : vector<64x128xf32>
    %c0_i32_25 = arith.constant 0 : i32
    %38 = arith.addi %0, %c0_i32_25 : i32
    %c0_26 = arith.constant 0 : index
    %39 = arith.index_cast %38 : i32 to index
    %c0_27 = arith.constant 0 : index
    %c384 = arith.constant 384 : index
    %40 = vector.load %arg2[%c0_26, %39, %c0_27, %c384] : memref<1x9x9x512xbf16, #tpu.memory_space<vmem>>, vector<1x8x8x128xbf16>
    %41 = vector.shape_cast %40 : vector<1x8x8x128xbf16> to vector<8x8x128xbf16>
    %42 = vector.shape_cast %41 : vector<8x8x128xbf16> to vector<64x128xbf16>
    %c4 = arith.constant 4 : index
    %c0_28 = arith.constant 0 : index
    %c0_29 = arith.constant 0 : index
    %43 = vector.load %arg3[%c4, %c0_28, %c0_29] : memref<9x128x128xbf16, #tpu.memory_space<vmem>>, vector<1x128x128xbf16>
    %44 = vector.shape_cast %43 : vector<1x128x128xbf16> to vector<128x128xbf16>
    %cst_30 = arith.constant dense<0.000000e+00> : vector<64x128xf32>
    %45 = tpu.matmul %42, %44, %cst_30 {dimension_numbers = #tpu.dot_dimension_numbers<[1], [0], [0], [1], [0, 0, 1, 1], [], []>} : vector<64x128xbf16>, vector<128x128xbf16>, vector<64x128xf32> -> vector<64x128xf32>
    %46 = arith.addf %37, %45 : vector<64x128xf32>
    %c0_i32_31 = arith.constant 0 : i32
    %47 = arith.addi %0, %c0_i32_31 : i32
    %c0_32 = arith.constant 0 : index
    %48 = arith.index_cast %47 : i32 to index
    %c1_33 = arith.constant 1 : index
    %c256_34 = arith.constant 256 : index
    %49 = vector.load %arg2[%c0_32, %48, %c1_33, %c256_34] : memref<1x9x9x512xbf16, #tpu.memory_space<vmem>>, vector<1x8x8x128xbf16>
    %50 = vector.shape_cast %49 : vector<1x8x8x128xbf16> to vector<8x8x128xbf16>
    %51 = vector.shape_cast %50 : vector<8x8x128xbf16> to vector<64x128xbf16>
    %c5 = arith.constant 5 : index
    %c0_35 = arith.constant 0 : index
    %c0_36 = arith.constant 0 : index
    %52 = vector.load %arg3[%c5, %c0_35, %c0_36] : memref<9x128x128xbf16, #tpu.memory_space<vmem>>, vector<1x128x128xbf16>
    %53 = vector.shape_cast %52 : vector<1x128x128xbf16> to vector<128x128xbf16>
    %cst_37 = arith.constant dense<0.000000e+00> : vector<64x128xf32>
    %54 = tpu.matmul %51, %53, %cst_37 {dimension_numbers = #tpu.dot_dimension_numbers<[1], [0], [0], [1], [0, 0, 1, 1], [], []>} : vector<64x128xbf16>, vector<128x128xbf16>, vector<64x128xf32> -> vector<64x128xf32>
    %55 = arith.addf %46, %54 : vector<64x128xf32>
    %c1_i32 = arith.constant 1 : i32
    %56 = arith.addi %0, %c1_i32 : i32
    %c0_38 = arith.constant 0 : index
    %57 = arith.index_cast %56 : i32 to index
    %c0_39 = arith.constant 0 : index
    %c0_40 = arith.constant 0 : index
    %58 = vector.load %arg2[%c0_38, %57, %c0_39, %c0_40] : memref<1x9x9x512xbf16, #tpu.memory_space<vmem>>, vector<1x8x8x128xbf16>
    %59 = vector.shape_cast %58 : vector<1x8x8x128xbf16> to vector<8x8x128xbf16>
    %60 = vector.shape_cast %59 : vector<8x8x128xbf16> to vector<64x128xbf16>
    %c6 = arith.constant 6 : index
    %c0_41 = arith.constant 0 : index
    %c0_42 = arith.constant 0 : index
    %61 = vector.load %arg3[%c6, %c0_41, %c0_42] : memref<9x128x128xbf16, #tpu.memory_space<vmem>>, vector<1x128x128xbf16>
    %62 = vector.shape_cast %61 : vector<1x128x128xbf16> to vector<128x128xbf16>
    %cst_43 = arith.constant dense<0.000000e+00> : vector<64x128xf32>
    %63 = tpu.matmul %60, %62, %cst_43 {dimension_numbers = #tpu.dot_dimension_numbers<[1], [0], [0], [1], [0, 0, 1, 1], [], []>} : vector<64x128xbf16>, vector<128x128xbf16>, vector<64x128xf32> -> vector<64x128xf32>
    %64 = arith.addf %55, %63 : vector<64x128xf32>
    %c1_i32_44 = arith.constant 1 : i32
    %65 = arith.addi %0, %c1_i32_44 : i32
    %c0_45 = arith.constant 0 : index
    %66 = arith.index_cast %65 : i32 to index
    %c0_46 = arith.constant 0 : index
    %c128_47 = arith.constant 128 : index
    %67 = vector.load %arg2[%c0_45, %66, %c0_46, %c128_47] : memref<1x9x9x512xbf16, #tpu.memory_space<vmem>>, vector<1x8x8x128xbf16>
    %68 = vector.shape_cast %67 : vector<1x8x8x128xbf16> to vector<8x8x128xbf16>
    %69 = vector.shape_cast %68 : vector<8x8x128xbf16> to vector<64x128xbf16>
    %c7 = arith.constant 7 : index
    %c0_48 = arith.constant 0 : index
    %c0_49 = arith.constant 0 : index
    %70 = vector.load %arg3[%c7, %c0_48, %c0_49] : memref<9x128x128xbf16, #tpu.memory_space<vmem>>, vector<1x128x128xbf16>
    %71 = vector.shape_cast %70 : vector<1x128x128xbf16> to vector<128x128xbf16>
    %cst_50 = arith.constant dense<0.000000e+00> : vector<64x128xf32>
    %72 = tpu.matmul %69, %71, %cst_50 {dimension_numbers = #tpu.dot_dimension_numbers<[1], [0], [0], [1], [0, 0, 1, 1], [], []>} : vector<64x128xbf16>, vector<128x128xbf16>, vector<64x128xf32> -> vector<64x128xf32>
    %73 = arith.addf %64, %72 : vector<64x128xf32>
    %c1_i32_51 = arith.constant 1 : i32
    %74 = arith.addi %0, %c1_i32_51 : i32
    %c0_52 = arith.constant 0 : index
    %75 = arith.index_cast %74 : i32 to index
    %c1_53 = arith.constant 1 : index
    %c0_54 = arith.constant 0 : index
    %76 = vector.load %arg2[%c0_52, %75, %c1_53, %c0_54] : memref<1x9x9x512xbf16, #tpu.memory_space<vmem>>, vector<1x8x8x128xbf16>
    %77 = vector.shape_cast %76 : vector<1x8x8x128xbf16> to vector<8x8x128xbf16>
    %78 = vector.shape_cast %77 : vector<8x8x128xbf16> to vector<64x128xbf16>
    %c8 = arith.constant 8 : index
    %c0_55 = arith.constant 0 : index
    %c0_56 = arith.constant 0 : index
    %79 = vector.load %arg3[%c8, %c0_55, %c0_56] : memref<9x128x128xbf16, #tpu.memory_space<vmem>>, vector<1x128x128xbf16>
    %80 = vector.shape_cast %79 : vector<1x128x128xbf16> to vector<128x128xbf16>
    %cst_57 = arith.constant dense<0.000000e+00> : vector<64x128xf32>
    %81 = tpu.matmul %78, %80, %cst_57 {dimension_numbers = #tpu.dot_dimension_numbers<[1], [0], [0], [1], [0, 0, 1, 1], [], []>} : vector<64x128xbf16>, vector<128x128xbf16>, vector<64x128xf32> -> vector<64x128xf32>
    %82 = arith.addf %73, %81 : vector<64x128xf32>
    %83 = vector.shape_cast %82 : vector<64x128xf32> to vector<1x8x8x128xf32>
    %84 = arith.truncf %83 : vector<1x8x8x128xf32> to vector<1x8x8x128xbf16>
    %c0_58 = arith.constant 0 : index
    %c0_59 = arith.constant 0 : index
    %c0_60 = arith.constant 0 : index
    %c0_61 = arith.constant 0 : index
    %85 = vector.load %arg4[%c0_58, %c0_59, %c0_60, %c0_61] : memref<1x8x8x128xbf16, #tpu.memory_space<vmem>>, vector<1x8x8x128xbf16>
    tpu.vector_store %arg4[%c0_58, %c0_59, %c0_60, %c0_61], %84 {strides = array<i32>} : memref<1x8x8x128xbf16, #tpu.memory_space<vmem>>, vector<1x8x8x128xbf16>,
    %c0_i32_62 = arith.constant 0 : i32
    %86 = arith.cmpi eq, %arg1, %c0_i32_62 : i32
    %87 = arith.extui %86 : i1 to i32
    %c0_i32_63 = arith.constant 0 : i32
    %88 = arith.cmpi ne, %87, %c0_i32_63 : i32
    scf.if %88 {
      %cst_78 = arith.constant 0.000000e+00 : f32
      %102 = vector.broadcast %cst_78 : f32 to vector<1x1x128xf32>
      %c0_79 = arith.constant 0 : index
      %c0_80 = arith.constant 0 : index
      %c0_81 = arith.constant 0 : index
      %103 = vector.load %arg5[%c0_79, %c0_80, %c0_81] : memref<1x1x128xf32, #tpu.memory_space<vmem>>, vector<1x1x128xf32>
      tpu.vector_store %arg5[%c0_79, %c0_80, %c0_81], %102 {strides = array<i32>} : memref<1x1x128xf32, #tpu.memory_space<vmem>>, vector<1x1x128xf32>,
      %cst_82 = arith.constant 0.000000e+00 : f32
      %104 = vector.broadcast %cst_82 : f32 to vector<1x1x128xf32>
      %c0_83 = arith.constant 0 : index
      %c0_84 = arith.constant 0 : index
      %c0_85 = arith.constant 0 : index
      %105 = vector.load %arg6[%c0_83, %c0_84, %c0_85] : memref<1x1x128xf32, #tpu.memory_space<vmem>>, vector<1x1x128xf32>
      tpu.vector_store %arg6[%c0_83, %c0_84, %c0_85], %104 {strides = array<i32>} : memref<1x1x128xf32, #tpu.memory_space<vmem>>, vector<1x1x128xf32>,
    } else {
    }
    %c0_64 = arith.constant 0 : index
    %c0_65 = arith.constant 0 : index
    %c0_66 = arith.constant 0 : index
    %89 = vector.load %arg5[%c0_64, %c0_65, %c0_66] : memref<1x1x128xf32, #tpu.memory_space<vmem>>, vector<1x1x128xf32>
    %cst_67 = arith.constant dense<0.000000e+00> : vector<128xf32>
    %90 = vector.multi_reduction <add>, %82, %cst_67 [0] : vector<64x128xf32> to vector<128xf32>
    %91 = vector.shape_cast %90 : vector<128xf32> to vector<1x128xf32>
    %92 = vector.shape_cast %91 : vector<1x128xf32> to vector<1x1x128xf32>
    %93 = arith.addf %89, %92 : vector<1x1x128xf32>
    %c0_68 = arith.constant 0 : index
    %c0_69 = arith.constant 0 : index
    %c0_70 = arith.constant 0 : index
    %94 = vector.load %arg5[%c0_68, %c0_69, %c0_70] : memref<1x1x128xf32, #tpu.memory_space<vmem>>, vector<1x1x128xf32>
    tpu.vector_store %arg5[%c0_68, %c0_69, %c0_70], %93 {strides = array<i32>} : memref<1x1x128xf32, #tpu.memory_space<vmem>>, vector<1x1x128xf32>,
    %c0_71 = arith.constant 0 : index
    %c0_72 = arith.constant 0 : index
    %c0_73 = arith.constant 0 : index
    %95 = vector.load %arg6[%c0_71, %c0_72, %c0_73] : memref<1x1x128xf32, #tpu.memory_space<vmem>>, vector<1x1x128xf32>
    %96 = arith.mulf %82, %82 : vector<64x128xf32>
    %cst_74 = arith.constant dense<0.000000e+00> : vector<128xf32>
    %97 = vector.multi_reduction <add>, %96, %cst_74 [0] : vector<64x128xf32> to vector<128xf32>
    %98 = vector.shape_cast %97 : vector<128xf32> to vector<1x128xf32>
    %99 = vector.shape_cast %98 : vector<1x128xf32> to vector<1x1x128xf32>
    %100 = arith.addf %95, %99 : vector<1x1x128xf32>
    %c0_75 = arith.constant 0 : index
    %c0_76 = arith.constant 0 : index
    %c0_77 = arith.constant 0 : index
    %101 = vector.load %arg6[%c0_75, %c0_76, %c0_77] : memref<1x1x128xf32, #tpu.memory_space<vmem>>, vector<1x1x128xf32>
    tpu.vector_store %arg6[%c0_75, %c0_76, %c0_77], %100 {strides = array<i32>} : memref<1x1x128xf32, #tpu.memory_space<vmem>>, vector<1x1x128xf32>,
    return
  }
  func.func @transform_0(%arg0: i32, %arg1: i32) -> (i32, i32, i32, i32) {
    %c0_i32 = arith.constant 0 : i32
    %c0_i32_0 = arith.constant 0 : i32
    %c0_i32_1 = arith.constant 0 : i32
    %c0_i32_2 = arith.constant 0 : i32
    return %arg0, %c0_i32, %c0_i32_0, %c0_i32_1 : i32, i32, i32, i32
  }
  func.func @transform_1(%arg0: i32, %arg1: i32) -> (i32, i32, i32) {
    %c0_i32 = arith.constant 0 : i32
    %c0_i32_0 = arith.constant 0 : i32
    %c0_i32_1 = arith.constant 0 : i32
    %c0_i32_2 = arith.constant 0 : i32
    return %c0_i32, %c0_i32_0, %c0_i32_1 : i32, i32, i32
  }
  func.func @transform_2(%arg0: i32, %arg1: i32) -> (i32, i32, i32, i32) {
    %c0_i32 = arith.constant 0 : i32
    %c0_i32_0 = arith.constant 0 : i32
    %c0_i32_1 = arith.constant 0 : i32
    return %arg0, %arg1, %c0_i32, %c0_i32_0 : i32, i32, i32, i32
  }
  func.func @transform_3(%arg0: i32, %arg1: i32) -> (i32, i32, i32) {
    %c0_i32 = arith.constant 0 : i32
    %c0_i32_0 = arith.constant 0 : i32
    %c0_i32_1 = arith.constant 0 : i32
    return %arg0, %c0_i32, %c0_i32_0 : i32, i32, i32
  }
  func.func @transform_4(%arg0: i32, %arg1: i32) -> (i32, i32, i32) {
    %c0_i32 = arith.constant 0 : i32
    %c0_i32_0 = arith.constant 0 : i32
    %c0_i32_1 = arith.constant 0 : i32
    return %arg0, %c0_i32, %c0_i32_0 : i32, i32, i32
  }
}

module attributes {stable_mosaic.version = 11 : i64} {
  func.func @_bn_relu_mm_stats_kernel(%arg0: i32, %arg1: i32, %arg2: memref<128x128xbf16, #tpu.memory_space<vmem>>, %arg3: memref<2x1x128xf32, #tpu.memory_space<vmem>>, %arg4: memref<2x1x128xf32, #tpu.memory_space<vmem>>, %arg5: memref<1x128xf32, #tpu.memory_space<vmem>>, %arg6: memref<1x128xf32, #tpu.memory_space<vmem>>, %arg7: memref<128x128xbf16, #tpu.memory_space<vmem>>, %arg8: memref<128x128xbf16, #tpu.memory_space<vmem>>, %arg9: memref<1x1x128xf32, #tpu.memory_space<vmem>>, %arg10: memref<1x1x128xf32, #tpu.memory_space<vmem>>) attributes {dimension_semantics = [#tpu.dimension_semantics<parallel>, #tpu.dimension_semantics<arbitrary>], iteration_bounds = array<i64: 1, 1>, scalar_prefetch = 0 : i64, scratch_operands = 0 : i64, tpu.core_type = #tpu.core_type<tc>, window_params = [{transform_indices = @transform_0, window_bounds = array<i64: 128, 128>}, {pipeline_mode = #tpu.pipeline_mode<synchronous>, transform_indices = @transform_1, window_bounds = array<i64: 2, 1, 128>}, {pipeline_mode = #tpu.pipeline_mode<synchronous>, transform_indices = @transform_2, window_bounds = array<i64: 2, 1, 128>}, {pipeline_mode = #tpu.pipeline_mode<synchronous>, transform_indices = @transform_3, window_bounds = array<i64: 1, 128>}, {pipeline_mode = #tpu.pipeline_mode<synchronous>, transform_indices = @transform_4, window_bounds = array<i64: 1, 128>}, {pipeline_mode = #tpu.pipeline_mode<synchronous>, transform_indices = @transform_5, window_bounds = array<i64: 128, 128>}, {transform_indices = @transform_6, window_bounds = array<i64: 128, 128>}, {transform_indices = @transform_7, window_bounds = array<i64: 1, 1, 128>}, {transform_indices = @transform_8, window_bounds = array<i64: 1, 1, 128>}]} {
    %c0 = arith.constant 0 : index
    %c0_0 = arith.constant 0 : index
    %c0_1 = arith.constant 0 : index
    %0 = vector.load %arg3[%c0, %c0_0, %c0_1] : memref<2x1x128xf32, #tpu.memory_space<vmem>>, vector<2x1x128xf32>
    %cst = arith.constant dense<0.000000e+00> : vector<1x128xf32>
    %1 = vector.multi_reduction <add>, %0, %cst [0] : vector<2x1x128xf32> to vector<1x128xf32>
    %c0_2 = arith.constant 0 : index
    %c0_3 = arith.constant 0 : index
    %c0_4 = arith.constant 0 : index
    %2 = vector.load %arg4[%c0_2, %c0_3, %c0_4] : memref<2x1x128xf32, #tpu.memory_space<vmem>>, vector<2x1x128xf32>
    %cst_5 = arith.constant dense<0.000000e+00> : vector<1x128xf32>
    %3 = vector.multi_reduction <add>, %2, %cst_5 [0] : vector<2x1x128xf32> to vector<1x128xf32>
    %c0_6 = arith.constant 0 : index
    %c0_7 = arith.constant 0 : index
    %4 = vector.load %arg5[%c0_6, %c0_7] : memref<1x128xf32, #tpu.memory_space<vmem>>, vector<1x128xf32>
    %c0_8 = arith.constant 0 : index
    %c0_9 = arith.constant 0 : index
    %5 = vector.load %arg6[%c0_8, %c0_9] : memref<1x128xf32, #tpu.memory_space<vmem>>, vector<1x128xf32>
    %cst_10 = arith.constant 1.280000e+02 : f32
    %6 = vector.broadcast %cst_10 : f32 to vector<1x128xf32>
    %7 = arith.divf %1, %6 : vector<1x128xf32>
    %cst_11 = arith.constant 1.280000e+02 : f32
    %8 = vector.broadcast %cst_11 : f32 to vector<1x128xf32>
    %9 = arith.divf %3, %8 : vector<1x128xf32>
    %10 = arith.mulf %7, %7 : vector<1x128xf32>
    %11 = arith.subf %9, %10 : vector<1x128xf32>
    %cst_12 = arith.constant 0.000000e+00 : f32
    %12 = vector.broadcast %cst_12 : f32 to vector<1x128xf32>
    %13 = arith.maximumf %11, %12 : vector<1x128xf32>
    %cst_13 = arith.constant 9.99999974E-6 : f32
    %14 = vector.broadcast %cst_13 : f32 to vector<1x128xf32>
    %15 = arith.addf %13, %14 : vector<1x128xf32>
    %16 = math.rsqrt %15 : vector<1x128xf32>
    %17 = arith.mulf %4, %16 : vector<1x128xf32>
    %18 = arith.mulf %7, %17 : vector<1x128xf32>
    %19 = arith.subf %5, %18 : vector<1x128xf32>
    %c0_14 = arith.constant 0 : index
    %c0_15 = arith.constant 0 : index
    %20 = vector.load %arg2[%c0_14, %c0_15] : memref<128x128xbf16, #tpu.memory_space<vmem>>, vector<128x128xbf16>
    %21 = arith.extf %20 : vector<128x128xbf16> to vector<128x128xf32>
    %22 = vector.broadcast %17 : vector<1x128xf32> to vector<128x128xf32>
    %23 = arith.mulf %21, %22 : vector<128x128xf32>
    %24 = vector.broadcast %19 : vector<1x128xf32> to vector<128x128xf32>
    %25 = arith.addf %23, %24 : vector<128x128xf32>
    %cst_16 = arith.constant 0.000000e+00 : f32
    %26 = vector.broadcast %cst_16 : f32 to vector<128x128xf32>
    %27 = arith.maximumf %25, %26 : vector<128x128xf32>
    %28 = arith.truncf %27 : vector<128x128xf32> to vector<128x128xbf16>
    %c0_17 = arith.constant 0 : index
    %c0_18 = arith.constant 0 : index
    %29 = vector.load %arg7[%c0_17, %c0_18] : memref<128x128xbf16, #tpu.memory_space<vmem>>, vector<128x128xbf16>
    %cst_19 = arith.constant dense<0.000000e+00> : vector<128x128xf32>
    %30 = tpu.matmul %28, %29, %cst_19 {dimension_numbers = #tpu.dot_dimension_numbers<[1], [0], [0], [1], [0, 0, 1, 1], [], []>} : vector<128x128xbf16>, vector<128x128xbf16>, vector<128x128xf32> -> vector<128x128xf32>
    %31 = arith.truncf %30 : vector<128x128xf32> to vector<128x128xbf16>
    %c0_20 = arith.constant 0 : index
    %c0_21 = arith.constant 0 : index
    %32 = vector.load %arg8[%c0_20, %c0_21] : memref<128x128xbf16, #tpu.memory_space<vmem>>, vector<128x128xbf16>
    tpu.vector_store %arg8[%c0_20, %c0_21], %31 {strides = array<i32>} : memref<128x128xbf16, #tpu.memory_space<vmem>>, vector<128x128xbf16>,
    %c0_i32 = arith.constant 0 : i32
    %33 = arith.cmpi eq, %arg1, %c0_i32 : i32
    %34 = arith.extui %33 : i1 to i32
    %c0_i32_22 = arith.constant 0 : i32
    %35 = arith.cmpi ne, %34, %c0_i32_22 : i32
    scf.if %35 {
      %cst_37 = arith.constant 0.000000e+00 : f32
      %49 = vector.broadcast %cst_37 : f32 to vector<1x1x128xf32>
      %c0_38 = arith.constant 0 : index
      %c0_39 = arith.constant 0 : index
      %c0_40 = arith.constant 0 : index
      %50 = vector.load %arg9[%c0_38, %c0_39, %c0_40] : memref<1x1x128xf32, #tpu.memory_space<vmem>>, vector<1x1x128xf32>
      tpu.vector_store %arg9[%c0_38, %c0_39, %c0_40], %49 {strides = array<i32>} : memref<1x1x128xf32, #tpu.memory_space<vmem>>, vector<1x1x128xf32>,
      %cst_41 = arith.constant 0.000000e+00 : f32
      %51 = vector.broadcast %cst_41 : f32 to vector<1x1x128xf32>
      %c0_42 = arith.constant 0 : index
      %c0_43 = arith.constant 0 : index
      %c0_44 = arith.constant 0 : index
      %52 = vector.load %arg10[%c0_42, %c0_43, %c0_44] : memref<1x1x128xf32, #tpu.memory_space<vmem>>, vector<1x1x128xf32>
      tpu.vector_store %arg10[%c0_42, %c0_43, %c0_44], %51 {strides = array<i32>} : memref<1x1x128xf32, #tpu.memory_space<vmem>>, vector<1x1x128xf32>,
    } else {
    }
    %c0_23 = arith.constant 0 : index
    %c0_24 = arith.constant 0 : index
    %c0_25 = arith.constant 0 : index
    %36 = vector.load %arg9[%c0_23, %c0_24, %c0_25] : memref<1x1x128xf32, #tpu.memory_space<vmem>>, vector<1x1x128xf32>
    %cst_26 = arith.constant dense<0.000000e+00> : vector<128xf32>
    %37 = vector.multi_reduction <add>, %30, %cst_26 [0] : vector<128x128xf32> to vector<128xf32>
    %38 = vector.shape_cast %37 : vector<128xf32> to vector<1x128xf32>
    %39 = vector.shape_cast %38 : vector<1x128xf32> to vector<1x1x128xf32>
    %40 = arith.addf %36, %39 : vector<1x1x128xf32>
    %c0_27 = arith.constant 0 : index
    %c0_28 = arith.constant 0 : index
    %c0_29 = arith.constant 0 : index
    %41 = vector.load %arg9[%c0_27, %c0_28, %c0_29] : memref<1x1x128xf32, #tpu.memory_space<vmem>>, vector<1x1x128xf32>
    tpu.vector_store %arg9[%c0_27, %c0_28, %c0_29], %40 {strides = array<i32>} : memref<1x1x128xf32, #tpu.memory_space<vmem>>, vector<1x1x128xf32>,
    %c0_30 = arith.constant 0 : index
    %c0_31 = arith.constant 0 : index
    %c0_32 = arith.constant 0 : index
    %42 = vector.load %arg10[%c0_30, %c0_31, %c0_32] : memref<1x1x128xf32, #tpu.memory_space<vmem>>, vector<1x1x128xf32>
    %43 = arith.mulf %30, %30 : vector<128x128xf32>
    %cst_33 = arith.constant dense<0.000000e+00> : vector<128xf32>
    %44 = vector.multi_reduction <add>, %43, %cst_33 [0] : vector<128x128xf32> to vector<128xf32>
    %45 = vector.shape_cast %44 : vector<128xf32> to vector<1x128xf32>
    %46 = vector.shape_cast %45 : vector<1x128xf32> to vector<1x1x128xf32>
    %47 = arith.addf %42, %46 : vector<1x1x128xf32>
    %c0_34 = arith.constant 0 : index
    %c0_35 = arith.constant 0 : index
    %c0_36 = arith.constant 0 : index
    %48 = vector.load %arg10[%c0_34, %c0_35, %c0_36] : memref<1x1x128xf32, #tpu.memory_space<vmem>>, vector<1x1x128xf32>
    tpu.vector_store %arg10[%c0_34, %c0_35, %c0_36], %47 {strides = array<i32>} : memref<1x1x128xf32, #tpu.memory_space<vmem>>, vector<1x1x128xf32>,
    return
  }
  func.func @transform_0(%arg0: i32, %arg1: i32) -> (i32, i32) {
    %c1_i32 = arith.constant 1 : i32
    %0 = arith.muli %arg0, %c1_i32 : i32
    %1 = arith.addi %0, %arg1 : i32
    %c0_i32 = arith.constant 0 : i32
    %c0_i32_0 = arith.constant 0 : i32
    return %1, %c0_i32 : i32, i32
  }
  func.func @transform_1(%arg0: i32, %arg1: i32) -> (i32, i32, i32) {
    %c0_i32 = arith.constant 0 : i32
    %c0_i32_0 = arith.constant 0 : i32
    %c0_i32_1 = arith.constant 0 : i32
    %c0_i32_2 = arith.constant 0 : i32
    return %c0_i32, %c0_i32_0, %c0_i32_1 : i32, i32, i32
  }
  func.func @transform_2(%arg0: i32, %arg1: i32) -> (i32, i32, i32) {
    %c0_i32 = arith.constant 0 : i32
    %c0_i32_0 = arith.constant 0 : i32
    %c0_i32_1 = arith.constant 0 : i32
    %c0_i32_2 = arith.constant 0 : i32
    return %c0_i32, %c0_i32_0, %c0_i32_1 : i32, i32, i32
  }
  func.func @transform_3(%arg0: i32, %arg1: i32) -> (i32, i32) {
    %c0_i32 = arith.constant 0 : i32
    %c0_i32_0 = arith.constant 0 : i32
    %c0_i32_1 = arith.constant 0 : i32
    return %c0_i32, %c0_i32_0 : i32, i32
  }
  func.func @transform_4(%arg0: i32, %arg1: i32) -> (i32, i32) {
    %c0_i32 = arith.constant 0 : i32
    %c0_i32_0 = arith.constant 0 : i32
    %c0_i32_1 = arith.constant 0 : i32
    return %c0_i32, %c0_i32_0 : i32, i32
  }
  func.func @transform_5(%arg0: i32, %arg1: i32) -> (i32, i32) {
    %c0_i32 = arith.constant 0 : i32
    %c0_i32_0 = arith.constant 0 : i32
    %c0_i32_1 = arith.constant 0 : i32
    return %c0_i32, %c0_i32_0 : i32, i32
  }
  func.func @transform_6(%arg0: i32, %arg1: i32) -> (i32, i32) {
    %c1_i32 = arith.constant 1 : i32
    %0 = arith.muli %arg0, %c1_i32 : i32
    %1 = arith.addi %0, %arg1 : i32
    %c0_i32 = arith.constant 0 : i32
    %c0_i32_0 = arith.constant 0 : i32
    return %1, %c0_i32 : i32, i32
  }
  func.func @transform_7(%arg0: i32, %arg1: i32) -> (i32, i32, i32) {
    %c0_i32 = arith.constant 0 : i32
    %c0_i32_0 = arith.constant 0 : i32
    %c0_i32_1 = arith.constant 0 : i32
    return %arg0, %c0_i32, %c0_i32_0 : i32, i32, i32
  }
  func.func @transform_8(%arg0: i32, %arg1: i32) -> (i32, i32, i32) {
    %c0_i32 = arith.constant 0 : i32
    %c0_i32_0 = arith.constant 0 : i32
    %c0_i32_1 = arith.constant 0 : i32
    return %arg0, %c0_i32, %c0_i32_0 : i32, i32, i32
  }
}

module attributes {stable_mosaic.version = 11 : i64} {
  func.func @_bn_shortcut_add_relu_kernel(%arg0: i32, %arg1: memref<128x128xbf16, #tpu.memory_space<vmem>>, %arg2: memref<1x1x128xf32, #tpu.memory_space<vmem>>, %arg3: memref<1x1x128xf32, #tpu.memory_space<vmem>>, %arg4: memref<1x128xf32, #tpu.memory_space<vmem>>, %arg5: memref<1x128xf32, #tpu.memory_space<vmem>>, %arg6: memref<128x128xbf16, #tpu.memory_space<vmem>>, %arg7: memref<128x128xbf16, #tpu.memory_space<vmem>>, %arg8: memref<128x128xf32, #tpu.memory_space<vmem>>) attributes {dimension_semantics = [#tpu.dimension_semantics<parallel>], iteration_bounds = array<i64: 1>, scalar_prefetch = 0 : i64, scratch_operands = 0 : i64, tpu.core_type = #tpu.core_type<tc>, window_params = [{transform_indices = @transform_0, window_bounds = array<i64: 128, 128>}, {pipeline_mode = #tpu.pipeline_mode<synchronous>, transform_indices = @transform_1, window_bounds = array<i64: 1, 1, 128>}, {pipeline_mode = #tpu.pipeline_mode<synchronous>, transform_indices = @transform_2, window_bounds = array<i64: 1, 1, 128>}, {pipeline_mode = #tpu.pipeline_mode<synchronous>, transform_indices = @transform_3, window_bounds = array<i64: 1, 128>}, {pipeline_mode = #tpu.pipeline_mode<synchronous>, transform_indices = @transform_4, window_bounds = array<i64: 1, 128>}, {transform_indices = @transform_5, window_bounds = array<i64: 128, 128>}, {pipeline_mode = #tpu.pipeline_mode<synchronous>, transform_indices = @transform_6, window_bounds = array<i64: 128, 128>}, {transform_indices = @transform_7, window_bounds = array<i64: 128, 128>}]} {
    %c0 = arith.constant 0 : index
    %c0_0 = arith.constant 0 : index
    %c0_1 = arith.constant 0 : index
    %0 = vector.load %arg2[%c0, %c0_0, %c0_1] : memref<1x1x128xf32, #tpu.memory_space<vmem>>, vector<1x1x128xf32>
    %cst = arith.constant dense<0.000000e+00> : vector<1x128xf32>
    %1 = vector.multi_reduction <add>, %0, %cst [0] : vector<1x1x128xf32> to vector<1x128xf32>
    %c0_2 = arith.constant 0 : index
    %c0_3 = arith.constant 0 : index
    %c0_4 = arith.constant 0 : index
    %2 = vector.load %arg3[%c0_2, %c0_3, %c0_4] : memref<1x1x128xf32, #tpu.memory_space<vmem>>, vector<1x1x128xf32>
    %cst_5 = arith.constant dense<0.000000e+00> : vector<1x128xf32>
    %3 = vector.multi_reduction <add>, %2, %cst_5 [0] : vector<1x1x128xf32> to vector<1x128xf32>
    %c0_6 = arith.constant 0 : index
    %c0_7 = arith.constant 0 : index
    %4 = vector.load %arg4[%c0_6, %c0_7] : memref<1x128xf32, #tpu.memory_space<vmem>>, vector<1x128xf32>
    %c0_8 = arith.constant 0 : index
    %c0_9 = arith.constant 0 : index
    %5 = vector.load %arg5[%c0_8, %c0_9] : memref<1x128xf32, #tpu.memory_space<vmem>>, vector<1x128xf32>
    %cst_10 = arith.constant 1.280000e+02 : f32
    %6 = vector.broadcast %cst_10 : f32 to vector<1x128xf32>
    %7 = arith.divf %1, %6 : vector<1x128xf32>
    %cst_11 = arith.constant 1.280000e+02 : f32
    %8 = vector.broadcast %cst_11 : f32 to vector<1x128xf32>
    %9 = arith.divf %3, %8 : vector<1x128xf32>
    %10 = arith.mulf %7, %7 : vector<1x128xf32>
    %11 = arith.subf %9, %10 : vector<1x128xf32>
    %cst_12 = arith.constant 0.000000e+00 : f32
    %12 = vector.broadcast %cst_12 : f32 to vector<1x128xf32>
    %13 = arith.maximumf %11, %12 : vector<1x128xf32>
    %cst_13 = arith.constant 9.99999974E-6 : f32
    %14 = vector.broadcast %cst_13 : f32 to vector<1x128xf32>
    %15 = arith.addf %13, %14 : vector<1x128xf32>
    %16 = math.rsqrt %15 : vector<1x128xf32>
    %17 = arith.mulf %4, %16 : vector<1x128xf32>
    %18 = arith.mulf %7, %17 : vector<1x128xf32>
    %19 = arith.subf %5, %18 : vector<1x128xf32>
    %c0_14 = arith.constant 0 : index
    %c0_15 = arith.constant 0 : index
    %20 = vector.load %arg6[%c0_14, %c0_15] : memref<128x128xbf16, #tpu.memory_space<vmem>>, vector<128x128xbf16>
    %c0_16 = arith.constant 0 : index
    %c0_17 = arith.constant 0 : index
    %21 = vector.load %arg7[%c0_16, %c0_17] : memref<128x128xbf16, #tpu.memory_space<vmem>>, vector<128x128xbf16>
    %cst_18 = arith.constant dense<0.000000e+00> : vector<128x128xf32>
    %22 = tpu.matmul %20, %21, %cst_18 {dimension_numbers = #tpu.dot_dimension_numbers<[1], [0], [0], [1], [0, 0, 1, 1], [], []>} : vector<128x128xbf16>, vector<128x128xbf16>, vector<128x128xf32> -> vector<128x128xf32>
    %c0_19 = arith.constant 0 : index
    %c0_20 = arith.constant 0 : index
    %23 = vector.load %arg1[%c0_19, %c0_20] : memref<128x128xbf16, #tpu.memory_space<vmem>>, vector<128x128xbf16>
    %24 = arith.extf %23 : vector<128x128xbf16> to vector<128x128xf32>
    %25 = vector.broadcast %17 : vector<1x128xf32> to vector<128x128xf32>
    %26 = arith.mulf %24, %25 : vector<128x128xf32>
    %27 = vector.broadcast %19 : vector<1x128xf32> to vector<128x128xf32>
    %28 = arith.addf %26, %27 : vector<128x128xf32>
    %29 = arith.addf %28, %22 : vector<128x128xf32>
    %cst_21 = arith.constant 0.000000e+00 : f32
    %30 = vector.broadcast %cst_21 : f32 to vector<128x128xf32>
    %31 = arith.maximumf %29, %30 : vector<128x128xf32>
    %c0_22 = arith.constant 0 : index
    %c0_23 = arith.constant 0 : index
    %32 = vector.load %arg8[%c0_22, %c0_23] : memref<128x128xf32, #tpu.memory_space<vmem>>, vector<128x128xf32>
    tpu.vector_store %arg8[%c0_22, %c0_23], %31 {strides = array<i32>} : memref<128x128xf32, #tpu.memory_space<vmem>>, vector<128x128xf32>,
    return
  }
  func.func @transform_0(%arg0: i32) -> (i32, i32) {
    %c0_i32 = arith.constant 0 : i32
    %c0_i32_0 = arith.constant 0 : i32
    return %arg0, %c0_i32 : i32, i32
  }
  func.func @transform_1(%arg0: i32) -> (i32, i32, i32) {
    %c0_i32 = arith.constant 0 : i32
    %c0_i32_0 = arith.constant 0 : i32
    %c0_i32_1 = arith.constant 0 : i32
    %c0_i32_2 = arith.constant 0 : i32
    return %c0_i32, %c0_i32_0, %c0_i32_1 : i32, i32, i32
  }
  func.func @transform_2(%arg0: i32) -> (i32, i32, i32) {
    %c0_i32 = arith.constant 0 : i32
    %c0_i32_0 = arith.constant 0 : i32
    %c0_i32_1 = arith.constant 0 : i32
    %c0_i32_2 = arith.constant 0 : i32
    return %c0_i32, %c0_i32_0, %c0_i32_1 : i32, i32, i32
  }
  func.func @transform_3(%arg0: i32) -> (i32, i32) {
    %c0_i32 = arith.constant 0 : i32
    %c0_i32_0 = arith.constant 0 : i32
    %c0_i32_1 = arith.constant 0 : i32
    return %c0_i32, %c0_i32_0 : i32, i32
  }
  func.func @transform_4(%arg0: i32) -> (i32, i32) {
    %c0_i32 = arith.constant 0 : i32
    %c0_i32_0 = arith.constant 0 : i32
    %c0_i32_1 = arith.constant 0 : i32
    return %c0_i32, %c0_i32_0 : i32, i32
  }
  func.func @transform_5(%arg0: i32) -> (i32, i32) {
    %c0_i32 = arith.constant 0 : i32
    %c0_i32_0 = arith.constant 0 : i32
    return %arg0, %c0_i32 : i32, i32
  }
  func.func @transform_6(%arg0: i32) -> (i32, i32) {
    %c0_i32 = arith.constant 0 : i32
    %c0_i32_0 = arith.constant 0 : i32
    %c0_i32_1 = arith.constant 0 : i32
    return %c0_i32, %c0_i32_0 : i32, i32
  }
  func.func @transform_7(%arg0: i32) -> (i32, i32) {
    %c0_i32 = arith.constant 0 : i32
    %c0_i32_0 = arith.constant 0 : i32
    return %arg0, %c0_i32 : i32, i32
  }
}

</mosaic_0001>

<bundles_post_ra>
// kernel: bottleneck_forward.5
= control target key start
LH: loop header
LB: loop body
LE: loop exit
PB: predicated region body
PF: predicated region fallthrough
CT: control target
= control target key end

     0   :  { %v1770_v42 = vmov 0.0   ;;  %s2222_s1 = inlined_call_operand.vmem [shape: bf16[128,128], index: 1, kind: input, shape index: {}]   ;;  %s2223_s0 = inlined_call_operand.vmem [shape: bf16[512,128], index: 0, kind: input, shape index: {}]   ;;  %s2224_s3 = inlined_call_operand.vmem [shape: f32[1,1,128], index: 3, kind: output, shape index: {1}]   ;;  %s2225_s4 = inlined_call_operand.vmem [shape: f32[1,1,128], index: 4, kind: output, shape index: {2}]   ;;  %s2226_s2 = inlined_call_operand.vmem [shape: bf16[512,128], index: 2, kind: output, shape index: {0}]  }
   0x1   :  { %v1730_v0 = vld [vmem:[%s2222_s1 + $0x38] sm:$0xff]   ;;  %v1731_v1 = vld [vmem:[%s2222_s1 + $0x30] sm:$0xff]   ;;  %v1732_v2 = vld [vmem:[%s2222_s1 + $0x28] sm:$0xff]   ;;  %984 = vst [vmem:[%s2224_s3] sm:$0x1] %v1770_v42 }
   0x2   :  { %1633 = vmatprep.subr.bf16.mxu0 %v1730_v0  ;;  %1713 = vmatprep.subr.bf16.mxu1 %v1730_v0  ;;  %v1733_v3 = vld [vmem:[%s2222_s1 + $0x20] sm:$0xff]   ;;  %v1734_v5 = vld [vmem:[%s2222_s1 + $0x18] sm:$0xff]   ;;  %v1735_v6 = vld [vmem:[%s2222_s1 + $0x10] sm:$0xff]   ;;  %985 = vst [vmem:[%s2225_s4] sm:$0x1] %v1770_v42 }
   0x3   :  { %1634 = vmatpush3.bf16.msra.mxu0 %v1730_v0  ;;  %1721 = vmatpush3.bf16.msra.mxu1 %v1730_v0  ;;  %v1738_v4 = vld [vmem:[%s2223_s0] sm:$0xff]   ;;  %v1736_v7 = vld [vmem:[%s2222_s1 + $0x8] sm:$0xff]   ;;  %v1740_v11 = vld [vmem:[%s2223_s0 + $0x10] sm:$0xff]  }
   0x4   :  { %1635 = vmatprep.subr.bf16.mxu0 %v1731_v1  ;;  %1714 = vmatprep.subr.bf16.mxu1 %v1731_v1  ;;  %v1737_v8 = vld [vmem:[%s2222_s1] sm:$0xff]   ;;  %v1739_v10 = vld [vmem:[%s2223_s0 + $0x8] sm:$0xff]   ;;  %v1756_v13 = vld [vmem:[%s2223_s0 + $0x90] sm:$0xff]  }
   0x5   :  { %1649 = vmatprep.mubr.bf16.mxu0 %v1738_v4  ;;  %v1754_v9 = vld [vmem:[%s2223_s0 + $0x80] sm:$0xff]   ;;  %v1755_v12 = vld [vmem:[%s2223_s0 + $0x88] sm:$0xff]   ;;  %v1741_v14 = vld [vmem:[%s2223_s0 + $0x18] sm:$0xff]  }
   0x6   :  { %1681 = vmatprep.mubr.bf16.mxu1 %v1754_v9  ;;  %v1742_v15 = vld [vmem:[%s2223_s0 + $0x20] sm:$0xff]   ;;  %v1757_v16 = vld [vmem:[%s2223_s0 + $0x98] sm:$0xff]   ;;  %v1743_v18 = vld [vmem:[%s2223_s0 + $0x28] sm:$0xff]  }
   0x7   :  { %1636 = vmatpush3.bf16.msra.mxu0 %v1731_v1  ;;  %1722 = vmatpush3.bf16.msra.mxu1 %v1731_v1  ;;  %v1758_v17 = vld [vmem:[%s2223_s0 + $0xa0] sm:$0xff]   ;;  %v1759_v19 = vld [vmem:[%s2223_s0 + $0xa8] sm:$0xff]   ;;  %v1744_v20 = vld [vmem:[%s2223_s0 + $0x30] sm:$0xff]  }
   0x8   :  { %1637 = vmatprep.subr.bf16.mxu0 %v1732_v2  ;;  %1715 = vmatprep.subr.bf16.mxu1 %v1732_v2  ;;  %v1760_v21 = vld [vmem:[%s2223_s0 + $0xb0] sm:$0xff]   ;;  %v1745_v22 = vld [vmem:[%s2223_s0 + $0x38] sm:$0xff]   ;;  %v1746_v24 = vld [vmem:[%s2223_s0 + $0x40] sm:$0xff]  }
   0x9   :  { %v1761_v23 = vld [vmem:[%s2223_s0 + $0xb8] sm:$0xff]   ;;  %v1762_v25 = vld [vmem:[%s2223_s0 + $0xc0] sm:$0xff]   ;;  %v1747_v26 = vld [vmem:[%s2223_s0 + $0x48] sm:$0xff]  }
   0xa   :  { %v1763_v27 = vld [vmem:[%s2223_s0 + $0xc8] sm:$0xff]   ;;  %v1748_v28 = vld [vmem:[%s2223_s0 + $0x50] sm:$0xff]   ;;  %v1749_v30 = vld [vmem:[%s2223_s0 + $0x58] sm:$0xff]  }
   0xb   :  { %1638 = vmatpush3.bf16.msra.mxu0 %v1732_v2  ;;  %1723 = vmatpush3.bf16.msra.mxu1 %v1732_v2  ;;  %v1764_v29 = vld [vmem:[%s2223_s0 + $0xd0] sm:$0xff]   ;;  %v1765_v31 = vld [vmem:[%s2223_s0 + $0xd8] sm:$0xff]   ;;  %v1750_v32 = vld [vmem:[%s2223_s0 + $0x60] sm:$0xff]  }
   0xc   :  { %1639 = vmatprep.subr.bf16.mxu0 %v1733_v3  ;;  %1716 = vmatprep.subr.bf16.mxu1 %v1733_v3  ;;  %v1766_v33 = vld [vmem:[%s2223_s0 + $0xe0] sm:$0xff]   ;;  %v1751_v34 = vld [vmem:[%s2223_s0 + $0x68] sm:$0xff]   ;;  %v1752_v36 = vld [vmem:[%s2223_s0 + $0x70] sm:$0xff]  }
   0xd   :  { %v1767_v35 = vld [vmem:[%s2223_s0 + $0xe8] sm:$0xff]   ;;  %v1768_v37 = vld [vmem:[%s2223_s0 + $0xf0] sm:$0xff]   ;;  %v1753_v38 = vld [vmem:[%s2223_s0 + $0x78] sm:$0xff]  }
   0xe   :  { %v1769_v39 = vld [vmem:[%s2223_s0 + $0xf8] sm:$0xff]  }
   0xf   :  { %1640 = vmatpush3.bf16.msra.mxu0 %v1733_v3  ;;  %1724 = vmatpush3.bf16.msra.mxu1 %v1733_v3 }
  0x10   :  { %1641 = vmatprep.subr.bf16.mxu0 %v1734_v5  ;;  %1717 = vmatprep.subr.bf16.mxu1 %v1734_v5 }
  0x13   :  { %1642 = vmatpush3.bf16.msra.mxu0 %v1734_v5  ;;  %1725 = vmatpush3.bf16.msra.mxu1 %v1734_v5 }
  0x14   :  { %1643 = vmatprep.subr.bf16.mxu0 %v1735_v6  ;;  %1718 = vmatprep.subr.bf16.mxu1 %v1735_v6 }
  0x17   :  { %1644 = vmatpush3.bf16.msra.mxu0 %v1735_v6  ;;  %1726 = vmatpush3.bf16.msra.mxu1 %v1735_v6 }
  0x18   :  { %1645 = vmatprep.subr.bf16.mxu0 %v1736_v7  ;;  %1719 = vmatprep.subr.bf16.mxu1 %v1736_v7 }
  0x1b   :  { %1646 = vmatpush3.bf16.msra.mxu0 %v1736_v7  ;;  %1727 = vmatpush3.bf16.msra.mxu1 %v1736_v7 }
  0x1c   :  { %1647 = vmatprep.subr.bf16.mxu0 %v1737_v8  ;;  %1720 = vmatprep.subr.bf16.mxu1 %v1737_v8 }
  0x1f   :  { %1648 = vmatpush3.bf16.msra.mxu0 %v1737_v8  ;;  %1728 = vmatpush3.bf16.msra.mxu1 %v1737_v8 }
  0x22   :  { %1650 = vmatmul.mubr.bf16.vlgmr.msra.gmra.mxu0 %v1739_v10  ;;  %1682 = vmatmul.mubr.bf16.vlgmr.msra.gmra.mxu1 %v1755_v12 }
  0x23   :  { %1653 = vmatprep.mubr.bf16.mxu0 %v1740_v11  ;;  %1685 = vmatprep.mubr.bf16.mxu1 %v1756_v13 }
  0x2a   :  { %1654 = vmatmul.mubr.bf16.gmra.mxu0 %v1741_v14  ;;  %1686 = vmatmul.mubr.bf16.gmra.mxu1 %v1757_v16 }
  0x2b   :  { %1657 = vmatprep.mubr.bf16.mxu0 %v1742_v15  ;;  %1689 = vmatprep.mubr.bf16.mxu1 %v1758_v17 }
  0x32   :  { %1658 = vmatmul.mubr.bf16.gmra.mxu0 %v1743_v18  ;;  %1690 = vmatmul.mubr.bf16.gmra.mxu1 %v1759_v19 }
  0x33   :  { %1661 = vmatprep.mubr.bf16.mxu0 %v1744_v20  ;;  %1693 = vmatprep.mubr.bf16.mxu1 %v1760_v21 }
  0x3a   :  { %1662 = vmatmul.mubr.bf16.gmra.mxu0 %v1745_v22  ;;  %1694 = vmatmul.mubr.bf16.gmra.mxu1 %v1761_v23 }
  0x3b   :  { %1665 = vmatprep.mubr.bf16.mxu0 %v1746_v24  ;;  %1697 = vmatprep.mubr.bf16.mxu1 %v1762_v25 }
  0x42   :  { %1666 = vmatmul.mubr.bf16.gmra.mxu0 %v1747_v26  ;;  %1698 = vmatmul.mubr.bf16.gmra.mxu1 %v1763_v27 }
  0x43   :  { %1669 = vmatprep.mubr.bf16.mxu0 %v1748_v28  ;;  %1701 = vmatprep.mubr.bf16.mxu1 %v1764_v29 }
  0x4a   :  { %1670 = vmatmul.mubr.bf16.gmra.mxu0 %v1749_v30  ;;  %1702 = vmatmul.mubr.bf16.gmra.mxu1 %v1765_v31 }
  0x4b   :  { %1673 = vmatprep.mubr.bf16.mxu0 %v1750_v32  ;;  %1705 = vmatprep.mubr.bf16.mxu1 %v1766_v33 }
  0x52   :  { %1674 = vmatmul.mubr.bf16.gmra.mxu0 %v1751_v34  ;;  %1706 = vmatmul.mubr.bf16.gmra.mxu1 %v1767_v35 }
  0x53   :  { %1677 = vmatprep.mubr.bf16.mxu0 %v1752_v36  ;;  %1709 = vmatprep.mubr.bf16.mxu1 %v1768_v37 }
  0x5a   :  { %1678 = vmatmul.mubr.bf16.gmra.mxu0 %v1753_v38  ;;  %1710 = vmatmul.mubr.bf16.gmra.mxu1 %v1769_v39 }
  0xe2   :  { %v1651_v40 = vpop.f32.mrf.mxu0  ;;  %v1916_v41 = vpop.f32.mrf.mxu1 }
  0xe3   :  { %v1061_v58 = vmul.f32 %v1651_v40, %v1651_v40 }
  0xe4   :  { %v405_v43 = vpop.f32.mrf.mxu0  ;;  %v1924_v44 = vpop.f32.mrf.mxu1 }
  0xe5   :  { %v1059_v49 = vmul.f32 %v405_v43, %v405_v43 }
  0xe6   :  { %v1652_v45 = vpop.f32.mrf.mxu0  ;;  %v1926_v46 = vpop.f32.mrf.mxu1 }
  0xe7   :  { %v1410_v47 = vpack.c.bf16 %v1652_v45, %v1651_v40  ;;  %v1490_v48 = vpack.c.bf16 %v1926_v46, %v1916_v41  ;;  %v1062_v63 = vmul.f32 %v1652_v45, %v1652_v45 }
  0xe8   :  { %v408_v50 = vpop.f32.mrf.mxu0  ;;  %v1930_v51 = vpop.f32.mrf.mxu1 }
  0xe9   :  { %1562 = vst [vmem:[%s2226_s2 + $0x8] sm:$0xff] %v1410_v47   ;;  %v1405_v52 = vpack.c.bf16 %v408_v50, %v405_v43  ;;  %v987_v53 = vadd.f32 %v408_v50, %v405_v43  ;;  %v1060_v54 = vmul.f32 %v408_v50, %v408_v50  ;;  %1578 = vst [vmem:[%s2226_s2 + $0x88] sm:$0xff] %v1490_v48  }
  0xea   :  { %v1485_v55 = vpack.c.bf16 %v1930_v51, %v1924_v44  ;;  %v1655_v56 = vpop.f32.mrf.mxu0  ;;  %v1940_v57 = vpop.f32.mrf.mxu1 }
  0xeb   :  { %1406 = vst [vmem:[%s2226_s2] sm:$0xff] %v1405_v52   ;;  %v988_v59 = vadd.f32 %v1651_v40, %v987_v53  ;;  %v1123_v60 = vadd.f32 %v1060_v54, %v1059_v49  ;;  %v1065_v18 = vmul.f32 %v1655_v56, %v1655_v56 }
  0xec   :  { %1577 = vst [vmem:[%s2226_s2 + $0x80] sm:$0xff] %v1485_v55   ;;  %v421_v61 = vpop.f32.mrf.mxu0  ;;  %v1948_v62 = vpop.f32.mrf.mxu1 }
  0xed   :  { %v1124_v0 = vadd.f32 %v1123_v60, %v1061_v58  ;;  %v989_v1 = vadd.f32 %v1652_v45, %v988_v59  ;;  %v1063_v5 = vmul.f32 %v421_v61, %v421_v61 }
  0xee   :  { %v1656_v2 = vpop.f32.mrf.mxu0  ;;  %v1950_v3 = vpop.f32.mrf.mxu1 }
  0xef   :  { %v990_v4 = vadd.f32 %v989_v1, %v421_v61  ;;  %v1125_v6 = vadd.f32 %v1124_v0, %v1062_v63  ;;  %v1420_v7 = vpack.c.bf16 %v1656_v2, %v1655_v56  ;;  %v1500_v9 = vpack.c.bf16 %v1950_v3, %v1940_v57 }
  0xf0   :  { %v424_v8 = vpop.f32.mrf.mxu0  ;;  %v1954_v10 = vpop.f32.mrf.mxu1  ;;  %v1066_v23 = vmul.f32 %v1656_v2, %v1656_v2 }
  0xf1   :  { %v1126_v11 = vadd.f32 %v1125_v6, %v1063_v5  ;;  %1564 = vst [vmem:[%s2226_s2 + $0x18] sm:$0xff] %v1420_v7   ;;  %v1415_v12 = vpack.c.bf16 %v424_v8, %v421_v61  ;;  %v991_v13 = vadd.f32 %v990_v4, %v424_v8  ;;  %v1064_v14 = vmul.f32 %v424_v8, %v424_v8 }
  0xf2   :  { %v1659_v15 = vpop.f32.mrf.mxu0  ;;  %1580 = vst [vmem:[%s2226_s2 + $0x98] sm:$0xff] %v1500_v9   ;;  %v1495_v16 = vpack.c.bf16 %v1954_v10, %v1948_v62  ;;  %v1964_v17 = vpop.f32.mrf.mxu1 }
  0xf3   :  { %1563 = vst [vmem:[%s2226_s2 + $0x10] sm:$0xff] %v1415_v12   ;;  %v992_v19 = vadd.f32 %v1655_v56, %v991_v13  ;;  %v1127_v20 = vadd.f32 %v1126_v11, %v1064_v14  ;;  %v1069_v43 = vmul.f32 %v1659_v15, %v1659_v15 }
  0xf4   :  { %v437_v21 = vpop.f32.mrf.mxu0  ;;  %1579 = vst [vmem:[%s2226_s2 + $0x90] sm:$0xff] %v1495_v16   ;;  %v1972_v22 = vpop.f32.mrf.mxu1 }
  0xf5   :  { %v1128_v24 = vadd.f32 %v1127_v20, %v1065_v18  ;;  %v993_v25 = vadd.f32 %v1656_v2, %v992_v19  ;;  %v1067_v29 = vmul.f32 %v437_v21, %v437_v21 }
  0xf6   :  { %v1660_v26 = vpop.f32.mrf.mxu0  ;;  %v1974_v27 = vpop.f32.mrf.mxu1 }
  0xf7   :  { %v994_v28 = vadd.f32 %v993_v25, %v437_v21  ;;  %v1129_v30 = vadd.f32 %v1128_v24, %v1066_v23  ;;  %v1430_v31 = vpack.c.bf16 %v1660_v26, %v1659_v15  ;;  %v1510_v33 = vpack.c.bf16 %v1974_v27, %v1964_v17 }
  0xf8   :  { %v440_v32 = vpop.f32.mrf.mxu0  ;;  %v1978_v34 = vpop.f32.mrf.mxu1  ;;  %v1070_v50 = vmul.f32 %v1660_v26, %v1660_v26 }
  0xf9   :  { %v1130_v35 = vadd.f32 %v1129_v30, %v1067_v29  ;;  %1566 = vst [vmem:[%s2226_s2 + $0x28] sm:$0xff] %v1430_v31   ;;  %v1425_v36 = vpack.c.bf16 %v440_v32, %v437_v21  ;;  %v995_v37 = vadd.f32 %v994_v28, %v440_v32  ;;  %v1068_v38 = vmul.f32 %v440_v32, %v440_v32 }
  0xfa   :  { %v1663_v39 = vpop.f32.mrf.mxu0  ;;  %1582 = vst [vmem:[%s2226_s2 + $0xa8] sm:$0xff] %v1510_v33   ;;  %v1505_v40 = vpack.c.bf16 %v1978_v34, %v1972_v22  ;;  %v1988_v42 = vpop.f32.mrf.mxu1 }
  0xfb   :  { %1565 = vst [vmem:[%s2226_s2 + $0x20] sm:$0xff] %v1425_v36   ;;  %v996_v45 = vadd.f32 %v1659_v15, %v995_v37  ;;  %v1131_v47 = vadd.f32 %v1130_v35, %v1068_v38  ;;  %v1073_v9 = vmul.f32 %v1663_v39, %v1663_v39 }
  0xfc   :  { %v453_v48 = vpop.f32.mrf.mxu0  ;;  %1581 = vst [vmem:[%s2226_s2 + $0xa0] sm:$0xff] %v1505_v40   ;;  %v1996_v49 = vpop.f32.mrf.mxu1 }
  0xfd   :  { %v1132_v52 = vadd.f32 %v1131_v47, %v1069_v43  ;;  %v997_v53 = vadd.f32 %v1660_v26, %v996_v45  ;;  %v1071_v58 = vmul.f32 %v453_v48, %v453_v48 }
  0xfe   :  { %v1664_v54 = vpop.f32.mrf.mxu0  ;;  %v1998_v55 = vpop.f32.mrf.mxu1 }
  0xff   :  { %v998_v56 = vadd.f32 %v997_v53, %v453_v48  ;;  %v1133_v59 = vadd.f32 %v1132_v52, %v1070_v50  ;;  %v1440_v60 = vpack.c.bf16 %v1664_v54, %v1663_v39  ;;  %v1520_v63 = vpack.c.bf16 %v1998_v55, %v1988_v42 }
 0x100   :  { %v456_v61 = vpop.f32.mrf.mxu0  ;;  %v2002_v0 = vpop.f32.mrf.mxu1  ;;  %v1074_v15 = vmul.f32 %v1664_v54, %v1664_v54 }
 0x101   :  { %v1134_v1 = vadd.f32 %v1133_v59, %v1071_v58  ;;  %1568 = vst [vmem:[%s2226_s2 + $0x38] sm:$0xff] %v1440_v60   ;;  %v1435_v2 = vpack.c.bf16 %v456_v61, %v453_v48  ;;  %v999_v4 = vadd.f32 %v998_v56, %v456_v61  ;;  %v1072_v5 = vmul.f32 %v456_v61, %v456_v61 }
 0x102   :  { %v1667_v6 = vpop.f32.mrf.mxu0  ;;  %1584 = vst [vmem:[%s2226_s2 + $0xb8] sm:$0xff] %v1520_v63   ;;  %v1515_v7 = vpack.c.bf16 %v2002_v0, %v1996_v49  ;;  %v2012_v8 = vpop.f32.mrf.mxu1 }
 0x103   :  { %1567 = vst [vmem:[%s2226_s2 + $0x30] sm:$0xff] %v1435_v2   ;;  %v1000_v11 = vadd.f32 %v1663_v39, %v999_v4  ;;  %v1135_v12 = vadd.f32 %v1134_v1, %v1072_v5  ;;  %v1077_v38 = vmul.f32 %v1667_v6, %v1667_v6 }
 0x104   :  { %v469_v13 = vpop.f32.mrf.mxu0  ;;  %1583 = vst [vmem:[%s2226_s2 + $0xb0] sm:$0xff] %v1515_v7   ;;  %v2020_v14 = vpop.f32.mrf.mxu1 }
 0x105   :  { %v1136_v16 = vadd.f32 %v1135_v12, %v1073_v9  ;;  %v1001_v18 = vadd.f32 %v1664_v54, %v1000_v11  ;;  %v1075_v23 = vmul.f32 %v469_v13, %v469_v13 }
 0x106   :  { %v1668_v19 = vpop.f32.mrf.mxu0  ;;  %v2022_v20 = vpop.f32.mrf.mxu1 }
 0x107   :  { %v1002_v21 = vadd.f32 %v1001_v18, %v469_v13  ;;  %v1137_v24 = vadd.f32 %v1136_v16, %v1074_v15  ;;  %v1450_v25 = vpack.c.bf16 %v1668_v19, %v1667_v6  ;;  %v1530_v28 = vpack.c.bf16 %v2022_v20, %v2012_v8 }
 0x108   :  { %v472_v26 = vpop.f32.mrf.mxu0  ;;  %v2026_v29 = vpop.f32.mrf.mxu1  ;;  %v1078_v47 = vmul.f32 %v1668_v19, %v1668_v19 }
 0x109   :  { %v1138_v30 = vadd.f32 %v1137_v24, %v1075_v23  ;;  %1570 = vst [vmem:[%s2226_s2 + $0x48] sm:$0xff] %v1450_v25   ;;  %v1445_v31 = vpack.c.bf16 %v472_v26, %v469_v13  ;;  %v1003_v32 = vadd.f32 %v1002_v21, %v472_v26  ;;  %v1076_v33 = vmul.f32 %v472_v26, %v472_v26 }
 0x10a   :  { %v1671_v35 = vpop.f32.mrf.mxu0  ;;  %1586 = vst [vmem:[%s2226_s2 + $0xc8] sm:$0xff] %v1530_v28   ;;  %v1525_v36 = vpack.c.bf16 %v2026_v29, %v2020_v14  ;;  %v2036_v37 = vpop.f32.mrf.mxu1 }
 0x10b   :  { %1569 = vst [vmem:[%s2226_s2 + $0x40] sm:$0xff] %v1445_v31   ;;  %v1004_v39 = vadd.f32 %v1667_v6, %v1003_v32  ;;  %v1139_v40 = vadd.f32 %v1138_v30, %v1076_v33  ;;  %v1081_v11 = vmul.f32 %v1671_v35, %v1671_v35 }
 0x10c   :  { %v485_v43 = vpop.f32.mrf.mxu0  ;;  %1585 = vst [vmem:[%s2226_s2 + $0xc0] sm:$0xff] %v1525_v36   ;;  %v2044_v45 = vpop.f32.mrf.mxu1 }
 0x10d   :  { %v1140_v48 = vadd.f32 %v1139_v40, %v1077_v38  ;;  %v1005_v50 = vadd.f32 %v1668_v19, %v1004_v39  ;;  %v1079_v56 = vmul.f32 %v485_v43, %v485_v43 }
 0x10e   :  { %v1672_v52 = vpop.f32.mrf.mxu0  ;;  %v2046_v53 = vpop.f32.mrf.mxu1 }
 0x10f   :  { %v1006_v54 = vadd.f32 %v1005_v50, %v485_v43  ;;  %v1141_v58 = vadd.f32 %v1140_v48, %v1078_v47  ;;  %v1460_v59 = vpack.c.bf16 %v1672_v52, %v1671_v35  ;;  %v1540_v61 = vpack.c.bf16 %v2046_v53, %v2036_v37 }
 0x110   :  { %v488_v60 = vpop.f32.mrf.mxu0  ;;  %v2050_v63 = vpop.f32.mrf.mxu1  ;;  %v1082_v18 = vmul.f32 %v1672_v52, %v1672_v52 }
 0x111   :  { %v1142_v1 = vadd.f32 %v1141_v58, %v1079_v56  ;;  %1572 = vst [vmem:[%s2226_s2 + $0x58] sm:$0xff] %v1460_v59   ;;  %v1455_v2 = vpack.c.bf16 %v488_v60, %v485_v43  ;;  %v1007_v4 = vadd.f32 %v1006_v54, %v488_v60  ;;  %v1080_v5 = vmul.f32 %v488_v60, %v488_v60 }
 0x112   :  { %v1675_v6 = vpop.f32.mrf.mxu0  ;;  %1588 = vst [vmem:[%s2226_s2 + $0xd8] sm:$0xff] %v1540_v61   ;;  %v1535_v7 = vpack.c.bf16 %v2050_v63, %v2044_v45  ;;  %v2060_v9 = vpop.f32.mrf.mxu1 }
 0x113   :  { %1571 = vst [vmem:[%s2226_s2 + $0x50] sm:$0xff] %v1455_v2   ;;  %v1008_v12 = vadd.f32 %v1671_v35, %v1007_v4  ;;  %v1143_v13 = vadd.f32 %v1142_v1, %v1080_v5  ;;  %v1085_v48 = vmul.f32 %v1675_v6, %v1675_v6 }
 0x114   :  { %v501_v15 = vpop.f32.mrf.mxu0  ;;  %1587 = vst [vmem:[%s2226_s2 + $0xd0] sm:$0xff] %v1535_v7   ;;  %v2068_v16 = vpop.f32.mrf.mxu1 }
 0x115   :  { %v1144_v19 = vadd.f32 %v1143_v13, %v1081_v11  ;;  %v1009_v21 = vadd.f32 %v1672_v52, %v1008_v12  ;;  %v1083_v26 = vmul.f32 %v501_v15, %v501_v15 }
 0x116   :  { %v1676_v23 = vpop.f32.mrf.mxu0  ;;  %v2070_v24 = vpop.f32.mrf.mxu1 }
 0x117   :  { %v1010_v25 = vadd.f32 %v1009_v21, %v501_v15  ;;  %v1145_v28 = vadd.f32 %v1144_v19, %v1082_v18  ;;  %v1470_v30 = vpack.c.bf16 %v1676_v23, %v1675_v6  ;;  %v1550_v32 = vpack.c.bf16 %v2070_v24, %v2060_v9 }
 0x118   :  { %v504_v31 = vpop.f32.mrf.mxu0  ;;  %v2074_v33 = vpop.f32.mrf.mxu1  ;;  %v1086_v58 = vmul.f32 %v1676_v23, %v1676_v23 }
 0x119   :  { %v1146_v35 = vadd.f32 %v1145_v28, %v1083_v26  ;;  %1574 = vst [vmem:[%s2226_s2 + $0x68] sm:$0xff] %v1470_v30   ;;  %v1465_v36 = vpack.c.bf16 %v504_v31, %v501_v15  ;;  %v1011_v38 = vadd.f32 %v1010_v25, %v504_v31  ;;  %v1084_v39 = vmul.f32 %v504_v31, %v504_v31 }
 0x11a   :  { %v1679_v40 = vpop.f32.mrf.mxu0  ;;  %1590 = vst [vmem:[%s2226_s2 + $0xe8] sm:$0xff] %v1550_v32   ;;  %v1545_v43 = vpack.c.bf16 %v2074_v33, %v2068_v16  ;;  %v2084_v47 = vpop.f32.mrf.mxu1  ;;  %v1091_v32 = vmul.f32 %v1924_v44, %v1924_v44 }
 0x11b   :  { %1573 = vst [vmem:[%s2226_s2 + $0x60] sm:$0xff] %v1465_v36   ;;  %v1012_v50 = vadd.f32 %v1675_v6, %v1011_v38  ;;  %v1147_v52 = vadd.f32 %v1146_v35, %v1084_v39  ;;  %v1092_v39 = vmul.f32 %v1930_v51, %v1930_v51 }
 0x11c   :  { %v517_v54 = vpop.f32.mrf.mxu0  ;;  %1589 = vst [vmem:[%s2226_s2 + $0xe0] sm:$0xff] %v1545_v43   ;;  %v2092_v56 = vpop.f32.mrf.mxu1  ;;  %v1093_v43 = vmul.f32 %v1916_v41, %v1916_v41 }
 0x11d   :  { %v1148_v59 = vadd.f32 %v1147_v52, %v1085_v48  ;;  %v1013_v60 = vadd.f32 %v1676_v23, %v1012_v50  ;;  %v1087_v4 = vmul.f32 %v517_v54, %v517_v54  ;;  %v1089_v23 = vmul.f32 %v1679_v40, %v1679_v40 }
 0x11e   :  { %v1680_v61 = vpop.f32.mrf.mxu0  ;;  %v2094_v1 = vpop.f32.mrf.mxu1  ;;  %v1094_v52 = vmul.f32 %v1926_v46, %v1926_v46 }
 0x11f   :  { %v1014_v2 = vadd.f32 %v1013_v60, %v517_v54  ;;  %v1149_v5 = vadd.f32 %v1148_v59, %v1086_v58  ;;  %v1480_v7 = vpack.c.bf16 %v1680_v61, %v1679_v40  ;;  %v1560_v6 = vpack.c.bf16 %v2094_v1, %v2084_v47 }
 0x120   :  { %v520_v11 = vpop.f32.mrf.mxu0  ;;  %v2098_v12 = vpop.f32.mrf.mxu1  ;;  %v1090_v28 = vmul.f32 %v1680_v61, %v1680_v61  ;;  %v1095_v59 = vmul.f32 %v1948_v62, %v1948_v62 }
 0x121   :  { %v1150_v13 = vadd.f32 %v1149_v5, %v1087_v4  ;;  %1576 = vst [vmem:[%s2226_s2 + $0x78] sm:$0xff] %v1480_v7   ;;  %v1475_v15 = vpack.c.bf16 %v520_v11, %v517_v54  ;;  %v1015_v18 = vadd.f32 %v1014_v2, %v520_v11  ;;  %v1088_v19 = vmul.f32 %v520_v11, %v520_v11 }
 0x122   :  { %1592 = vst [vmem:[%s2226_s2 + $0xf8] sm:$0xff] %v1560_v6   ;;  %v1555_v21 = vpack.c.bf16 %v2098_v12, %v2092_v56  ;;  %v1096_v2 = vmul.f32 %v1954_v10, %v1954_v10  ;;  %v1099_v6 = vmul.f32 %v1972_v22, %v1972_v22 }
 0x123   :  { %1575 = vst [vmem:[%s2226_s2 + $0x70] sm:$0xff] %v1475_v15   ;;  %v1016_v25 = vadd.f32 %v1679_v40, %v1015_v18  ;;  %v1151_v26 = vadd.f32 %v1150_v13, %v1088_v19  ;;  %v1100_v18 = vmul.f32 %v1978_v34, %v1978_v34 }
 0x124   :  { %1591 = vst [vmem:[%s2226_s2 + $0xf0] sm:$0xff] %v1555_v21  }
 0x125   :  { %v1017_v30 = vadd.f32 %v1680_v61, %v1016_v25  ;;  %v1152_v31 = vadd.f32 %v1151_v26, %v1089_v23  ;;  %v1103_v26 = vmul.f32 %v1996_v49, %v1996_v49 }
 0x127   :  { %v1153_v35 = vadd.f32 %v1152_v31, %v1090_v28  ;;  %v1018_v36 = vadd.f32 %v1017_v30, %v1924_v44  ;;  %v1104_v31 = vmul.f32 %v2002_v0, %v2002_v0 }
 0x129   :  { %v1019_v38 = vadd.f32 %v1018_v36, %v1930_v51  ;;  %v1154_v40 = vadd.f32 %v1153_v35, %v1091_v32 }
 0x12b   :  { %v1020_v48 = vadd.f32 %v1916_v41, %v1019_v38  ;;  %v1155_v50 = vadd.f32 %v1154_v40, %v1092_v39  ;;  %v1097_v41 = vmul.f32 %v1940_v57, %v1940_v57  ;;  %v1107_v39 = vmul.f32 %v2020_v14, %v2020_v14 }
 0x12d   :  { %v1156_v54 = vadd.f32 %v1155_v50, %v1093_v43  ;;  %v1021_v58 = vadd.f32 %v1926_v46, %v1020_v48  ;;  %v1098_v46 = vmul.f32 %v1950_v3, %v1950_v3  ;;  %v1108_v48 = vmul.f32 %v2026_v29, %v2026_v29 }
 0x12f   :  { %v1022_v44 = vadd.f32 %v1021_v58, %v1948_v62  ;;  %v1157_v60 = vadd.f32 %v1156_v54, %v1094_v52 }
 0x131   :  { %v1158_v51 = vadd.f32 %v1157_v60, %v1095_v59  ;;  %v1023_v61 = vadd.f32 %v1022_v44, %v1954_v10  ;;  %v1111_v44 = vmul.f32 %v2044_v45, %v2044_v45 }
 0x133   :  { %v1024_v4 = vadd.f32 %v1940_v57, %v1023_v61  ;;  %v1159_v5 = vadd.f32 %v1158_v51, %v1096_v2  ;;  %v1101_v57 = vmul.f32 %v1964_v17, %v1964_v17  ;;  %v1112_v51 = vmul.f32 %v2050_v63, %v2050_v63 }
 0x135   :  { %v1160_v7 = vadd.f32 %v1159_v5, %v1097_v41  ;;  %v1025_v11 = vadd.f32 %v1950_v3, %v1024_v4  ;;  %v1102_v3 = vmul.f32 %v1974_v27, %v1974_v27  ;;  %v1115_v5 = vmul.f32 %v2068_v16, %v2068_v16 }
 0x137   :  { %v1026_v62 = vadd.f32 %v1025_v11, %v1972_v22  ;;  %v1161_v13 = vadd.f32 %v1160_v7, %v1098_v46  ;;  %v1116_v11 = vmul.f32 %v2074_v33, %v2074_v33 }
 0x139   :  { %v1162_v15 = vadd.f32 %v1161_v13, %v1099_v6  ;;  %v1027_v10 = vadd.f32 %v1026_v62, %v1978_v34 }
 0x13b   :  { %v1028_v19 = vadd.f32 %v1964_v17, %v1027_v10  ;;  %v1163_v21 = vadd.f32 %v1162_v15, %v1100_v18  ;;  %v1105_v17 = vmul.f32 %v1988_v42, %v1988_v42  ;;  %v1119_v10 = vmul.f32 %v2092_v56, %v2092_v56 }
 0x13d   :  { %v1164_v23 = vadd.f32 %v1163_v21, %v1101_v57  ;;  %v1029_v25 = vadd.f32 %v1974_v27, %v1028_v19  ;;  %v1106_v27 = vmul.f32 %v1998_v55, %v1998_v55  ;;  %v1120_v19 = vmul.f32 %v2098_v12, %v2098_v12 }
 0x13f   :  { %v1030_v22 = vadd.f32 %v1029_v25, %v1996_v49  ;;  %v1165_v28 = vadd.f32 %v1164_v23, %v1102_v3 }
 0x141   :  { %v1166_v30 = vadd.f32 %v1165_v28, %v1103_v26  ;;  %v1031_v34 = vadd.f32 %v1030_v22, %v2002_v0 }
 0x143   :  { %v1032_v32 = vadd.f32 %v1988_v42, %v1031_v34  ;;  %v1167_v35 = vadd.f32 %v1166_v30, %v1104_v31  ;;  %v1109_v42 = vmul.f32 %v2012_v8, %v2012_v8 }
 0x145   :  { %v1168_v36 = vadd.f32 %v1167_v35, %v1105_v17  ;;  %v1033_v38 = vadd.f32 %v1998_v55, %v1032_v32  ;;  %v1110_v55 = vmul.f32 %v2022_v20, %v2022_v20 }
 0x147   :  { %v1034_v49 = vadd.f32 %v1033_v38, %v2020_v14  ;;  %v1169_v40 = vadd.f32 %v1168_v36, %v1106_v27 }
 0x149   :  { %v1170_v43 = vadd.f32 %v1169_v40, %v1107_v39  ;;  %v1035_v0 = vadd.f32 %v1034_v49, %v2026_v29 }
 0x14b   :  { %v1036_v50 = vadd.f32 %v2012_v8, %v1035_v0  ;;  %v1171_v52 = vadd.f32 %v1170_v43, %v1108_v48  ;;  %v1113_v8 = vmul.f32 %v2036_v37, %v2036_v37 }
 0x14d   :  { %v1172_v54 = vadd.f32 %v1171_v52, %v1109_v42  ;;  %v1037_v58 = vadd.f32 %v2022_v20, %v1036_v50  ;;  %v1114_v20 = vmul.f32 %v2046_v53, %v2046_v53 }
 0x14f   :  { %v1038_v14 = vadd.f32 %v1037_v58, %v2044_v45  ;;  %v1173_v59 = vadd.f32 %v1172_v54, %v1110_v55 }
 0x151   :  { %v1174_v60 = vadd.f32 %v1173_v59, %v1111_v44  ;;  %v1039_v29 = vadd.f32 %v1038_v14, %v2050_v63 }
 0x153   :  { %v1040_v61 = vadd.f32 %v2036_v37, %v1039_v29  ;;  %v1175_v2 = vadd.f32 %v1174_v60, %v1112_v51  ;;  %v1117_v37 = vmul.f32 %v2060_v9, %v2060_v9 }
 0x155   :  { %v1176_v41 = vadd.f32 %v1175_v2, %v1113_v8  ;;  %v1041_v4 = vadd.f32 %v2046_v53, %v1040_v61  ;;  %v1118_v53 = vmul.f32 %v2070_v24, %v2070_v24 }
 0x157   :  { %v1042_v45 = vadd.f32 %v1041_v4, %v2068_v16  ;;  %v1177_v46 = vadd.f32 %v1176_v41, %v1114_v20 }
 0x159   :  { %v1178_v7 = vadd.f32 %v1177_v46, %v1115_v5  ;;  %v1043_v63 = vadd.f32 %v1042_v45, %v2074_v33 }
 0x15b   :  { %v1044_v62 = vadd.f32 %v2060_v9, %v1043_v63  ;;  %v1179_v6 = vadd.f32 %v1178_v7, %v1116_v11  ;;  %v1121_v9 = vmul.f32 %v2084_v47, %v2084_v47 }
 0x15d   :  { %v1180_v13 = vadd.f32 %v1179_v6, %v1117_v37  ;;  %v1045_v15 = vadd.f32 %v2070_v24, %v1044_v62  ;;  %v1122_v24 = vmul.f32 %v2094_v1, %v2094_v1 }
 0x15f   :  { %v1046_v16 = vadd.f32 %v1045_v15, %v2092_v56  ;;  %v1181_v18 = vadd.f32 %v1180_v13, %v1118_v53 }
 0x161   :  { %v1182_v57 = vadd.f32 %v1181_v18, %v1119_v10  ;;  %v1047_v33 = vadd.f32 %v1046_v16, %v2098_v12 }
 0x163   :  { %v1048_v21 = vadd.f32 %v2084_v47, %v1047_v33  ;;  %v1183_v3 = vadd.f32 %v1182_v57, %v1120_v19  ;;  %v986_v47 = vld [vmem:[%s2224_s3] sm:$0x1] }
 0x165   :  { %v1049_v23 = vadd.f32 %v2094_v1, %v1048_v21  ;;  %v1184_v25 = vadd.f32 %v1183_v3, %v1121_v9  ;;  %v1058_v1 = vld [vmem:[%s2225_s4] sm:$0x1] }
 0x167   :  { %v1050_v56 = vrot.slane %v1049_v23, 4  ;;  %v1185_v22 = vadd.f32 %v1184_v25, %v1122_v24 }
 0x169   :  { %v1051_v26 = vadd.f32 %v1050_v56, %v1049_v23  ;;  %v1186_v28 = vrot.slane %v1185_v22, 4 }
 0x16b   :  { %v1052_v30 = vrot.slane %v1051_v26, 2  ;;  %v1187_v34 = vadd.f32 %v1186_v28, %v1185_v22 }
 0x16d   :  { %v1053_v31 = vadd.f32 %v1052_v30, %v1051_v26  ;;  %v1188_v12 = vrot.slane %v1187_v34, 2 }
 0x16f   :  { %v1054_v17 = vrot.slane %v1053_v31, 1  ;;  %v1189_v32 = vadd.f32 %v1188_v12, %v1187_v34 }
 0x171   :  { %v1055_v35 = vadd.f32 %v1054_v17, %v1053_v31  ;;  %v1190_v27 = vrot.slane %v1189_v32, 1 }
 0x173   :  { %v1056_v36 = vadd.f32 %v1055_v35, %v986_v47  ;;  %v1191_v38 = vadd.f32 %v1190_v27, %v1189_v32 }
 0x175   :  { %1057 = vst [vmem:[%s2224_s3] sm:$0x1] %v1056_v36  ;;  %v1192_v49 = vadd.f32 %v1191_v38, %v1058_v1 }
 0x177   :  { %1193 = vst [vmem:[%s2225_s4] sm:$0x1] %v1192_v49 }

// kernel: bottleneck_forward.6
= control target key start
LH: loop header
LB: loop body
LE: loop exit
PB: predicated region body
PF: predicated region fallthrough
CT: control target
= control target key end

     0   :  { %v166_v5 = vlaneseq  ;;  %s1807_s1 = inlined_call_operand.vmem [shape: f32[1,1,128], index: 1, kind: input, shape index: {}]   ;;  %s1808_s2 = inlined_call_operand.vmem [shape: f32[1,1,128], index: 2, kind: input, shape index: {}]   ;;  %s1809_s0 = inlined_call_operand.vmem [shape: bf16[512,128], index: 0, kind: input, shape index: {}]   ;;  %s1810_s3 = inlined_call_operand.vmem [shape: f32[1,128], index: 3, kind: input, shape index: {}]   ;;  %s1811_s4 = inlined_call_operand.vmem [shape: f32[1,128], index: 4, kind: input, shape index: {}]   ;;  %s1812_s5 = inlined_call_operand.vmem [shape: bf16[512,128], index: 5, kind: output, shape index: {}]  }
   0x1   :  { %v20_v0 = vld [vmem:[%s1807_s1] sm:$0x1]  ;;  %v1223_v11 = vld [vmem:[%s1809_s0 + $0x8] sm:$0xff]   ;;  %v1228_v12 = vld [vmem:[%s1809_s0 + $0x10] sm:$0xff]  }
   0x2   :  { %v22_v1 = vld [vmem:[%s1808_s2] sm:$0x1]  ;;  %v1209_v2 = vmul.f32 0.001953125, %v20_v0  ;;  %v1213_v8 = vshrl.u32 %v166_v5, 7  ;;  %v1233_v13 = vld [vmem:[%s1809_s0 + $0x18] sm:$0xff]   ;;  %v1243_v15 = vld [vmem:[%s1809_s0 + $0x28] sm:$0xff]   ;;  %v827_v19 = vunpack.c.l.bf16 %v1223_v11  ;;  %v828_v22 = vunpack.c.h.bf16 %v1223_v11 }
   0x3   :  { %v28_v3 = vmul.f32 0.001953125, %v22_v1  ;;  %v1218_v10 = vld [vmem:[%s1809_s0] sm:$0xff]   ;;  %v1252_v20 = vld [vmem:[%s1809_s0 + $0x30] sm:$0xff]   ;;  %v1257_v21 = vld [vmem:[%s1809_s0 + $0x38] sm:$0xff]   ;;  %v831_v23 = vunpack.c.l.bf16 %v1228_v12  ;;  %v832_v24 = vunpack.c.h.bf16 %v1228_v12  ;;  %v835_v25 = vunpack.c.l.bf16 %v1233_v13 }
   0x4   :  { %v29_v4 = vmul.f32 %v1209_v2, %v1209_v2  ;;  %v1238_v14 = vld [vmem:[%s1809_s0 + $0x20] sm:$0xff]   ;;  %v823_v16 = vunpack.c.l.bf16 %v1218_v10  ;;  %v824_v17 = vunpack.c.h.bf16 %v1218_v10  ;;  %v168_v18 = vsub.s32 0, %v1213_v8  ;;  %v1271_v27 = vld [vmem:[%s1809_s0 + $0x48] sm:$0xff]   ;;  %v1280_v32 = vld [vmem:[%s1809_s0 + $0x50] sm:$0xff]  }
   0x5   :  { %v1266_v26 = vld [vmem:[%s1809_s0 + $0x40] sm:$0xff]   ;;  %v836_v28 = vunpack.c.h.bf16 %v1233_v13  ;;  %v839_v29 = vunpack.c.l.bf16 %v1238_v14  ;;  %v840_v30 = vunpack.c.h.bf16 %v1238_v14  ;;  %v843_v31 = vunpack.c.l.bf16 %v1243_v15  ;;  %v1285_v33 = vld [vmem:[%s1809_s0 + $0x58] sm:$0xff]   ;;  %v1299_v39 = vld [vmem:[%s1809_s0 + $0x68] sm:$0xff]  }
   0x6   :  { %v30_v6 = vsub.f32 %v28_v3, %v29_v4  ;;  %v844_v34 = vunpack.c.h.bf16 %v1243_v15  ;;  %v847_v35 = vunpack.c.l.bf16 %v1252_v20  ;;  %v848_v36 = vunpack.c.h.bf16 %v1252_v20  ;;  %v1294_v38 = vld [vmem:[%s1809_s0 + $0x60] sm:$0xff]   ;;  %v1308_v44 = vld [vmem:[%s1809_s0 + $0x70] sm:$0xff]   ;;  %v1313_v45 = vld [vmem:[%s1809_s0 + $0x78] sm:$0xff]  }
   0x7   :  { %v851_v37 = vunpack.c.l.bf16 %v1257_v21  ;;  %v852_v40 = vunpack.c.h.bf16 %v1257_v21  ;;  %v855_v41 = vunpack.c.l.bf16 %v1266_v26  ;;  %v1322_v50 = vld [vmem:[%s1809_s0 + $0x80] sm:$0xff]   ;;  %v1327_v51 = vld [vmem:[%s1809_s0 + $0x88] sm:$0xff]   ;;  %v1336_v56 = vld [vmem:[%s1809_s0 + $0x90] sm:$0xff]  }
   0x8   :  { %v31_v7 = vmax.f32 %v30_v6, 0.0  ;;  %v1341_v57 = vld [vmem:[%s1809_s0 + $0x98] sm:$0xff]   ;;  %v1350_v62 = vld [vmem:[%s1809_s0 + $0xa0] sm:$0xff]   ;;  %v1355_v63 = vld [vmem:[%s1809_s0 + $0xa8] sm:$0xff]  }
   0x9   :  { %v1364_v5 = vld [vmem:[%s1809_s0 + $0xb0] sm:$0xff]   ;;  %v1369_v6 = vld [vmem:[%s1809_s0 + $0xb8] sm:$0xff]   ;;  %v1378_v4 = vld [vmem:[%s1809_s0 + $0xc0] sm:$0xff]  }
   0xa   :  { %v32_v9 = vadd.f32 1e-05, %v31_v7  ;;  %v1383_v0 = vld [vmem:[%s1809_s0 + $0xc8] sm:$0xff]   ;;  %v24_v7 = vld [vmem:[%s1810_s3] sm:$0x1]  ;;  %v1395_v60 = vld [vmem:[%s1809_s0 + $0xd0] sm:$0xff]  }
   0xb   :  { %v1404_v1 = vld [vmem:[%s1809_s0 + $0xd8] sm:$0xff]   ;;  %v1409_v61 = vld [vmem:[%s1809_s0 + $0xe0] sm:$0xff]   ;;  %v1418_v54 = vld [vmem:[%s1809_s0 + $0xe8] sm:$0xff]  }
   0xc   :  { %1171 = vrsqrt.f32 %v32_v9  ;;  %v1426_v59 = vld [vmem:[%s1809_s0 + $0xf0] sm:$0xff]   ;;  %v1431_v55 = vld [vmem:[%s1809_s0 + $0xf8] sm:$0xff]   ;;  %v936_v52 = vunpack.c.h.bf16 %v1409_v61  ;;  %v939_v47 = vunpack.c.l.bf16 %v1418_v54 }
   0xd   :  { %v943_v43 = vunpack.c.l.bf16 %v1426_v59  ;;  %v947_v49 = vunpack.c.l.bf16 %v1431_v55 }
  0x19   :  { %v1172_v3 = vpop.eup %1171 }
  0x1a   :  { %v34_v53 = vmul.f32 %v1172_v3, %v24_v7  ;;  %v25_v3 = vld [vmem:[%s1811_s4] sm:$0x1] }
  0x1c   :  { %v35_v58 = vmul.f32 %v34_v53, %v1209_v2  ;;  %v1443_v9 = vrot.slane %v34_v53, %v168_v18 }
  0x1e   :  { %v36_v42 = vsub.f32 %v25_v3, %v35_v58  ;;  %v171_v2 = vmul.f32 %v823_v16, %v1443_v9  ;;  %v172_v53 = vmul.f32 %v824_v17, %v1443_v9  ;;  %v173_v46 = vmul.f32 %v827_v19, %v1443_v9 }
  0x1f   :  { %v174_v7 = vmul.f32 %v828_v22, %v1443_v9  ;;  %v175_v58 = vmul.f32 %v831_v23, %v1443_v9  ;;  %v176_v16 = vmul.f32 %v832_v24, %v1443_v9  ;;  %v177_v10 = vmul.f32 %v835_v25, %v1443_v9 }
  0x20   :  { %v1474_v17 = vrot.slane %v36_v42, %v168_v18  ;;  %v178_v11 = vmul.f32 %v836_v28, %v1443_v9  ;;  %v179_v19 = vmul.f32 %v839_v29, %v1443_v9  ;;  %v180_v12 = vmul.f32 %v840_v30, %v1443_v9 }
  0x21   :  { %v181_v22 = vmul.f32 %v843_v31, %v1443_v9  ;;  %v182_v8 = vmul.f32 %v844_v34, %v1443_v9  ;;  %v183_v13 = vmul.f32 %v847_v35, %v1443_v9  ;;  %v184_v18 = vmul.f32 %v848_v36, %v1443_v9 }
  0x22   :  { %v241_v23 = vadd.f32 %v1474_v17, %v171_v2  ;;  %v242_v14 = vadd.f32 %v1474_v17, %v172_v53  ;;  %v243_v24 = vadd.f32 %v1474_v17, %v173_v46  ;;  %v244_v25 = vadd.f32 %v1474_v17, %v174_v7 }
  0x23   :  { %v245_v28 = vadd.f32 %v1474_v17, %v175_v58  ;;  %v246_v15 = vadd.f32 %v1474_v17, %v176_v16  ;;  %v247_v29 = vadd.f32 %v1474_v17, %v177_v10  ;;  %v248_v30 = vadd.f32 %v1474_v17, %v178_v11 }
  0x24   :  { %v305_v31 = vmax.f32 %v241_v23, 0.0  ;;  %v306_v34 = vmax.f32 %v242_v14, 0.0  ;;  %v307_v20 = vmax.f32 %v243_v24, 0.0  ;;  %v308_v35 = vmax.f32 %v244_v25, 0.0 }
  0x25   :  { %v309_v36 = vmax.f32 %v245_v28, 0.0  ;;  %v310_v42 = vmax.f32 %v246_v15, 0.0  ;;  %v311_v3 = vmax.f32 %v247_v29, 0.0  ;;  %v312_v2 = vmax.f32 %v248_v30, 0.0 }
  0x26   :  { %v952_v53 = vpack.c.bf16 %v306_v34, %v305_v31  ;;  %v957_v46 = vpack.c.bf16 %v308_v35, %v307_v20  ;;  %v249_v7 = vadd.f32 %v1474_v17, %v179_v19  ;;  %v250_v58 = vadd.f32 %v1474_v17, %v180_v12 }
  0x27   :  { %v962_v48 = vpack.c.bf16 %v310_v42, %v309_v36  ;;  %v967_v16 = vpack.c.bf16 %v312_v2, %v311_v3  ;;  %v251_v10 = vadd.f32 %v1474_v17, %v181_v22  ;;  %v252_v11 = vadd.f32 %v1474_v17, %v182_v8 }
  0x28   :  { %953 = vst [vmem:[%s1812_s5] sm:$0xff] %v952_v53   ;;  %1140 = vst [vmem:[%s1812_s5 + $0x8] sm:$0xff] %v957_v46   ;;  %v313_v23 = vmax.f32 %v249_v7, 0.0  ;;  %v314_v14 = vmax.f32 %v250_v58, 0.0  ;;  %v253_v19 = vadd.f32 %v1474_v17, %v183_v13  ;;  %v254_v12 = vadd.f32 %v1474_v17, %v184_v18 }
  0x29   :  { %1141 = vst [vmem:[%s1812_s5 + $0x10] sm:$0xff] %v962_v48   ;;  %1142 = vst [vmem:[%s1812_s5 + $0x18] sm:$0xff] %v967_v16   ;;  %v315_v22 = vmax.f32 %v251_v10, 0.0  ;;  %v316_v8 = vmax.f32 %v252_v11, 0.0  ;;  %v185_v24 = vmul.f32 %v851_v37, %v1443_v9  ;;  %v186_v13 = vmul.f32 %v852_v40, %v1443_v9 }
  0x2a   :  { %v972_v25 = vpack.c.bf16 %v314_v14, %v313_v23  ;;  %v317_v18 = vmax.f32 %v253_v19, 0.0  ;;  %v318_v28 = vmax.f32 %v254_v12, 0.0  ;;  %v187_v48 = vmul.f32 %v855_v41, %v1443_v9 }
  0x2b   :  { %v977_v15 = vpack.c.bf16 %v316_v8, %v315_v22  ;;  %v255_v29 = vadd.f32 %v1474_v17, %v185_v24  ;;  %v256_v30 = vadd.f32 %v1474_v17, %v186_v13  ;;  %v1813_v31 = vunpack.c.h.bf16 %v1266_v26 }
  0x2c   :  { %1143 = vst [vmem:[%s1812_s5 + $0x20] sm:$0xff] %v972_v25   ;;  %v982_v21 = vpack.c.bf16 %v318_v28, %v317_v18  ;;  %v257_v40 = vadd.f32 %v1474_v17, %v187_v48  ;;  %v1814_v34 = vunpack.c.l.bf16 %v1271_v27  ;;  %v1815_v20 = vunpack.c.h.bf16 %v1271_v27 }
  0x2d   :  { %v188_v37 = vmul.f32 %v1813_v31, %v1443_v9  ;;  %1144 = vst [vmem:[%s1812_s5 + $0x28] sm:$0xff] %v977_v15   ;;  %v319_v26 = vmax.f32 %v255_v29, 0.0  ;;  %v320_v36 = vmax.f32 %v256_v30, 0.0  ;;  %v1816_v3 = vunpack.c.l.bf16 %v1280_v32 }
  0x2e   :  { %v189_v41 = vmul.f32 %v1814_v34, %v1443_v9  ;;  %v190_v35 = vmul.f32 %v1815_v20, %v1443_v9  ;;  %1145 = vst [vmem:[%s1812_s5 + $0x30] sm:$0xff] %v982_v21   ;;  %v321_v53 = vmax.f32 %v257_v40, 0.0  ;;  %v1817_v7 = vunpack.c.h.bf16 %v1280_v32 }
  0x2f   :  { %v258_v42 = vadd.f32 %v1474_v17, %v188_v37  ;;  %v191_v2 = vmul.f32 %v1816_v3, %v1443_v9  ;;  %v987_v16 = vpack.c.bf16 %v320_v36, %v319_v26  ;;  %v1818_v23 = vunpack.c.l.bf16 %v1285_v33 }
  0x30   :  { %v259_v27 = vadd.f32 %v1474_v17, %v189_v41  ;;  %v260_v46 = vadd.f32 %v1474_v17, %v190_v35  ;;  %v192_v58 = vmul.f32 %v1817_v7, %v1443_v9  ;;  %v1819_v8 = vunpack.c.h.bf16 %v1285_v33 }
  0x31   :  { %v322_v10 = vmax.f32 %v258_v42, 0.0  ;;  %v261_v11 = vadd.f32 %v1474_v17, %v191_v2  ;;  %v193_v14 = vmul.f32 %v1818_v23, %v1443_v9  ;;  %1146 = vst [vmem:[%s1812_s5 + $0x38] sm:$0xff] %v987_v16   ;;  %v1820_v18 = vunpack.c.l.bf16 %v1294_v38 }
  0x32   :  { %v323_v19 = vmax.f32 %v259_v27, 0.0  ;;  %v324_v12 = vmax.f32 %v260_v46, 0.0  ;;  %v262_v22 = vadd.f32 %v1474_v17, %v192_v58  ;;  %v194_v24 = vmul.f32 %v1819_v8, %v1443_v9 }
  0x33   :  { %v992_v32 = vpack.c.bf16 %v322_v10, %v321_v53  ;;  %v325_v13 = vmax.f32 %v261_v11, 0.0  ;;  %v263_v25 = vadd.f32 %v1474_v17, %v193_v14  ;;  %v195_v28 = vmul.f32 %v1820_v18, %v1443_v9 }
  0x34   :  { %v997_v48 = vpack.c.bf16 %v324_v12, %v323_v19  ;;  %v326_v15 = vmax.f32 %v262_v22, 0.0  ;;  %v264_v29 = vadd.f32 %v1474_v17, %v194_v24  ;;  %v1821_v33 = vunpack.c.h.bf16 %v1294_v38 }
  0x35   :  { %1147 = vst [vmem:[%s1812_s5 + $0x40] sm:$0xff] %v992_v32   ;;  %v327_v31 = vmax.f32 %v263_v25, 0.0  ;;  %v265_v37 = vadd.f32 %v1474_v17, %v195_v28  ;;  %v1822_v21 = vunpack.c.l.bf16 %v1299_v39  ;;  %v1823_v34 = vunpack.c.h.bf16 %v1299_v39 }
  0x36   :  { %v196_v30 = vmul.f32 %v1821_v33, %v1443_v9  ;;  %1148 = vst [vmem:[%s1812_s5 + $0x48] sm:$0xff] %v997_v48   ;;  %v1002_v38 = vpack.c.bf16 %v326_v15, %v325_v13  ;;  %v328_v20 = vmax.f32 %v264_v29, 0.0  ;;  %v1824_v26 = vunpack.c.l.bf16 %v1308_v44 }
  0x37   :  { %v197_v40 = vmul.f32 %v1822_v21, %v1443_v9  ;;  %v198_v41 = vmul.f32 %v1823_v34, %v1443_v9  ;;  %v329_v42 = vmax.f32 %v265_v37, 0.0  ;;  %v1825_v39 = vunpack.c.h.bf16 %v1308_v44 }
  0x38   :  { %v266_v35 = vadd.f32 %v1474_v17, %v196_v30  ;;  %v199_v36 = vmul.f32 %v1824_v26, %v1443_v9  ;;  %1149 = vst [vmem:[%s1812_s5 + $0x50] sm:$0xff] %v1002_v38   ;;  %v1007_v27 = vpack.c.bf16 %v328_v20, %v327_v31  ;;  %v1826_v58 = vunpack.c.l.bf16 %v1313_v45 }
  0x39   :  { %v267_v3 = vadd.f32 %v1474_v17, %v197_v40  ;;  %v268_v2 = vadd.f32 %v1474_v17, %v198_v41  ;;  %v200_v53 = vmul.f32 %v1825_v39, %v1443_v9  ;;  %v1827_v44 = vunpack.c.h.bf16 %v1313_v45 }
  0x3a   :  { %v330_v46 = vmax.f32 %v266_v35, 0.0  ;;  %v269_v7 = vadd.f32 %v1474_v17, %v199_v36  ;;  %v201_v16 = vmul.f32 %v1826_v58, %v1443_v9  ;;  %1150 = vst [vmem:[%s1812_s5 + $0x58] sm:$0xff] %v1007_v27   ;;  %v1828_v8 = vunpack.c.l.bf16 %v1322_v50 }
  0x3b   :  { %v331_v10 = vmax.f32 %v267_v3, 0.0  ;;  %v332_v11 = vmax.f32 %v268_v2, 0.0  ;;  %v270_v23 = vadd.f32 %v1474_v17, %v200_v53  ;;  %v202_v14 = vmul.f32 %v1827_v44, %v1443_v9 }
  0x3c   :  { %v1012_v19 = vpack.c.bf16 %v330_v46, %v329_v42  ;;  %v333_v12 = vmax.f32 %v269_v7, 0.0  ;;  %v271_v22 = vadd.f32 %v1474_v17, %v201_v16  ;;  %v203_v24 = vmul.f32 %v1828_v8, %v1443_v9 }
  0x3d   :  { %v1017_v32 = vpack.c.bf16 %v332_v11, %v331_v10  ;;  %v334_v13 = vmax.f32 %v270_v23, 0.0  ;;  %v272_v25 = vadd.f32 %v1474_v17, %v202_v14  ;;  %v1829_v45 = vunpack.c.h.bf16 %v1322_v50 }
  0x3e   :  { %1151 = vst [vmem:[%s1812_s5 + $0x60] sm:$0xff] %v1012_v19   ;;  %v335_v28 = vmax.f32 %v271_v22, 0.0  ;;  %v273_v48 = vadd.f32 %v1474_v17, %v203_v24  ;;  %v1830_v15 = vunpack.c.l.bf16 %v1327_v51  ;;  %v1831_v33 = vunpack.c.h.bf16 %v1327_v51 }
  0x3f   :  { %v204_v18 = vmul.f32 %v1829_v45, %v1443_v9  ;;  %1152 = vst [vmem:[%s1812_s5 + $0x68] sm:$0xff] %v1017_v32   ;;  %v1022_v50 = vpack.c.bf16 %v334_v13, %v333_v12  ;;  %v336_v31 = vmax.f32 %v272_v25, 0.0  ;;  %v1832_v21 = vunpack.c.l.bf16 %v1336_v56 }
  0x40   :  { %v205_v29 = vmul.f32 %v1830_v15, %v1443_v9  ;;  %v206_v30 = vmul.f32 %v1831_v33, %v1443_v9  ;;  %v337_v34 = vmax.f32 %v273_v48, 0.0  ;;  %v1833_v51 = vunpack.c.h.bf16 %v1336_v56 }
  0x41   :  { %v274_v37 = vadd.f32 %v1474_v17, %v204_v18  ;;  %v207_v40 = vmul.f32 %v1832_v21, %v1443_v9  ;;  %1153 = vst [vmem:[%s1812_s5 + $0x70] sm:$0xff] %v1022_v50   ;;  %v1027_v35 = vpack.c.bf16 %v336_v31, %v335_v28  ;;  %v1834_v42 = vunpack.c.l.bf16 %v1341_v57 }
  0x42   :  { %v275_v41 = vadd.f32 %v1474_v17, %v205_v29  ;;  %v276_v38 = vadd.f32 %v1474_v17, %v206_v30  ;;  %v208_v20 = vmul.f32 %v1833_v51, %v1443_v9  ;;  %v1835_v56 = vunpack.c.h.bf16 %v1341_v57 }
  0x43   :  { %v338_v26 = vmax.f32 %v274_v37, 0.0  ;;  %v277_v36 = vadd.f32 %v1474_v17, %v207_v40  ;;  %v209_v3 = vmul.f32 %v1834_v42, %v1443_v9  ;;  %1154 = vst [vmem:[%s1812_s5 + $0x78] sm:$0xff] %v1027_v35   ;;  %v1836_v16 = vunpack.c.l.bf16 %v1350_v62 }
  0x44   :  { %v339_v2 = vmax.f32 %v275_v41, 0.0  ;;  %v340_v39 = vmax.f32 %v276_v38, 0.0  ;;  %v278_v53 = vadd.f32 %v1474_v17, %v208_v20  ;;  %v210_v27 = vmul.f32 %v1835_v56, %v1443_v9 }
  0x45   :  { %v1032_v46 = vpack.c.bf16 %v338_v26, %v337_v34  ;;  %v341_v7 = vmax.f32 %v277_v36, 0.0  ;;  %v279_v58 = vadd.f32 %v1474_v17, %v209_v3  ;;  %v211_v10 = vmul.f32 %v1836_v16, %v1443_v9 }
  0x46   :  { %v1037_v11 = vpack.c.bf16 %v340_v39, %v339_v2  ;;  %v342_v23 = vmax.f32 %v278_v53, 0.0  ;;  %v280_v44 = vadd.f32 %v1474_v17, %v210_v27  ;;  %v1837_v57 = vunpack.c.h.bf16 %v1350_v62 }
  0x47   :  { %1155 = vst [vmem:[%s1812_s5 + $0x80] sm:$0xff] %v1032_v46   ;;  %v343_v19 = vmax.f32 %v279_v58, 0.0  ;;  %v281_v12 = vadd.f32 %v1474_v17, %v211_v10  ;;  %v1838_v22 = vunpack.c.l.bf16 %v1355_v63  ;;  %v1839_v24 = vunpack.c.h.bf16 %v1355_v63 }
  0x48   :  { %v212_v14 = vmul.f32 %v1837_v57, %v1443_v9  ;;  %1156 = vst [vmem:[%s1812_s5 + $0x88] sm:$0xff] %v1037_v11   ;;  %v1042_v62 = vpack.c.bf16 %v342_v23, %v341_v7  ;;  %v344_v13 = vmax.f32 %v280_v44, 0.0  ;;  %v1840_v45 = vunpack.c.l.bf16 %v1364_v5 }
  0x49   :  { %v213_v8 = vmul.f32 %v1838_v22, %v1443_v9  ;;  %v214_v32 = vmul.f32 %v1839_v24, %v1443_v9  ;;  %v345_v28 = vmax.f32 %v281_v12, 0.0  ;;  %v1841_v63 = vunpack.c.h.bf16 %v1364_v5 }
  0x4a   :  { %v282_v25 = vadd.f32 %v1474_v17, %v212_v14  ;;  %v215_v18 = vmul.f32 %v1840_v45, %v1443_v9  ;;  %1157 = vst [vmem:[%s1812_s5 + $0x90] sm:$0xff] %v1042_v62   ;;  %v1047_v33 = vpack.c.bf16 %v344_v13, %v343_v19  ;;  %v1842_v31 = vunpack.c.l.bf16 %v1369_v6 }
  0x4b   :  { %v283_v48 = vadd.f32 %v1474_v17, %v213_v8  ;;  %v284_v15 = vadd.f32 %v1474_v17, %v214_v32  ;;  %v216_v29 = vmul.f32 %v1841_v63, %v1443_v9  ;;  %v1843_v5 = vunpack.c.h.bf16 %v1369_v6 }
  0x4c   :  { %v346_v30 = vmax.f32 %v282_v25, 0.0  ;;  %v285_v50 = vadd.f32 %v1474_v17, %v215_v18  ;;  %v217_v37 = vmul.f32 %v1842_v31, %v1443_v9  ;;  %1158 = vst [vmem:[%s1812_s5 + $0x98] sm:$0xff] %v1047_v33   ;;  %v1844_v35 = vunpack.c.l.bf16 %v1378_v4 }
  0x4d   :  { %v347_v21 = vmax.f32 %v283_v48, 0.0  ;;  %v348_v40 = vmax.f32 %v284_v15, 0.0  ;;  %v286_v34 = vadd.f32 %v1474_v17, %v216_v29  ;;  %v218_v41 = vmul.f32 %v1843_v5, %v1443_v9 }
  0x4e   :  { %v1052_v38 = vpack.c.bf16 %v346_v30, %v345_v28  ;;  %v349_v51 = vmax.f32 %v285_v50, 0.0  ;;  %v287_v20 = vadd.f32 %v1474_v17, %v217_v37  ;;  %v219_v26 = vmul.f32 %v1844_v35, %v1443_v9 }
  0x4f   :  { %v1057_v36 = vpack.c.bf16 %v348_v40, %v347_v21  ;;  %v350_v42 = vmax.f32 %v286_v34, 0.0  ;;  %v288_v3 = vadd.f32 %v1474_v17, %v218_v41  ;;  %v1845_v6 = vunpack.c.h.bf16 %v1378_v4 }
  0x50   :  { %1159 = vst [vmem:[%s1812_s5 + $0xa0] sm:$0xff] %v1052_v38   ;;  %v351_v39 = vmax.f32 %v287_v20, 0.0  ;;  %v289_v53 = vadd.f32 %v1474_v17, %v219_v26  ;;  %v1846_v56 = vunpack.c.l.bf16 %v1383_v0  ;;  %v1847_v46 = vunpack.c.h.bf16 %v1383_v0 }
  0x51   :  { %v220_v2 = vmul.f32 %v1845_v6, %v1443_v9  ;;  %1160 = vst [vmem:[%s1812_s5 + $0xa8] sm:$0xff] %v1057_v36   ;;  %v1062_v4 = vpack.c.bf16 %v350_v42, %v349_v51  ;;  %v352_v58 = vmax.f32 %v288_v3, 0.0  ;;  %v1848_v10 = vunpack.c.l.bf16 %v1395_v60 }
  0x52   :  { %v221_v27 = vmul.f32 %v1846_v56, %v1443_v9  ;;  %v222_v7 = vmul.f32 %v1847_v46, %v1443_v9  ;;  %v353_v23 = vmax.f32 %v289_v53, 0.0  ;;  %v1849_v0 = vunpack.c.h.bf16 %v1395_v60 }
  0x53   :  { %v290_v16 = vadd.f32 %v1474_v17, %v220_v2  ;;  %v223_v11 = vmul.f32 %v1848_v10, %v1443_v9  ;;  %1161 = vst [vmem:[%s1812_s5 + $0xb0] sm:$0xff] %v1062_v4   ;;  %v1067_v19 = vpack.c.bf16 %v352_v58, %v351_v39  ;;  %v1850_v8 = vunpack.c.l.bf16 %v1404_v1 }
  0x54   :  { %v291_v44 = vadd.f32 %v1474_v17, %v221_v27  ;;  %v292_v57 = vadd.f32 %v1474_v17, %v222_v7  ;;  %v224_v14 = vmul.f32 %v1849_v0, %v1443_v9  ;;  %v1851_v60 = vunpack.c.h.bf16 %v1404_v1 }
  0x55   :  { %v354_v12 = vmax.f32 %v290_v16, 0.0  ;;  %v293_v22 = vadd.f32 %v1474_v17, %v223_v11  ;;  %v225_v24 = vmul.f32 %v1850_v8, %v1443_v9  ;;  %1162 = vst [vmem:[%s1812_s5 + $0xb8] sm:$0xff] %v1067_v19   ;;  %v1852_v48 = vunpack.c.l.bf16 %v1409_v61 }
  0x56   :  { %v355_v32 = vmax.f32 %v291_v44, 0.0  ;;  %v356_v62 = vmax.f32 %v292_v57, 0.0  ;;  %v294_v13 = vadd.f32 %v1474_v17, %v224_v14  ;;  %v226_v25 = vmul.f32 %v1851_v60, %v1443_v9 }
  0x57   :  { %v1072_v45 = vpack.c.bf16 %v354_v12, %v353_v23  ;;  %v357_v18 = vmax.f32 %v293_v22, 0.0  ;;  %v295_v28 = vadd.f32 %v1474_v17, %v225_v24  ;;  %v227_v15 = vmul.f32 %v1852_v48, %v1443_v9 }
  0x58   :  { %v1077_v63 = vpack.c.bf16 %v356_v62, %v355_v32  ;;  %v358_v29 = vmax.f32 %v294_v13, 0.0  ;;  %v296_v33 = vadd.f32 %v1474_v17, %v226_v25  ;;  %v228_v1 = vmul.f32 %v936_v52, %v1443_v9 }
  0x59   :  { %1163 = vst [vmem:[%s1812_s5 + $0xc0] sm:$0xff] %v1072_v45   ;;  %v359_v30 = vmax.f32 %v295_v28, 0.0  ;;  %v297_v50 = vadd.f32 %v1474_v17, %v227_v15  ;;  %v229_v31 = vmul.f32 %v939_v47, %v1443_v9  ;;  %v1853_v37 = vunpack.c.h.bf16 %v1418_v54 }
  0x5a   :  { %1164 = vst [vmem:[%s1812_s5 + $0xc8] sm:$0xff] %v1077_v63   ;;  %v1082_v52 = vpack.c.bf16 %v358_v29, %v357_v18  ;;  %v360_v61 = vmax.f32 %v296_v33, 0.0  ;;  %v298_v40 = vadd.f32 %v1474_v17, %v228_v1  ;;  %v231_v34 = vmul.f32 %v943_v43, %v1443_v9 }
  0x5b   :  { %v230_v21 = vmul.f32 %v1853_v37, %v1443_v9  ;;  %v361_v5 = vmax.f32 %v297_v50, 0.0  ;;  %v299_v41 = vadd.f32 %v1474_v17, %v229_v31  ;;  %v1854_v54 = vunpack.c.h.bf16 %v1426_v59 }
  0x5c   :  { %1165 = vst [vmem:[%s1812_s5 + $0xd0] sm:$0xff] %v1082_v52   ;;  %v1087_v51 = vpack.c.bf16 %v360_v61, %v359_v30  ;;  %v362_v20 = vmax.f32 %v298_v40, 0.0  ;;  %v301_v35 = vadd.f32 %v1474_v17, %v231_v34  ;;  %v233_v43 = vmul.f32 %v947_v49, %v1443_v9 }
  0x5d   :  { %v300_v47 = vadd.f32 %v1474_v17, %v230_v21  ;;  %v232_v38 = vmul.f32 %v1854_v54, %v1443_v9  ;;  %v363_v26 = vmax.f32 %v299_v41, 0.0  ;;  %v1855_v59 = vunpack.c.h.bf16 %v1431_v55 }
  0x5e   :  { %1166 = vst [vmem:[%s1812_s5 + $0xd8] sm:$0xff] %v1087_v51   ;;  %v1092_v6 = vpack.c.bf16 %v362_v20, %v361_v5  ;;  %v365_v2 = vmax.f32 %v301_v35, 0.0  ;;  %v303_v39 = vadd.f32 %v1474_v17, %v233_v43 }
  0x5f   :  { %v364_v36 = vmax.f32 %v300_v47, 0.0  ;;  %v302_v42 = vadd.f32 %v1474_v17, %v232_v38  ;;  %v234_v3 = vmul.f32 %v1855_v59, %v1443_v9 }
  0x60   :  { %1167 = vst [vmem:[%s1812_s5 + $0xe0] sm:$0xff] %v1092_v6   ;;  %v367_v27 = vmax.f32 %v303_v39, 0.0 }
  0x61   :  { %v1097_v53 = vpack.c.bf16 %v364_v36, %v363_v26  ;;  %v366_v56 = vmax.f32 %v302_v42, 0.0  ;;  %v304_v49 = vadd.f32 %v1474_v17, %v234_v3 }
  0x63   :  { %1168 = vst [vmem:[%s1812_s5 + $0xe8] sm:$0xff] %v1097_v53   ;;  %v1102_v55 = vpack.c.bf16 %v366_v56, %v365_v2  ;;  %v368_v9 = vmax.f32 %v304_v49, 0.0 }
  0x65   :  { %1169 = vst [vmem:[%s1812_s5 + $0xf0] sm:$0xff] %v1102_v55   ;;  %v1107_v46 = vpack.c.bf16 %v368_v9, %v367_v27 }
  0x67   :  { %1170 = vst [vmem:[%s1812_s5 + $0xf8] sm:$0xff] %v1107_v46  }

// kernel: bottleneck_forward.8
= control target key start
LH: loop header
LB: loop body
LE: loop exit
PB: predicated region body
PF: predicated region fallthrough
CT: control target
= control target key end

     0   :  { %vm65_vm0 = vcmask 1040384   ;;  %v120_v24 = vlaneseq  ;;  %s897_s5 = inlined_call_operand.vmem [shape: bf16[128,128], index: 5, kind: input, shape index: {}]   ;;  %s898_s1 = inlined_call_operand.vmem [shape: f32[2,1,128], index: 1, kind: input, shape index: {}]   ;;  %s899_s2 = inlined_call_operand.vmem [shape: f32[2,1,128], index: 2, kind: input, shape index: {}]   ;;  %s900_s0 = inlined_call_operand.vmem [shape: bf16[128,128], index: 0, kind: input, shape index: {}]   ;;  %s901_s3 = inlined_call_operand.vmem [shape: f32[1,128], index: 3, kind: input, shape index: {}]   ;;  %s902_s4 = inlined_call_operand.vmem [shape: f32[1,128], index: 4, kind: input, shape index: {}]   ;;  %s903_s7 = inlined_call_operand.vmem [shape: f32[1,1,128], index: 7, kind: output, shape index: {1}]   ;;  %s904_s8 = inlined_call_operand.vmem [shape: f32[1,1,128], index: 8, kind: output, shape index: {2}]   ;;  %s905_s6 = inlined_call_operand.vmem [shape: bf16[128,128], index: 6, kind: output, shape index: {0}]  }
   0x1   :  { %v729_v0 = vld [vmem:[%s897_s5 + $0x38] sm:$0xff]   ;;  %v730_v1 = vld [vmem:[%s897_s5 + $0x30] sm:$0xff]   ;;  %v731_v2 = vld [vmem:[%s897_s5 + $0x28] sm:$0xff]  }
   0x2   :  { %680 = vmatprep.subr.bf16.mxu0 %v729_v0  ;;  %712 = vmatprep.subr.bf16.mxu1 %v729_v0  ;;  %v732_v3 = vld [vmem:[%s897_s5 + $0x20] sm:$0xff]   ;;  %v733_v14 = vld [vmem:[%s897_s5 + $0x18] sm:$0xff]   ;;  %v734_v18 = vld [vmem:[%s897_s5 + $0x10] sm:$0xff]   ;;  %v121_v25 = vshrl.u32 %v120_v24, 7 }
   0x3   :  { %681 = vmatpush3.bf16.msra.mxu0 %v729_v0  ;;  %720 = vmatpush3.bf16.msra.mxu1 %v729_v0  ;;  %v63_v4 = vld [vmem:[%s898_s1] sm:$0x1]  ;;  %v64_v5 = vld [vmem:[%s898_s1 + $0x1] sm:$0x1]  ;;  %v735_v21 = vld [vmem:[%s897_s5 + $0x8] sm:$0xff]  }
   0x4   :  { %682 = vmatprep.subr.bf16.mxu0 %v730_v1  ;;  %713 = vmatprep.subr.bf16.mxu1 %v730_v1  ;;  %v69_v6 = vld [vmem:[%s899_s2] sm:$0x1]  ;;  %v66_v7 = vsel %vm65_vm0, %v63_v4, 0.0  ;;  %v67_v8 = vsel %vm65_vm0, %v64_v5, 0.0  ;;  %v70_v9 = vld [vmem:[%s899_s2 + $0x1] sm:$0x1] }
   0x5   :  { %v71_v10 = vsel %vm65_vm0, %v69_v6, 0.0  ;;  %v68_v11 = vadd.f32 %v67_v8, %v66_v7  ;;  %v72_v12 = vsel %vm65_vm0, %v70_v9, 0.0  ;;  %v736_v23 = vld [vmem:[%s897_s5] sm:$0xff]   ;;  %v650_v28 = vld [vmem:[%s900_s0 + $0x8] sm:$0xff]   ;;  %v651_v29 = vld [vmem:[%s900_s0 + $0x10] sm:$0xff]   ;;  %v122_v30 = vsub.s32 0, %v121_v25 }
   0x6   :  { %v73_v13 = vadd.f32 %v72_v12, %v71_v10  ;;  %v579_v26 = vld [vmem:[%s900_s0] sm:$0xff]   ;;  %v652_v31 = vld [vmem:[%s900_s0 + $0x18] sm:$0xff]   ;;  %v654_v36 = vld [vmem:[%s900_s0 + $0x28] sm:$0xff]   ;;  %v584_v38 = vunpack.c.l.bf16 %v650_v28  ;;  %v585_v39 = vunpack.c.h.bf16 %v650_v28  ;;  %v588_v40 = vunpack.c.l.bf16 %v651_v29 }
   0x7   :  { %683 = vmatpush3.bf16.msra.mxu0 %v730_v1  ;;  %721 = vmatpush3.bf16.msra.mxu1 %v730_v1  ;;  %v77_v15 = vmul.f32 0.0078125, %v68_v11  ;;  %v74_v27 = vld [vmem:[%s901_s3] sm:$0x1]  ;;  %v580_v34 = vunpack.c.l.bf16 %v579_v26  ;;  %v581_v35 = vunpack.c.h.bf16 %v579_v26  ;;  %v655_v41 = vld [vmem:[%s900_s0 + $0x30] sm:$0xff]   ;;  %v848_v42 = vld [vmem:[%s900_s0 + $0x38] sm:$0xff]   ;;  %v589_v44 = vunpack.c.h.bf16 %v651_v29 }
   0x8   :  { %684 = vmatprep.subr.bf16.mxu0 %v731_v2  ;;  %714 = vmatprep.subr.bf16.mxu1 %v731_v2  ;;  %v78_v16 = vmul.f32 0.0078125, %v73_v13  ;;  %v653_v32 = vld [vmem:[%s900_s0 + $0x20] sm:$0xff]   ;;  %v592_v45 = vunpack.c.l.bf16 %v652_v31  ;;  %v593_v46 = vunpack.c.h.bf16 %v652_v31  ;;  %v600_v51 = vunpack.c.l.bf16 %v654_v36 }
   0x9   :  { %v79_v17 = vmul.f32 %v77_v15, %v77_v15  ;;  %v75_v43 = vld [vmem:[%s902_s4] sm:$0x1]  ;;  %v596_v47 = vunpack.c.l.bf16 %v653_v32  ;;  %v597_v50 = vunpack.c.h.bf16 %v653_v32  ;;  %v601_v52 = vunpack.c.h.bf16 %v654_v36 }
   0xa   :  { %v604_v53 = vunpack.c.l.bf16 %v655_v41  ;;  %v605_v54 = vunpack.c.h.bf16 %v655_v41  ;;  %v608_v55 = vunpack.c.l.bf16 %v848_v42 }
   0xb   :  { %685 = vmatpush3.bf16.msra.mxu0 %v731_v2  ;;  %722 = vmatpush3.bf16.msra.mxu1 %v731_v2  ;;  %v80_v19 = vsub.f32 %v78_v16, %v79_v17 }
   0xc   :  { %686 = vmatprep.subr.bf16.mxu0 %v732_v3  ;;  %715 = vmatprep.subr.bf16.mxu1 %v732_v3 }
   0xd   :  { %v81_v20 = vmax.f32 %v80_v19, 0.0 }
   0xf   :  { %687 = vmatpush3.bf16.msra.mxu0 %v732_v3  ;;  %723 = vmatpush3.bf16.msra.mxu1 %v732_v3  ;;  %v82_v22 = vadd.f32 1e-05, %v81_v20 }
  0x10   :  { %688 = vmatprep.subr.bf16.mxu0 %v733_v14  ;;  %716 = vmatprep.subr.bf16.mxu1 %v733_v14 }
  0x11   :  { %737 = vrsqrt.f32 %v82_v22 }
  0x13   :  { %689 = vmatpush3.bf16.msra.mxu0 %v733_v14  ;;  %724 = vmatpush3.bf16.msra.mxu1 %v733_v14 }
  0x14   :  { %690 = vmatprep.subr.bf16.mxu0 %v734_v18  ;;  %717 = vmatprep.subr.bf16.mxu1 %v734_v18 }
  0x17   :  { %691 = vmatpush3.bf16.msra.mxu0 %v734_v18  ;;  %725 = vmatpush3.bf16.msra.mxu1 %v734_v18 }
  0x18   :  { %692 = vmatprep.subr.bf16.mxu0 %v735_v21  ;;  %718 = vmatprep.subr.bf16.mxu1 %v735_v21 }
  0x1b   :  { %693 = vmatpush3.bf16.msra.mxu0 %v735_v21  ;;  %726 = vmatpush3.bf16.msra.mxu1 %v735_v21 }
  0x1c   :  { %694 = vmatprep.subr.bf16.mxu0 %v736_v23  ;;  %719 = vmatprep.subr.bf16.mxu1 %v736_v23 }
  0x1e   :  { %v738_v33 = vpop.eup %737 }
  0x1f   :  { %695 = vmatpush3.bf16.msra.mxu0 %v736_v23  ;;  %727 = vmatpush3.bf16.msra.mxu1 %v736_v23  ;;  %v84_v37 = vmul.f32 %v738_v33, %v74_v27  ;;  %v609_v23 = vunpack.c.h.bf16 %v848_v42 }
  0x21   :  { %v85_v48 = vmul.f32 %v84_v37, %v77_v15  ;;  %v123_v49 = vrot.slane %v84_v37, %v122_v30 }
  0x23   :  { %v86_v56 = vsub.f32 %v75_v43, %v85_v48  ;;  %v125_v57 = vmul.f32 %v580_v34, %v123_v49  ;;  %v126_v58 = vmul.f32 %v581_v35, %v123_v49  ;;  %v127_v59 = vmul.f32 %v584_v38, %v123_v49 }
  0x24   :  { %v128_v60 = vmul.f32 %v585_v39, %v123_v49  ;;  %v129_v61 = vmul.f32 %v588_v40, %v123_v49  ;;  %v130_v62 = vmul.f32 %v589_v44, %v123_v49  ;;  %v131_v63 = vmul.f32 %v592_v45, %v123_v49 }
  0x25   :  { %v145_v0 = vrot.slane %v86_v56, %v122_v30  ;;  %v132_v1 = vmul.f32 %v593_v46, %v123_v49  ;;  %v133_v2 = vmul.f32 %v596_v47, %v123_v49  ;;  %v134_v3 = vmul.f32 %v597_v50, %v123_v49 }
  0x26   :  { %v135_v4 = vmul.f32 %v600_v51, %v123_v49  ;;  %v136_v5 = vmul.f32 %v601_v52, %v123_v49  ;;  %v137_v6 = vmul.f32 %v604_v53, %v123_v49  ;;  %v138_v7 = vmul.f32 %v605_v54, %v123_v49 }
  0x27   :  { %v147_v8 = vadd.f32 %v145_v0, %v125_v57  ;;  %v148_v9 = vadd.f32 %v145_v0, %v126_v58  ;;  %v149_v10 = vadd.f32 %v145_v0, %v127_v59  ;;  %v150_v11 = vadd.f32 %v145_v0, %v128_v60 }
  0x28   :  { %v151_v12 = vadd.f32 %v145_v0, %v129_v61  ;;  %v152_v13 = vadd.f32 %v145_v0, %v130_v62  ;;  %v153_v14 = vadd.f32 %v145_v0, %v131_v63  ;;  %v154_v15 = vadd.f32 %v145_v0, %v132_v1 }
  0x29   :  { %v163_v16 = vmax.f32 %v147_v8, 0.0  ;;  %v164_v17 = vmax.f32 %v148_v9, 0.0  ;;  %v165_v18 = vmax.f32 %v149_v10, 0.0  ;;  %v166_v19 = vmax.f32 %v150_v11, 0.0 }
  0x2a   :  { %v167_v20 = vmax.f32 %v151_v12, 0.0  ;;  %v168_v21 = vmax.f32 %v152_v13, 0.0  ;;  %v169_v22 = vmax.f32 %v153_v14, 0.0  ;;  %v155_v26 = vadd.f32 %v145_v0, %v133_v2 }
  0x2b   :  { %v179_v24 = vpack.c.bf16 %v164_v17, %v163_v16  ;;  %v180_v25 = vpack.c.bf16 %v166_v19, %v165_v18  ;;  %v156_v27 = vadd.f32 %v145_v0, %v134_v3  ;;  %v170_v29 = vmax.f32 %v154_v15, 0.0 }
  0x2c   :  { %v181_v28 = vpack.c.bf16 %v168_v21, %v167_v20  ;;  %v157_v30 = vadd.f32 %v145_v0, %v135_v4  ;;  %v158_v31 = vadd.f32 %v145_v0, %v136_v5  ;;  %v171_v32 = vmax.f32 %v155_v26, 0.0 }
  0x2d   :  { %696 = vmatprep.mubr.bf16.mxu0 %v179_v24  ;;  %v172_v33 = vmax.f32 %v156_v27, 0.0  ;;  %v159_v34 = vadd.f32 %v145_v0, %v137_v6  ;;  %v160_v35 = vadd.f32 %v145_v0, %v138_v7  ;;  %v139_v38 = vmul.f32 %v608_v55, %v123_v49 }
  0x2e   :  { %697 = vmatmul.mubr.bf16.vlgmr.msra.gmra.mxu0 %v180_v25  ;;  %v173_v36 = vmax.f32 %v157_v30, 0.0  ;;  %v174_v37 = vmax.f32 %v158_v31, 0.0  ;;  %v140_v39 = vmul.f32 %v609_v23, %v123_v49  ;;  %v182_v47 = vpack.c.bf16 %v170_v29, %v169_v22 }
  0x2f   :  { %700 = vmatprep.mubr.bf16.mxu0 %v181_v28  ;;  %v183_v40 = vpack.c.bf16 %v172_v33, %v171_v32  ;;  %v175_v41 = vmax.f32 %v159_v34, 0.0  ;;  %v176_v42 = vmax.f32 %v160_v35, 0.0  ;;  %v161_v44 = vadd.f32 %v145_v0, %v139_v38 }
  0x30   :  { %v184_v43 = vpack.c.bf16 %v174_v37, %v173_v36  ;;  %v162_v45 = vadd.f32 %v145_v0, %v140_v39  ;;  %v739_v52 = vmov 0.0  }
  0x31   :  { %704 = vmatprep.mubr.bf16.mxu1 %v183_v40  ;;  %v185_v46 = vpack.c.bf16 %v176_v42, %v175_v41  ;;  %v177_v48 = vmax.f32 %v161_v44, 0.0  ;;  %432 = vst [vmem:[%s903_s7] sm:$0x1] %v739_v52  ;;  %433 = vst [vmem:[%s904_s8] sm:$0x1] %v739_v52 }
  0x32   :  { %705 = vmatmul.mubr.bf16.vlgmr.msra.gmra.mxu1 %v184_v43  ;;  %v178_v50 = vmax.f32 %v162_v45, 0.0 }
  0x33   :  { %708 = vmatprep.mubr.bf16.mxu1 %v185_v46 }
  0x34   :  { %v186_v51 = vpack.c.bf16 %v178_v50, %v177_v48 }
  0x36   :  { %701 = vmatmul.mubr.bf16.gmra.mxu0 %v182_v47 }
  0x3a   :  { %709 = vmatmul.mubr.bf16.gmra.mxu1 %v186_v51 }
  0xee   :  { %v698_v49 = vpop.f32.mrf.mxu0 }
  0xef   :  { %v461_v1 = vmul.f32 %v698_v49, %v698_v49 }
  0xf0   :  { %v285_v53 = vpop.f32.mrf.mxu0 }
  0xf1   :  { %v459_v59 = vmul.f32 %v285_v53, %v285_v53 }
  0xf2   :  { %v699_v54 = vpop.f32.mrf.mxu0  ;;  %v706_v55 = vpop.f32.mrf.mxu1 }
  0xf3   :  { %v618_v56 = vpack.c.bf16 %v699_v54, %v698_v49  ;;  %v462_v7 = vmul.f32 %v699_v54, %v699_v54  ;;  %v469_v39 = vmul.f32 %v706_v55, %v706_v55 }
  0xf4   :  { %v288_v57 = vpop.f32.mrf.mxu0  ;;  %v317_v58 = vpop.f32.mrf.mxu1 }
  0xf5   :  { %657 = vst [vmem:[%s905_s6 + $0x8] sm:$0xff] %v618_v56   ;;  %v613_v60 = vpack.c.bf16 %v288_v57, %v285_v53  ;;  %v435_v61 = vadd.f32 %v288_v57, %v285_v53  ;;  %v460_v62 = vmul.f32 %v288_v57, %v288_v57  ;;  %v467_v33 = vmul.f32 %v317_v58, %v317_v58 }
  0xf6   :  { %v702_v63 = vpop.f32.mrf.mxu0  ;;  %v707_v0 = vpop.f32.mrf.mxu1 }
  0xf7   :  { %614 = vst [vmem:[%s905_s6] sm:$0xff] %v613_v60   ;;  %v436_v2 = vadd.f32 %v698_v49, %v435_v61  ;;  %v475_v3 = vadd.f32 %v460_v62, %v459_v59  ;;  %v638_v4 = vpack.c.bf16 %v707_v0, %v706_v55  ;;  %v465_v24 = vmul.f32 %v702_v63, %v702_v63 }
  0xf8   :  { %v301_v5 = vpop.f32.mrf.mxu0  ;;  %v320_v6 = vpop.f32.mrf.mxu1  ;;  %v470_v42 = vmul.f32 %v707_v0, %v707_v0 }
  0xf9   :  { %v476_v8 = vadd.f32 %v475_v3, %v461_v1  ;;  %v437_v9 = vadd.f32 %v699_v54, %v436_v2  ;;  %661 = vst [vmem:[%s905_s6 + $0x28] sm:$0xff] %v638_v4   ;;  %v633_v10 = vpack.c.bf16 %v320_v6, %v317_v58  ;;  %v463_v14 = vmul.f32 %v301_v5, %v301_v5  ;;  %v434_v3 = vld [vmem:[%s903_s7] sm:$0x1] }
  0xfa   :  { %v703_v11 = vpop.f32.mrf.mxu0  ;;  %v710_v12 = vpop.f32.mrf.mxu1  ;;  %v468_v37 = vmul.f32 %v320_v6, %v320_v6 }
  0xfb   :  { %v438_v13 = vadd.f32 %v437_v9, %v301_v5  ;;  %v477_v15 = vadd.f32 %v476_v8, %v462_v7  ;;  %v628_v16 = vpack.c.bf16 %v703_v11, %v702_v63  ;;  %660 = vst [vmem:[%s905_s6 + $0x20] sm:$0xff] %v633_v10   ;;  %v466_v29 = vmul.f32 %v703_v11, %v703_v11 }
  0xfc   :  { %v304_v17 = vpop.f32.mrf.mxu0  ;;  %v333_v18 = vpop.f32.mrf.mxu1  ;;  %v473_v52 = vmul.f32 %v710_v12, %v710_v12 }
  0xfd   :  { %v478_v19 = vadd.f32 %v477_v15, %v463_v14  ;;  %659 = vst [vmem:[%s905_s6 + $0x18] sm:$0xff] %v628_v16   ;;  %v623_v20 = vpack.c.bf16 %v304_v17, %v301_v5  ;;  %v439_v21 = vadd.f32 %v438_v13, %v304_v17  ;;  %v464_v22 = vmul.f32 %v304_v17, %v304_v17 }
  0xfe   :  { %v711_v23 = vpop.f32.mrf.mxu1  ;;  %v471_v46 = vmul.f32 %v333_v18, %v333_v18 }
  0xff   :  { %658 = vst [vmem:[%s905_s6 + $0x10] sm:$0xff] %v623_v20   ;;  %v440_v25 = vadd.f32 %v702_v63, %v439_v21  ;;  %v479_v26 = vadd.f32 %v478_v19, %v464_v22  ;;  %v648_v27 = vpack.c.bf16 %v711_v23, %v710_v12  ;;  %v474_v54 = vmul.f32 %v711_v23, %v711_v23 }
 0x100   :  { %v336_v28 = vpop.f32.mrf.mxu1 }
 0x101   :  { %v441_v30 = vadd.f32 %v703_v11, %v440_v25  ;;  %v480_v31 = vadd.f32 %v479_v26, %v465_v24  ;;  %663 = vst [vmem:[%s905_s6 + $0x38] sm:$0xff] %v648_v27   ;;  %v643_v32 = vpack.c.bf16 %v336_v28, %v333_v18  ;;  %v472_v51 = vmul.f32 %v336_v28, %v336_v28 }
 0x103   :  { %v481_v34 = vadd.f32 %v480_v31, %v466_v29  ;;  %v442_v35 = vadd.f32 %v441_v30, %v317_v58  ;;  %662 = vst [vmem:[%s905_s6 + $0x30] sm:$0xff] %v643_v32  }
 0x105   :  { %v443_v36 = vadd.f32 %v442_v35, %v320_v6  ;;  %v482_v38 = vadd.f32 %v481_v34, %v467_v33  ;;  %v458_v6 = vld [vmem:[%s904_s8] sm:$0x1] }
 0x107   :  { %v444_v40 = vadd.f32 %v706_v55, %v443_v36  ;;  %v483_v41 = vadd.f32 %v482_v38, %v468_v37 }
 0x109   :  { %v484_v43 = vadd.f32 %v483_v41, %v469_v39  ;;  %v445_v44 = vadd.f32 %v707_v0, %v444_v40 }
 0x10b   :  { %v446_v45 = vadd.f32 %v445_v44, %v333_v18  ;;  %v485_v47 = vadd.f32 %v484_v43, %v470_v42 }
 0x10d   :  { %v486_v48 = vadd.f32 %v485_v47, %v471_v46  ;;  %v447_v50 = vadd.f32 %v446_v45, %v336_v28 }
 0x10f   :  { %v448_v49 = vadd.f32 %v710_v12, %v447_v50  ;;  %v487_v53 = vadd.f32 %v486_v48, %v472_v51 }
 0x111   :  { %v449_v56 = vadd.f32 %v711_v23, %v448_v49  ;;  %v488_v57 = vadd.f32 %v487_v53, %v473_v52 }
 0x113   :  { %v450_v58 = vrot.slane %v449_v56, 4  ;;  %v489_v59 = vadd.f32 %v488_v57, %v474_v54 }
 0x115   :  { %v451_v60 = vadd.f32 %v450_v58, %v449_v56  ;;  %v490_v55 = vrot.slane %v489_v59, 4 }
 0x117   :  { %v452_v61 = vrot.slane %v451_v60, 2  ;;  %v491_v62 = vadd.f32 %v490_v55, %v489_v59 }
 0x119   :  { %v453_v63 = vadd.f32 %v452_v61, %v451_v60  ;;  %v492_v0 = vrot.slane %v491_v62, 2 }
 0x11b   :  { %v454_v1 = vrot.slane %v453_v63, 1  ;;  %v493_v2 = vadd.f32 %v492_v0, %v491_v62 }
 0x11d   :  { %v455_v4 = vadd.f32 %v454_v1, %v453_v63  ;;  %v494_v5 = vrot.slane %v493_v2, 1 }
 0x11f   :  { %v456_v7 = vadd.f32 %v455_v4, %v434_v3  ;;  %v495_v8 = vadd.f32 %v494_v5, %v493_v2 }
 0x121   :  { %457 = vst [vmem:[%s903_s7] sm:$0x1] %v456_v7  ;;  %v496_v9 = vadd.f32 %v495_v8, %v458_v6 }
 0x123   :  { %497 = vst [vmem:[%s904_s8] sm:$0x1] %v496_v9 }

// kernel: bottleneck_forward.7
= control target key start
LH: loop header
LB: loop body
LE: loop exit
PB: predicated region body
PF: predicated region fallthrough
CT: control target
= control target key end

     0   :  { %s3088_s15 = smov 0   ;;  %s3090_s16 = smov 0   ;;  %s3535_s0 = inlined_call_operand.vmem [shape: bf16[2,9,9,512], index: 0, kind: input, shape index: {}]   ;;  %s3536_s1 = inlined_call_operand.vmem [shape: bf16[9,128,128], index: 1, kind: input, shape index: {}]   ;;  %s3537_s2 = inlined_call_operand.vmem [shape: bf16[2,8,8,128], index: 2, kind: output, shape index: {0}]   ;;  %s3538_s3 = inlined_call_operand.vmem [shape: f32[2,1,128], index: 3, kind: output, shape index: {1}]   ;;  %s3539_s4 = inlined_call_operand.vmem [shape: f32[2,1,128], index: 4, kind: output, shape index: {2}]  }
   0x1   :  { %s3092_s17 = smov 0  }
   0x2 LB: > { %s27_s18 = sadd.s32 1, %s3056_s16  ;;  %p2302_p0 = scmp.ge.s32.totalorder %s3060_s17, 1  ;;  %s3060_s17 = sphi %s3092_s17, %s15_s17   ;;  %s3056_s16 = sphi %s3090_s16, %s3551_s16   ;;  %s3052_s15 = sphi %s3088_s15, %s3550_s15  }
   0x3   : > { %p29_p1 = scmp.ge.s32.totalorder %s27_s18, 2  ;;  %p181_p2 = scmp.lt.s32.totalorder %s3060_s17, 3 }
   0x5   : > { %s3553_s18 = smov (%p29_p1, %s27_s18), 0  ;;  %p182_p3 = pnand %p2302_p0, %p181_p2 }
   0x7   : > { %185 = sbr.rel (%p182_p3) target bundleno = 405 (0x195), region = 28 }
   0xc   : > { %v2966_v0 = vld [vmem:[%s3536_s1 + $0x78] sm:$0xff]   ;;  %p217_p4 = scmp.lt.s32.totalorder %s3052_s15, 1  ;;  %v2968_v2 = vld [vmem:[%s3536_s1 + $0x70] sm:$0xff]   ;;  %v2970_v4 = vld [vmem:[%s3536_s1 + $0x68] sm:$0xff]   ;;  %vm582_vm0 = vsmask.f32 3328 }
   0xd   : > { %v2967_v1 = vld [vmem:[%s3536_s1 + $0x38] sm:$0xff]   ;;  %2708 = vmatprep.subr.bf16.mxu0 %v2966_v0  ;;  %v2969_v3 = vld [vmem:[%s3536_s1 + $0x30] sm:$0xff]   ;;  %v2971_v5 = vld [vmem:[%s3536_s1 + $0x28] sm:$0xff]   ;;  %vm583_vm1 = vsmask.f32 7440 }
   0xe   : > { %2732 = vmatprep.subr.bf16.mxu1 %v2967_v1  ;;  %2709 = vmatpush3.bf16.msra.mxu0 %v2966_v0  ;;  %s3555_s15 = smov (!%p217_p4, %s3052_s15), 1  ;;  %v2972_v6 = vld [vmem:[%s3536_s1 + $0x60] sm:$0xff]   ;;  %v2974_v8 = vld [vmem:[%s3536_s1 + $0x58] sm:$0xff]   ;;  %v2976_v10 = vld [vmem:[%s3536_s1 + $0x50] sm:$0xff]  }
   0xf   : > { %2733 = vmatpush3.bf16.msra.mxu1 %v2967_v1  ;;  %2710 = vmatprep.subr.bf16.mxu0 %v2968_v2  ;;  %v2973_v7 = vld [vmem:[%s3536_s1 + $0x20] sm:$0xff]   ;;  %s2940_s9 = smul.u32 288, %s3555_s15  ;;  %v2975_v9 = vld [vmem:[%s3536_s1 + $0x18] sm:$0xff]   ;;  %v2977_v14 = vld [vmem:[%s3536_s1 + $0x10] sm:$0xff]   ;;  %s3496_s19 = scalar_lea.vmem %s3538_s3, %s3555_s15 }
  0x10   : > { %2734 = vmatprep.subr.bf16.mxu1 %v2969_v3  ;;  %v2978_v18 = vld [vmem:[%s3536_s1 + $0x48] sm:$0xff]   ;;  %v2980_v20 = vld [vmem:[%s3536_s1 + $0x40] sm:$0xff]   ;;  %v2982_v26 = vld [vmem:[%s3536_s1 + $0xb8] sm:$0xff]   ;;  %s3502_s23 = scalar_lea.vmem %s3539_s4, %s3555_s15  ;;  %s2576_s24 = sshll.u32 %s3555_s15, 5 }
  0x11   : > { %s3142_s20 = scalar_lea.vmem %s3535_s0, %s2940_s9  ;;  %v2979_v19 = vld [vmem:[%s3536_s1 + $0x8] sm:$0xff]   ;;  %v2981_v21 = vld [vmem:[%s3536_s1] sm:$0xff]   ;;  %v2983_v27 = vld [vmem:[%s3536_s1 + $0xf8] sm:$0xff]   ;;  %s230_s27 = scalar_lea.vmem %s3537_s2, %s2576_s24 }
  0x12   : > { %2711 = vmatpush3.bf16.msra.mxu0 %v2968_v2  ;;  %v267_v11 = vld [vmem:[%s3142_s20 + $0x4] sm:$0xf]  ;;  %v243_v13 = vld [vmem:[%s3142_s20] sm:$0xf]  ;;  %v2984_v29 = vld [vmem:[%s3536_s1 + $0xb0] sm:$0xff]  }
  0x13   : > { %2735 = vmatpush3.bf16.msra.mxu1 %v2969_v3  ;;  %2712 = vmatprep.subr.bf16.mxu0 %v2970_v4  ;;  %v268_v12 = vld [vmem:[%s3142_s20 + $0x24] sm:$0xf]  ;;  %v244_v16 = vld [vmem:[%s3142_s20 + $0x20] sm:$0xf]  ;;  %v2985_v35 = vld [vmem:[%s3536_s1 + $0xf0] sm:$0xff]  }
  0x14   : > { %2736 = vmatprep.subr.bf16.mxu1 %v2971_v5  ;;  %v2322_v15 = vcombine.low %v267_v11, %v268_v12  ;;  %v2334_v17 = vcombine.low %v243_v13, %v244_v16  ;;  %v269_v22 = vld [vmem:[%s3142_s20 + $0x44] sm:$0xf]  ;;  %v245_v24 = vld [vmem:[%s3142_s20 + $0x40] sm:$0xf]  ;;  %v2986_v42 = vld [vmem:[%s3536_s1 + $0xa8] sm:$0xff]  }
  0x15   : > { %v270_v23 = vld [vmem:[%s3142_s20 + $0x64] sm:$0xf]  ;;  %v246_v25 = vld [vmem:[%s3142_s20 + $0x60] sm:$0xf]  ;;  %v2987_v43 = vld [vmem:[%s3536_s1 + $0xe8] sm:$0xff]  }
  0x16   : > { %2713 = vmatpush3.bf16.msra.mxu0 %v2970_v4  ;;  %2724 = vmatprep.mubr.bf16.mxu0 %v2322_v15  ;;  %v2323_v28 = vcombine.low %v269_v22, %v270_v23  ;;  %v271_v30 = vld [vmem:[%s3142_s20 + $0x84] sm:$0xf]  ;;  %v247_v32 = vld [vmem:[%s3142_s20 + $0x80] sm:$0xf]  ;;  %v2335_v33 = vcombine.low %v245_v24, %v246_v25  ;;  %v567_v45 = vld [vmem:[%s3142_s20 + $0x10] sm:$0x1] }
  0x17   : > { %2737 = vmatpush3.bf16.msra.mxu1 %v2971_v5  ;;  %2714 = vmatprep.subr.bf16.mxu0 %v2972_v6  ;;  %v272_v31 = vld [vmem:[%s3142_s20 + $0xa4] sm:$0xf]  ;;  %v248_v34 = vld [vmem:[%s3142_s20 + $0xa0] sm:$0xf]  ;;  %v569_v49 = vld [vmem:[%s3142_s20 + $0x30] sm:$0x1] }
  0x18   : > { %2738 = vmatprep.subr.bf16.mxu1 %v2973_v7  ;;  %2748 = vmatprep.mubr.bf16.mxu1 %v2334_v17  ;;  %v2324_v36 = vcombine.low %v271_v30, %v272_v31  ;;  %v273_v37 = vld [vmem:[%s3142_s20 + $0xc4] sm:$0xf]  ;;  %v2336_v39 = vcombine.low %v247_v32, %v248_v34  ;;  %v249_v40 = vld [vmem:[%s3142_s20 + $0xc0] sm:$0xf]  ;;  %v595_v52 = vshll.u32 %v567_v45, 16  ;;  %v609_v56 = vshll.u32 %v569_v49, 16  ;;  %vm3214_vm2 = vmor %vm582_vm0, %vm583_vm1 }
  0x19   : > { %v274_v38 = vld [vmem:[%s3142_s20 + $0xe4] sm:$0xf]  ;;  %v250_v41 = vld [vmem:[%s3142_s20 + $0xe0] sm:$0xf]  ;;  %v571_v61 = vld [vmem:[%s3142_s20 + $0x50] sm:$0x1] }
  0x1a   : > { %2715 = vmatpush3.bf16.msra.mxu0 %v2972_v6  ;;  %v566_v44 = vld [vmem:[%s3142_s20] sm:$0xf]  ;;  %v2325_v46 = vcombine.low %v273_v37, %v274_v38  ;;  %v2337_v47 = vcombine.low %v249_v40, %v250_v41  ;;  %v597_v63 = vrot.slane %v595_v52, 5  ;;  %v611_v5 = vrot.slane %v609_v56, 5  ;;  %v2991_v15 = vld [vmem:[%s3536_s1 + $0xd8] sm:$0xff]   ;;  %v2992_v25 = vld [vmem:[%s3536_s1 + $0x90] sm:$0xff]  }
  0x1b   : > { %2739 = vmatpush3.bf16.msra.mxu1 %v2973_v7  ;;  %2716 = vmatprep.subr.bf16.mxu0 %v2974_v8  ;;  %v568_v48 = vld [vmem:[%s3142_s20 + $0x20] sm:$0xf]  ;;  %v586_v50 = vshrl.u32 %v566_v44, 16  ;;  %v589_v51 = vshll.u32 %v566_v44, 16  ;;  %v623_v12 = vshll.u32 %v571_v61, 16  ;;  %v2994_v37 = vld [vmem:[%s3536_s1 + $0x88] sm:$0xff]  }
  0x1c   : > { %2740 = vmatprep.subr.bf16.mxu1 %v2975_v9  ;;  %v2988_v53 = vld [vmem:[%s3536_s1 + $0xa0] sm:$0xff]   ;;  %v600_v54 = vshrl.u32 %v568_v48, 16  ;;  %v603_v55 = vshll.u32 %v568_v48, 16  ;;  %v573_v17 = vld [vmem:[%s3142_s20 + $0x70] sm:$0x1] }
  0x1d   : > { %v570_v57 = vld [vmem:[%s3142_s20 + $0x40] sm:$0xf]  ;;  %v588_v59 = vrot.slane %v586_v50, 4  ;;  %v591_v60 = vrot.slane %v589_v51, 5  ;;  %v637_v30 = vshll.u32 %v573_v17, 16 }
  0x1e   : > { %2717 = vmatpush3.bf16.msra.mxu0 %v2974_v8  ;;  %v2989_v58 = vld [vmem:[%s3536_s1 + $0xe0] sm:$0xff]   ;;  %v614_v62 = vshrl.u32 %v570_v57, 16  ;;  %v602_v0 = vrot.slane %v600_v54, 4  ;;  %v605_v1 = vrot.slane %v603_v55, 5  ;;  %v617_v3 = vshll.u32 %v570_v57, 16  ;;  %v2990_v8 = vld [vmem:[%s3536_s1 + $0x98] sm:$0xff]  }
  0x1f   : > { %2741 = vmatpush3.bf16.msra.mxu1 %v2975_v9  ;;  %2718 = vmatprep.subr.bf16.mxu0 %v2976_v10  ;;  %v572_v2 = vld [vmem:[%s3142_s20 + $0x60] sm:$0xf]  ;;  %v592_v4 = vor.u32 %v591_v60, %v588_v59  ;;  %v575_v34 = vld [vmem:[%s3142_s20 + $0x90] sm:$0x1]  ;;  %v639_v38 = vrot.slane %v637_v30, 5 }
  0x20   : > { %2742 = vmatprep.subr.bf16.mxu1 %v2977_v14  ;;  %v616_v6 = vrot.slane %v614_v62, 4  ;;  %v628_v7 = vshrl.u32 %v572_v2, 16  ;;  %v619_v11 = vrot.slane %v617_v3, 5  ;;  %v631_v13 = vshll.u32 %v572_v2, 16  ;;  %v574_v32 = vld [vmem:[%s3142_s20 + $0x80] sm:$0xf] }
  0x21   : > { %v593_v16 = vrot.slane %v592_v4, 4  ;;  %v645_v40 = vshll.u32 %v574_v32, 16  ;;  %v578_v41 = vld [vmem:[%s3142_s20 + $0xc0] sm:$0xf]  ;;  %v651_v44 = vshll.u32 %v575_v34, 16 }
  0x22   : > { %2719 = vmatpush3.bf16.msra.mxu0 %v2976_v10  ;;  %v606_v10 = vor.u32 %v605_v1, %v602_v0  ;;  %v633_v22 = vrot.slane %v631_v13, 5  ;;  %v580_v51 = vld [vmem:[%s3142_s20 + $0xe0] sm:$0xf]  ;;  %v670_v52 = vshrl.u32 %v578_v41, 16  ;;  %v581_v56 = vld [vmem:[%s3142_s20 + $0xf0] sm:$0x1] }
  0x23   : > { %2743 = vmatpush3.bf16.msra.mxu1 %v2977_v14  ;;  %2720 = vmatprep.subr.bf16.mxu0 %v2978_v18  ;;  %v851_v14 = vld [vmem:[%s3142_s20 + $0x8] sm:$0xf]  ;;  %v598_v23 = vsel %vm3214_vm2, %v593_v16, %v597_v63  ;;  %v647_v49 = vrot.slane %v645_v40, 5  ;;  %v673_v57 = vshll.u32 %v578_v41, 16  ;;  %v684_v62 = vshrl.u32 %v580_v51, 16  ;;  %v2997_v63 = vld [vmem:[%s3536_s1 + $0xc0] sm:$0xff]  }
  0x24   : > { %2744 = vmatprep.subr.bf16.mxu1 %v2979_v19  ;;  %v672_v60 = vrot.slane %v670_v52, 4  ;;  %v687_v2 = vshll.u32 %v580_v51, 16  ;;  %v693_v3 = vshll.u32 %v581_v56, 16  ;;  %v854_v16 = vld [vmem:[%s3142_s20 + $0x68] sm:$0xf] }
  0x25   : > { %v675_v1 = vrot.slane %v673_v57, 5 }
  0x26   : > { %2721 = vmatpush3.bf16.msra.mxu0 %v2978_v18  ;;  %v852_v18 = vld [vmem:[%s3142_s20 + $0x28] sm:$0xf] }
  0x27   : > { %2745 = vmatpush3.bf16.msra.mxu1 %v2979_v19  ;;  %2722 = vmatprep.subr.bf16.mxu0 %v2980_v20  ;;  %v607_v19 = vrot.slane %v606_v10, 4  ;;  %v2390_v24 = vcombine.low %v851_v14, %v852_v18  ;;  %v2998_v10 = vld [vmem:[%s3536_s1 + $0x138] sm:$0xff]   ;;  %v676_v13 = vor.u32 %v675_v1, %v672_v60  ;;  %v689_v14 = vrot.slane %v687_v2, 5 }
  0x28   : > { %2746 = vmatprep.subr.bf16.mxu1 %v2981_v21  ;;  %v695_v18 = vrot.slane %v693_v3, 5  ;;  %v1196_v2 = vld [vmem:[%s3142_s20 + $0x58] sm:$0x1] }
  0x29   : > { %v1198_v3 = vld [vmem:[%s3142_s20 + $0x78] sm:$0x1] }
  0x2a   : > { %2723 = vmatpush3.bf16.msra.mxu0 %v2980_v20  ;;  %v620_v20 = vor.u32 %v619_v11, %v616_v6  ;;  %v2999_v11 = vld [vmem:[%s3536_s1 + $0x178] sm:$0xff]  }
  0x2b   : > { %2747 = vmatpush3.bf16.msra.mxu1 %v2981_v21  ;;  %2756 = vmatprep.subr.bf16.mxu0 %v2982_v26  ;;  %v630_v21 = vrot.slane %v628_v7, 4  ;;  %v686_v7 = vrot.slane %v684_v62, 4 }
  0x2c   : > { %2780 = vmatprep.subr.bf16.mxu1 %v2983_v27 }
  0x2d   : > { %2725 = vmatmul.mubr.bf16.vlgmr.msra.gmra.mxu0 %v2323_v28  ;;  %v3234_v28 = vrot.slane %v620_v20, 4  ;;  %v855_v20 = vld [vmem:[%s3142_s20 + $0x88] sm:$0xf] }
  0x2e   : > { %2749 = vmatmul.mubr.bf16.vlgmr.msra.gmra.mxu1 %v2335_v33  ;;  %2757 = vmatpush3.bf16.msra.mxu0 %v2982_v26  ;;  %v2993_v26 = vld [vmem:[%s3536_s1 + $0xd0] sm:$0xff]   ;;  %v634_v33 = vor.u32 %v633_v22, %v630_v21  ;;  %v856_v21 = vld [vmem:[%s3142_s20 + $0xa8] sm:$0xf] }
  0x2f   : > { %2781 = vmatpush3.bf16.msra.mxu1 %v2983_v27  ;;  %2758 = vmatprep.subr.bf16.mxu0 %v2984_v29  ;;  %v612_v27 = vsel %vm3214_vm2, %v607_v19, %v611_v5  ;;  %v653_v5 = vrot.slane %v651_v44, 5  ;;  %v690_v19 = vor.u32 %v689_v14, %v686_v7  ;;  %v1192_v44 = vld [vmem:[%s3142_s20 + $0x18] sm:$0x1] }
  0x30   : > { %2782 = vmatprep.subr.bf16.mxu1 %v2985_v35  ;;  %2728 = vmatprep.mubr.bf16.mxu0 %v2324_v36  ;;  %v2362_v31 = vcombine.low %v598_v23, %v612_v27  ;;  %v577_v36 = vld [vmem:[%s3142_s20 + $0xb0] sm:$0x1] }
  0x31   : > { %2752 = vmatprep.mubr.bf16.mxu1 %v2336_v39  ;;  %v642_v39 = vshrl.u32 %v574_v32, 16  ;;  %v665_v50 = vshll.u32 %v577_v36, 16  ;;  %v3000_v23 = vld [vmem:[%s3536_s1 + $0x130] sm:$0xff]   ;;  %v858_v32 = vld [vmem:[%s3142_s20 + $0xe8] sm:$0xf] }
  0x32   : > { %2759 = vmatpush3.bf16.msra.mxu0 %v2984_v29  ;;  %v3236_v29 = vrot.slane %v623_v12, 5  ;;  %v3001_v27 = vld [vmem:[%s3536_s1 + $0x170] sm:$0xff]   ;;  %v3002_v36 = vld [vmem:[%s3536_s1 + $0x128] sm:$0xff]  }
  0x33   : > { %2783 = vmatpush3.bf16.msra.mxu1 %v2985_v35  ;;  %2760 = vmatprep.subr.bf16.mxu0 %v2986_v42  ;;  %v576_v35 = vld [vmem:[%s3142_s20 + $0xa0] sm:$0xf]  ;;  %v644_v48 = vrot.slane %v642_v39, 4  ;;  %v667_v6 = vrot.slane %v665_v50, 5  ;;  %v1022_v39 = vld [vmem:[%s3142_s20 + $0x2c] sm:$0xf] }
  0x34   : > { %2784 = vmatprep.subr.bf16.mxu1 %v2987_v43  ;;  %v656_v45 = vshrl.u32 %v576_v35, 16 }
  0x35   : > { %2729 = vmatmul.mubr.bf16.gmra.mxu0 %v2325_v46  ;;  %v659_v46 = vshll.u32 %v576_v35, 16  ;;  %v648_v59 = vor.u32 %v647_v49, %v644_v48  ;;  %v1217_v49 = vshll.u32 %v1192_v44, 16 }
  0x36   : > { %2761 = vmatpush3.bf16.msra.mxu0 %v2986_v42  ;;  %2753 = vmatmul.mubr.bf16.gmra.mxu1 %v2337_v47  ;;  %v2995_v42 = vld [vmem:[%s3536_s1 + $0xc8] sm:$0xff]   ;;  %v579_v47 = vld [vmem:[%s3142_s20 + $0xd0] sm:$0x1]  ;;  %v658_v54 = vrot.slane %v656_v45, 4 }
  0x37   : > { %2785 = vmatpush3.bf16.msra.mxu1 %v2987_v43  ;;  %2762 = vmatprep.subr.bf16.mxu0 %v2988_v53  ;;  %v626_v43 = vsel %vm3214_vm2, %v3234_v28, %v3236_v29  ;;  %v661_v55 = vrot.slane %v659_v46, 5  ;;  %v679_v61 = vshll.u32 %v579_v47, 16  ;;  %v649_v4 = vrot.slane %v648_v59, 4  ;;  %v1193_v45 = vld [vmem:[%s3142_s20 + $0x28] sm:$0xf] }
  0x38   : > { %2786 = vmatprep.subr.bf16.mxu1 %v2989_v58  ;;  %2796 = vmatprep.mubr.bf16.mxu1 %v2390_v24  ;;  %v677_v28 = vrot.slane %v676_v13, 4  ;;  %v691_v29 = vrot.slane %v690_v19, 4  ;;  %v1194_v46 = vld [vmem:[%s3142_s20 + $0x38] sm:$0x1]  ;;  %v1222_v50 = vshrl.u32 %v1193_v45, 16  ;;  %v1225_v51 = vshll.u32 %v1193_v45, 16 }
  0x39   : > { %2772 = vmatprep.mubr.bf16.mxu0 %v2362_v31  ;;  %v662_v0 = vor.u32 %v661_v55, %v658_v54  ;;  %v681_v17 = vrot.slane %v679_v61, 5  ;;  %v654_v24 = vsel %vm3214_vm2, %v649_v4, %v653_v5  ;;  %v857_v31 = vld [vmem:[%s3142_s20 + $0xc8] sm:$0xf]  ;;  %v1231_v52 = vshll.u32 %v1194_v46, 16 }
  0x3a   : > { %2763 = vmatpush3.bf16.msra.mxu0 %v2988_v53  ;;  %v635_v53 = vrot.slane %v634_v33, 4  ;;  %v2392_v33 = vcombine.low %v855_v20, %v856_v21  ;;  %v696_v35 = vsel %vm3214_vm2, %v691_v29, %v695_v18  ;;  %v2393_v41 = vcombine.low %v857_v31, %v858_v32  ;;  %v3008_v18 = vld [vmem:[%s3536_s1 + $0x110] sm:$0xff]   ;;  %v1200_v29 = vld [vmem:[%s3142_s20 + $0x98] sm:$0x1]  ;;  %v3011_v32 = vld [vmem:[%s3536_s1 + $0x148] sm:$0xff]  }
  0x3b   : > { %2787 = vmatpush3.bf16.msra.mxu1 %v2989_v58  ;;  %2764 = vmatprep.subr.bf16.mxu0 %v2990_v8  ;;  %v2996_v58 = vld [vmem:[%s3536_s1 + $0x80] sm:$0xff]   ;;  %v663_v12 = vrot.slane %v662_v0, 4  ;;  %v682_v34 = vsel %vm3214_vm2, %v677_v28, %v681_v17  ;;  %v1224_v57 = vrot.slane %v1222_v50, 4  ;;  %v1227_v59 = vrot.slane %v1225_v51, 5  ;;  %v1197_v0 = vld [vmem:[%s3142_s20 + $0x68] sm:$0xf] }
  0x3c   : > { %2788 = vmatprep.subr.bf16.mxu1 %v2991_v15  ;;  %v2365_v40 = vcombine.low %v682_v34, %v696_v35  ;;  %v1219_v61 = vrot.slane %v1217_v49, 5  ;;  %v1233_v62 = vrot.slane %v1231_v52, 5  ;;  %v3009_v21 = vld [vmem:[%s3536_s1 + $0x150] sm:$0xff]   ;;  %v1199_v28 = vld [vmem:[%s3142_s20 + $0x88] sm:$0xf] }
  0x3d   : > { %v1228_v1 = vor.u32 %v1227_v59, %v1224_v57  ;;  %v1202_v31 = vld [vmem:[%s3142_s20 + $0xb8] sm:$0x1]  ;;  %v1264_v34 = vshrl.u32 %v1199_v28, 16  ;;  %v1267_v35 = vshll.u32 %v1199_v28, 16  ;;  %v1205_v45 = vld [vmem:[%s3142_s20 + $0xe8] sm:$0xf] }
  0x3e   : > { %2765 = vmatpush3.bf16.msra.mxu0 %v2990_v8  ;;  %v640_v8 = vsel %vm3214_vm2, %v635_v53, %v639_v38  ;;  %v1021_v38 = vld [vmem:[%s3142_s20 + $0xc] sm:$0xf]  ;;  %v3005_v53 = vld [vmem:[%s3536_s1 + $0x160] sm:$0xff]   ;;  %v1287_v44 = vshll.u32 %v1202_v31, 16  ;;  %v1206_v51 = vld [vmem:[%s3142_s20 + $0xf8] sm:$0x1] }
  0x3f   : > { %2789 = vmatpush3.bf16.msra.mxu1 %v2991_v15  ;;  %2766 = vmatprep.subr.bf16.mxu0 %v2992_v25  ;;  %v853_v15 = vld [vmem:[%s3142_s20 + $0x48] sm:$0xf]  ;;  %v2363_v22 = vcombine.low %v626_v43, %v640_v8  ;;  %v2418_v54 = vcombine.low %v1021_v38, %v1022_v39  ;;  %v1250_v8 = vshrl.u32 %v1197_v0, 16  ;;  %v1273_v38 = vshll.u32 %v1200_v29, 16 }
  0x40   : > { %2790 = vmatprep.subr.bf16.mxu1 %v2993_v26  ;;  %v1191_v43 = vld [vmem:[%s3142_s20 + $0x8] sm:$0xf]  ;;  %v1306_v59 = vshrl.u32 %v1205_v45, 16 }
  0x41   : > { %v1208_v47 = vshrl.u32 %v1191_v43, 16  ;;  %v1211_v48 = vshll.u32 %v1191_v43, 16  ;;  %v1269_v43 = vrot.slane %v1267_v35, 5  ;;  %v3018_v28 = vld [vmem:[%s3536_s1 + $0x1a8] sm:$0xff]   ;;  %v2494_v35 = vld [vmem:[%s3142_s20 + $0x24] sm:$0xf] }
  0x42   : > { %2767 = vmatpush3.bf16.msra.mxu0 %v2992_v25  ;;  %v668_v25 = vsel %vm3214_vm2, %v663_v12, %v667_v6  ;;  %v3007_v6 = vld [vmem:[%s3536_s1 + $0x158] sm:$0xff]   ;;  %v3019_v31 = vld [vmem:[%s3536_s1 + $0x1e8] sm:$0xff]  }
  0x43   : > { %2791 = vmatpush3.bf16.msra.mxu1 %v2993_v26  ;;  %2768 = vmatprep.subr.bf16.mxu0 %v2994_v37  ;;  %v2391_v26 = vcombine.low %v853_v15, %v854_v16  ;;  %v2364_v30 = vcombine.low %v654_v24, %v668_v25  ;;  %v1210_v55 = vrot.slane %v1208_v47, 4  ;;  %v1213_v56 = vrot.slane %v1211_v48, 5  ;;  %v3010_v24 = vld [vmem:[%s3536_s1 + $0x108] sm:$0xff]   ;;  %v3012_v47 = vld [vmem:[%s3536_s1 + $0x100] sm:$0xff]  }
  0x44   : > { %2792 = vmatprep.subr.bf16.mxu1 %v2995_v42  ;;  %v1245_v15 = vshll.u32 %v1196_v2, 16  ;;  %v1252_v16 = vrot.slane %v1250_v8, 4  ;;  %v1026_v8 = vld [vmem:[%s3142_s20 + $0xac] sm:$0xf] }
  0x45   : > { %v1214_v60 = vor.u32 %v1213_v56, %v1210_v55  ;;  %v1024_v55 = vld [vmem:[%s3142_s20 + $0x6c] sm:$0xf] }
  0x46   : > { %2769 = vmatpush3.bf16.msra.mxu0 %v2994_v37  ;;  %v3003_v37 = vld [vmem:[%s3536_s1 + $0x168] sm:$0xff]  }
  0x47   : > { %2793 = vmatpush3.bf16.msra.mxu1 %v2995_v42  ;;  %2770 = vmatprep.subr.bf16.mxu0 %v2996_v58  ;;  %v3004_v42 = vld [vmem:[%s3536_s1 + $0x120] sm:$0xff]   ;;  %v1215_v7 = vrot.slane %v1214_v60, 4  ;;  %v3014_v60 = vld [vmem:[%s3536_s1 + $0x1b8] sm:$0xff]  }
  0x48   : > { %2794 = vmatprep.subr.bf16.mxu1 %v2997_v63 }
  0x49   : > { %v1220_v14 = vsel %vm3214_vm2, %v1215_v7, %v1219_v61  ;;  %v1025_v7 = vld [vmem:[%s3142_s20 + $0x8c] sm:$0xf] }
  0x4a   : > { %2771 = vmatpush3.bf16.msra.mxu0 %v2996_v58  ;;  %v3006_v58 = vld [vmem:[%s3536_s1 + $0x118] sm:$0xff]  }
  0x4b   : > { %2795 = vmatpush3.bf16.msra.mxu1 %v2997_v63  ;;  %2804 = vmatprep.subr.bf16.mxu0 %v2998_v10  ;;  %v1195_v63 = vld [vmem:[%s3142_s20 + $0x48] sm:$0xf] }
  0x4c   : > { %2828 = vmatprep.subr.bf16.mxu1 %v2999_v11  ;;  %v1236_v4 = vshrl.u32 %v1195_v63, 16  ;;  %v1239_v5 = vshll.u32 %v1195_v63, 16  ;;  %v1309_v63 = vshll.u32 %v1205_v45, 16  ;;  %v3025_v45 = vld [vmem:[%s3536_s1 + $0x1d0] sm:$0xff]  }
  0x4d   : > { %2773 = vmatmul.mubr.bf16.vlgmr.msra.gmra.mxu0 %v2363_v22 }
  0x4e   : > { %2797 = vmatmul.mubr.bf16.vlgmr.msra.gmra.mxu1 %v2391_v26  ;;  %2805 = vmatpush3.bf16.msra.mxu0 %v2998_v10  ;;  %v1253_v10 = vshll.u32 %v1197_v0, 16  ;;  %v1238_v12 = vrot.slane %v1236_v4, 4  ;;  %v1241_v13 = vrot.slane %v1239_v5, 5  ;;  %v1315_v0 = vshll.u32 %v1206_v51, 16  ;;  %v3027_v51 = vld [vmem:[%s3536_s1 + $0x1c8] sm:$0xff]  }
  0x4f   : > { %2829 = vmatpush3.bf16.msra.mxu1 %v2999_v11  ;;  %2806 = vmatprep.subr.bf16.mxu0 %v3000_v23  ;;  %v1229_v11 = vrot.slane %v1228_v1, 4  ;;  %v3015_v1 = vld [vmem:[%s3536_s1 + $0x1f8] sm:$0xff]   ;;  %v1289_v4 = vrot.slane %v1287_v44, 5  ;;  %v1308_v5 = vrot.slane %v1306_v59, 4  ;;  %v3024_v44 = vld [vmem:[%s3536_s1 + $0x190] sm:$0xff]  }
  0x50   : > { %2830 = vmatprep.subr.bf16.mxu1 %v3001_v27  ;;  %2776 = vmatprep.mubr.bf16.mxu0 %v2364_v30  ;;  %v1255_v17 = vrot.slane %v1253_v10, 5  ;;  %v1242_v20 = vor.u32 %v1241_v13, %v1238_v12  ;;  %v1201_v30 = vld [vmem:[%s3142_s20 + $0xa8] sm:$0xf]  ;;  %v1311_v12 = vrot.slane %v1309_v63, 5  ;;  %v2461_v63 = vld [vmem:[%s3142_s20 + $0x80] sm:$0xf] }
  0x51   : > { %2800 = vmatprep.mubr.bf16.mxu1 %v2392_v33  ;;  %v1234_v19 = vsel %vm3214_vm2, %v1229_v11, %v1233_v62  ;;  %v1278_v39 = vshrl.u32 %v1201_v30, 16 }
  0x52   : > { %2807 = vmatpush3.bf16.msra.mxu0 %v3000_v23  ;;  %v2446_v22 = vcombine.low %v1220_v14, %v1234_v19  ;;  %v1259_v23 = vshll.u32 %v1198_v3, 16  ;;  %v1256_v25 = vor.u32 %v1255_v17, %v1252_v16  ;;  %v3331_v26 = vrot.slane %v1242_v20, 4  ;;  %v3016_v14 = vld [vmem:[%s3536_s1 + $0x1b0] sm:$0xff]  }
  0x53   : > { %2831 = vmatpush3.bf16.msra.mxu1 %v3001_v27  ;;  %2808 = vmatprep.subr.bf16.mxu0 %v3002_v36  ;;  %v3333_v27 = vrot.slane %v1245_v15, 5  ;;  %v1280_v49 = vrot.slane %v1278_v39, 4  ;;  %v1275_v3 = vrot.slane %v1273_v38, 5  ;;  %v1312_v16 = vor.u32 %v1311_v12, %v1308_v5  ;;  %v3017_v19 = vld [vmem:[%s3536_s1 + $0x1f0] sm:$0xff]   ;;  %v3020_v38 = vld [vmem:[%s3536_s1 + $0x1a0] sm:$0xff]  }
  0x54   : > { %2832 = vmatprep.subr.bf16.mxu1 %v3003_v37  ;;  %v1261_v33 = vrot.slane %v1259_v23, 5  ;;  %v1317_v17 = vrot.slane %v1315_v0, 5  ;;  %v3021_v39 = vld [vmem:[%s3536_s1 + $0x1e0] sm:$0xff]  }
  0x55   : > { %2777 = vmatmul.mubr.bf16.gmra.mxu0 %v2365_v40  ;;  %v1281_v40 = vshll.u32 %v1201_v30, 16  ;;  %v1248_v48 = vsel %vm3214_vm2, %v3331_v26, %v3333_v27  ;;  %v1313_v23 = vrot.slane %v1312_v16, 4  ;;  %v1027_v26 = vld [vmem:[%s3142_s20 + $0xcc] sm:$0xf]  ;;  %v2496_v0 = vld [vmem:[%s3142_s20 + $0x64] sm:$0xf] }
  0x56   : > { %2809 = vmatpush3.bf16.msra.mxu0 %v3002_v36  ;;  %2801 = vmatmul.mubr.bf16.gmra.mxu1 %v2393_v41  ;;  %v1203_v36 = vld [vmem:[%s3142_s20 + $0xc8] sm:$0xf]  ;;  %v1204_v41 = vld [vmem:[%s3142_s20 + $0xd8] sm:$0x1]  ;;  %v1028_v27 = vld [vmem:[%s3142_s20 + $0xec] sm:$0xf] }
  0x57   : > { %2833 = vmatpush3.bf16.msra.mxu1 %v3003_v37  ;;  %2810 = vmatprep.subr.bf16.mxu0 %v3004_v42  ;;  %v1257_v37 = vrot.slane %v1256_v25, 4  ;;  %v1292_v46 = vshrl.u32 %v1203_v36, 16  ;;  %v1283_v50 = vrot.slane %v1281_v40, 5  ;;  %v1295_v52 = vshll.u32 %v1203_v36, 16 }
  0x58   : > { %2834 = vmatprep.subr.bf16.mxu1 %v3005_v53  ;;  %2820 = vmatprep.mubr.bf16.mxu0 %v2418_v54  ;;  %v1023_v54 = vld [vmem:[%s3142_s20 + $0x4c] sm:$0xf]  ;;  %v1318_v30 = vsel %vm3214_vm2, %v1313_v23, %v1317_v17 }
  0x59   : > { %2844 = vmatprep.mubr.bf16.mxu1 %v2446_v22  ;;  %v1294_v57 = vrot.slane %v1292_v46, 4  ;;  %v1284_v61 = vor.u32 %v1283_v50, %v1280_v49  ;;  %v1297_v62 = vrot.slane %v1295_v52, 5  ;;  %v2419_v13 = vcombine.low %v1023_v54, %v1024_v55  ;;  %v2530_v46 = vld [vmem:[%s3142_s20 + $0x20] sm:$0xf] }
  0x5a   : > { %2811 = vmatpush3.bf16.msra.mxu0 %v3004_v42  ;;  %v1266_v42 = vrot.slane %v1264_v34, 4  ;;  %v2459_v34 = vld [vmem:[%s3142_s20 + $0x40] sm:$0xf]  ;;  %v1834_v52 = vshrl.u32 %v2530_v46, 16 }
  0x5b   : > { %2835 = vmatpush3.bf16.msra.mxu1 %v3005_v53  ;;  %2812 = vmatprep.subr.bf16.mxu0 %v3006_v58  ;;  %v3013_v53 = vld [vmem:[%s3536_s1 + $0x140] sm:$0xff]   ;;  %v1285_v10 = vrot.slane %v1284_v61, 4  ;;  %v1298_v11 = vor.u32 %v1297_v62, %v1294_v57 }
  0x5c   : > { %2836 = vmatprep.subr.bf16.mxu1 %v3007_v6  ;;  %v1270_v56 = vor.u32 %v1269_v43, %v1266_v42  ;;  %v3022_v42 = vld [vmem:[%s3536_s1 + $0x198] sm:$0xff]   ;;  %v2538_v49 = vld [vmem:[%s3142_s20 + $0xa0] sm:$0xf] }
  0x5d   : > { %v1299_v22 = vrot.slane %v1298_v11, 4  ;;  %v3023_v43 = vld [vmem:[%s3536_s1 + $0x1d8] sm:$0xff]   ;;  %v2540_v50 = vld [vmem:[%s3142_s20 + $0xc0] sm:$0xf]  ;;  %v1893_v57 = vshll.u32 %v2538_v49, 16 }
  0x5e   : > { %2813 = vmatpush3.bf16.msra.mxu0 %v3006_v58  ;;  %v1301_v58 = vshll.u32 %v1204_v41, 16  ;;  %v1271_v2 = vrot.slane %v1270_v56, 4  ;;  %v1890_v56 = vshrl.u32 %v2538_v49, 16  ;;  %v1907_v59 = vshll.u32 %v2540_v50, 16  ;;  %v3029_v61 = vld [vmem:[%s3536_s1 + $0x1c0] sm:$0xff]  }
  0x5f   : > { %2837 = vmatpush3.bf16.msra.mxu1 %v3007_v6  ;;  %2814 = vmatprep.subr.bf16.mxu0 %v3008_v18  ;;  %v1262_v6 = vsel %vm3214_vm2, %v1257_v37, %v1261_v33  ;;  %v2421_v33 = vcombine.low %v1027_v26, %v1028_v27  ;;  %v2495_v37 = vld [vmem:[%s3142_s20 + $0x44] sm:$0xf]  ;;  %v2460_v62 = vld [vmem:[%s3142_s20 + $0x60] sm:$0xf] }
  0x60   : > { %2838 = vmatprep.subr.bf16.mxu1 %v3009_v21  ;;  %v1303_v15 = vrot.slane %v1301_v58, 5  ;;  %v1276_v20 = vsel %vm3214_vm2, %v1271_v2, %v1275_v3  ;;  %v2518_v41 = vcombine.low %v2494_v35, %v2495_v37  ;;  %v1904_v58 = vshrl.u32 %v2540_v50, 16  ;;  %v2531_v2 = vld [vmem:[%s3142_s20 + $0x30] sm:$0x1] }
  0x61   : > { %v1836_v3 = vrot.slane %v1834_v52, 4  ;;  %v1909_v12 = vrot.slane %v1907_v59, 5  ;;  %v2483_v16 = vcombine.low %v2460_v62, %v2461_v63  ;;  %v1843_v23 = vshll.u32 %v2531_v2, 16  ;;  %v3033_v52 = vld [vmem:[%s3536_s1 + $0x220] sm:$0xff]   ;;  %v3034_v63 = vld [vmem:[%s3536_s1 + $0x218] sm:$0xff]  }
  0x62   : > { %2815 = vmatpush3.bf16.msra.mxu0 %v3008_v18  ;;  %v2447_v18 = vcombine.low %v1248_v48, %v1262_v6  ;;  %v1304_v29 = vsel %vm3214_vm2, %v1299_v22, %v1303_v15  ;;  %v3026_v48 = vld [vmem:[%s3536_s1 + $0x188] sm:$0xff]   ;;  %v1906_v11 = vrot.slane %v1904_v58, 4  ;;  %v2541_v15 = vld [vmem:[%s3142_s20 + $0xd0] sm:$0x1] }
  0x63   : > { %2839 = vmatpush3.bf16.msra.mxu1 %v3009_v21  ;;  %2816 = vmatprep.subr.bf16.mxu0 %v3010_v24  ;;  %v1290_v21 = vsel %vm3214_vm2, %v1285_v10, %v1289_v4  ;;  %v2449_v36 = vcombine.low %v1304_v29, %v1318_v30  ;;  %v1895_v10 = vrot.slane %v1893_v57, 5  ;;  %v1913_v29 = vshll.u32 %v2541_v15, 16  ;;  %v3031_v30 = vld [vmem:[%s3536_s1 + $0x230] sm:$0xff]   ;;  %v2544_v57 = vld [vmem:[%s3142_s20 + $0x100] sm:$0xf] }
  0x64   : > { %2840 = vmatprep.subr.bf16.mxu1 %v3011_v32  ;;  %v2448_v25 = vcombine.low %v1276_v20, %v1290_v21  ;;  %v2498_v20 = vld [vmem:[%s3142_s20 + $0xa4] sm:$0xf]  ;;  %v1845_v35 = vrot.slane %v1843_v23, 5  ;;  %v1932_v2 = vshrl.u32 %v2544_v57, 16 }
  0x65   : > { %v2499_v21 = vld [vmem:[%s3142_s20 + $0xc4] sm:$0xf] }
  0x66   : > { %2817 = vmatpush3.bf16.msra.mxu0 %v3010_v24  ;;  %v2420_v24 = vcombine.low %v1025_v7, %v1026_v8  ;;  %v2533_v7 = vld [vmem:[%s3142_s20 + $0x50] sm:$0x1]  ;;  %v1892_v8 = vrot.slane %v1890_v56, 4  ;;  %v2542_v56 = vld [vmem:[%s3142_s20 + $0xe0] sm:$0xf] }
  0x67   : > { %2841 = vmatpush3.bf16.msra.mxu1 %v3011_v32  ;;  %2818 = vmatprep.subr.bf16.mxu0 %v3012_v47  ;;  %v2458_v32 = vld [vmem:[%s3142_s20 + $0x20] sm:$0xf] }
  0x68   : > { %2842 = vmatprep.subr.bf16.mxu1 %v3013_v53  ;;  %v2482_v40 = vcombine.low %v2458_v32, %v2459_v34  ;;  %v1896_v26 = vor.u32 %v1895_v10, %v1892_v8  ;;  %v2520_v32 = vcombine.low %v2498_v20, %v2499_v21 }
  0x6a   : > { %2819 = vmatpush3.bf16.msra.mxu0 %v3012_v47  ;;  %v2532_v47 = vld [vmem:[%s3142_s20 + $0x40] sm:$0xf] }
  0x6b   : > { %2843 = vmatpush3.bf16.msra.mxu1 %v3013_v53  ;;  %2852 = vmatprep.subr.bf16.mxu0 %v3014_v60  ;;  %v1837_v53 = vshll.u32 %v2530_v46, 16  ;;  %v1848_v54 = vshrl.u32 %v2532_v47, 16  ;;  %v1851_v55 = vshll.u32 %v2532_v47, 16 }
  0x6c   : > { %2876 = vmatprep.subr.bf16.mxu1 %v3015_v1 }
  0x6d   : > { %2821 = vmatmul.mubr.bf16.vlgmr.msra.gmra.mxu0 %v2419_v13  ;;  %v1839_v4 = vrot.slane %v1837_v53, 5  ;;  %v1850_v5 = vrot.slane %v1848_v54, 4  ;;  %v1853_v6 = vrot.slane %v1851_v55, 5  ;;  %v3030_v13 = vld [vmem:[%s3536_s1 + $0x238] sm:$0xff]   ;;  %v2534_v53 = vld [vmem:[%s3142_s20 + $0x60] sm:$0xf] }
  0x6e   : > { %2845 = vmatmul.mubr.bf16.vlgmr.msra.gmra.mxu1 %v2447_v18  ;;  %2853 = vmatpush3.bf16.msra.mxu0 %v3014_v60  ;;  %v3028_v60 = vld [vmem:[%s3536_s1 + $0x180] sm:$0xff]   ;;  %v1862_v59 = vshrl.u32 %v2534_v53, 16 }
  0x6f   : > { %2877 = vmatpush3.bf16.msra.mxu1 %v3015_v1  ;;  %2854 = vmatprep.subr.bf16.mxu0 %v3016_v14  ;;  %v2497_v1 = vld [vmem:[%s3142_s20 + $0x84] sm:$0xf]  ;;  %v2462_v18 = vld [vmem:[%s3142_s20 + $0xa0] sm:$0xf]  ;;  %v1840_v22 = vor.u32 %v1839_v4, %v1836_v3  ;;  %v1935_v3 = vshll.u32 %v2544_v57, 16  ;;  %v3035_v4 = vld [vmem:[%s3536_s1 + $0x210] sm:$0xff]  }
  0x70   : > { %2878 = vmatprep.subr.bf16.mxu1 %v3017_v19  ;;  %2824 = vmatprep.mubr.bf16.mxu0 %v2420_v24  ;;  %v2519_v17 = vcombine.low %v2496_v0, %v2497_v1  ;;  %v1854_v24 = vor.u32 %v1853_v6, %v1850_v5  ;;  %v2536_v54 = vld [vmem:[%s3142_s20 + $0x80] sm:$0xf]  ;;  %v1918_v0 = vshrl.u32 %v2542_v56, 16  ;;  %v1921_v1 = vshll.u32 %v2542_v56, 16  ;;  %v2535_v5 = vld [vmem:[%s3142_s20 + $0x70] sm:$0x1] }
  0x71   : > { %2848 = vmatprep.mubr.bf16.mxu1 %v2448_v25  ;;  %v1857_v25 = vshll.u32 %v2533_v7, 16  ;;  %v1841_v34 = vrot.slane %v1840_v22, 4  ;;  %v1879_v62 = vshll.u32 %v2536_v54, 16  ;;  %v1864_v6 = vrot.slane %v1862_v59, 4  ;;  %v3036_v22 = vld [vmem:[%s3536_s1 + $0x208] sm:$0xff]  }
  0x72   : > { %2855 = vmatpush3.bf16.msra.mxu0 %v3016_v14  ;;  %v2539_v14 = vld [vmem:[%s3142_s20 + $0xb0] sm:$0x1]  ;;  %v1937_v15 = vrot.slane %v1935_v3, 5 }
  0x73   : > { %2879 = vmatpush3.bf16.msra.mxu1 %v3017_v19  ;;  %2856 = vmatprep.subr.bf16.mxu0 %v3018_v28  ;;  %v2463_v19 = vld [vmem:[%s3142_s20 + $0xc0] sm:$0xf]  ;;  %v1899_v27 = vshll.u32 %v2539_v14, 16  ;;  %v1859_v37 = vrot.slane %v1857_v25, 5  ;;  %v1846_v47 = vsel %vm3214_vm2, %v1841_v34, %v1845_v35  ;;  %v1881_v10 = vrot.slane %v1879_v62, 5 }
  0x74   : > { %2880 = vmatprep.subr.bf16.mxu1 %v3019_v31  ;;  %v1934_v14 = vrot.slane %v1932_v2, 4 }
  0x75   : > { %2825 = vmatmul.mubr.bf16.gmra.mxu0 %v2421_v33  ;;  %v2464_v33 = vld [vmem:[%s3142_s20 + $0xe0] sm:$0xf] }
  0x76   : > { %2857 = vmatpush3.bf16.msra.mxu0 %v3018_v28  ;;  %2849 = vmatmul.mubr.bf16.gmra.mxu1 %v2449_v36  ;;  %v1910_v28 = vor.u32 %v1909_v12, %v1906_v11  ;;  %v1855_v36 = vrot.slane %v1854_v24, 4  ;;  %v2537_v11 = vld [vmem:[%s3142_s20 + $0x90] sm:$0x1]  ;;  %v1920_v12 = vrot.slane %v1918_v0, 4  ;;  %v1938_v25 = vor.u32 %v1937_v15, %v1934_v14 }
  0x77   : > { %2881 = vmatpush3.bf16.msra.mxu1 %v3019_v31  ;;  %2858 = vmatprep.subr.bf16.mxu0 %v3020_v38  ;;  %v2484_v31 = vcombine.low %v2462_v18, %v2463_v19  ;;  %v1871_v19 = vshll.u32 %v2535_v5, 16  ;;  %v1885_v21 = vshll.u32 %v2537_v11, 16 }
  0x78   : > { %2882 = vmatprep.subr.bf16.mxu1 %v3021_v39  ;;  %2868 = vmatprep.mubr.bf16.mxu0 %v2482_v40  ;;  %v1901_v40 = vrot.slane %v1899_v27, 5  ;;  %v1939_v34 = vrot.slane %v1938_v25, 4 }
  0x79   : > { %2892 = vmatprep.mubr.bf16.mxu1 %v2518_v41  ;;  %v1911_v41 = vrot.slane %v1910_v28, 4  ;;  %v1873_v28 = vrot.slane %v1871_v19, 5 }
  0x7a   : > { %2859 = vmatpush3.bf16.msra.mxu0 %v3020_v38  ;;  %v2465_v38 = vld [vmem:[%s3142_s20 + $0x100] sm:$0xf] }
  0x7b   : > { %2883 = vmatpush3.bf16.msra.mxu1 %v3021_v39  ;;  %2860 = vmatprep.subr.bf16.mxu0 %v3022_v42  ;;  %v1897_v39 = vrot.slane %v1896_v26, 4  ;;  %v2485_v46 = vcombine.low %v2464_v33, %v2465_v38 }
  0x7c   : > { %2884 = vmatprep.subr.bf16.mxu1 %v3023_v43 }
  0x7d   : > { %v1902_v50 = vsel %vm3214_vm2, %v1897_v39, %v1901_v40 }
  0x7e   : > { %2861 = vmatpush3.bf16.msra.mxu0 %v3022_v42  ;;  %v1915_v42 = vrot.slane %v1913_v29, 5 }
  0x7f   : > { %2885 = vmatpush3.bf16.msra.mxu1 %v3023_v43  ;;  %2862 = vmatprep.subr.bf16.mxu0 %v3024_v44  ;;  %v3032_v43 = vld [vmem:[%s3536_s1 + $0x228] sm:$0xff]  }
  0x80   : > { %2886 = vmatprep.subr.bf16.mxu1 %v3025_v45 }
  0x82   : > { %2863 = vmatpush3.bf16.msra.mxu0 %v3024_v44  ;;  %v2500_v44 = vld [vmem:[%s3142_s20 + $0xe4] sm:$0xf] }
  0x83   : > { %2887 = vmatpush3.bf16.msra.mxu1 %v3025_v45  ;;  %2864 = vmatprep.subr.bf16.mxu0 %v3026_v48  ;;  %v2501_v45 = vld [vmem:[%s3142_s20 + $0x104] sm:$0xf] }
  0x84   : > { %2888 = vmatprep.subr.bf16.mxu1 %v3027_v51  ;;  %v2521_v49 = vcombine.low %v2500_v44, %v2501_v45  ;;  %v3062_v44 = vmov 0.0  }
  0x85   : > { %2119 = vst [vmem:[%s3496_s19] sm:$0x1] %v3062_v44  ;;  %2120 = vst [vmem:[%s3502_s23] sm:$0x1] %v3062_v44 }
  0x86   : > { %2865 = vmatpush3.bf16.msra.mxu0 %v3026_v48  ;;  %v1860_v48 = vsel %vm3214_vm2, %v1855_v36, %v1859_v37 }
  0x87   : > { %2889 = vmatpush3.bf16.msra.mxu1 %v3027_v51  ;;  %2866 = vmatprep.subr.bf16.mxu0 %v3028_v60  ;;  %v1916_v51 = vsel %vm3214_vm2, %v1911_v41, %v1915_v42  ;;  %v2562_v55 = vcombine.low %v1846_v47, %v1860_v48 }
  0x88   : > { %2890 = vmatprep.subr.bf16.mxu1 %v3029_v61  ;;  %v2564_v58 = vcombine.low %v1902_v50, %v1916_v51 }
  0x8a   : > { %2867 = vmatpush3.bf16.msra.mxu0 %v3028_v60  ;;  %v1865_v60 = vshll.u32 %v2534_v53, 16 }
  0x8b   : > { %2891 = vmatpush3.bf16.msra.mxu1 %v3029_v61  ;;  %2900 = vmatprep.subr.bf16.mxu0 %v3030_v13  ;;  %v1876_v61 = vshrl.u32 %v2536_v54, 16 }
  0x8c   : > { %2924 = vmatprep.subr.bf16.mxu1 %v3030_v13  ;;  %v1867_v7 = vrot.slane %v1865_v60, 5 }
  0x8d   : > { %2869 = vmatmul.mubr.bf16.vlgmr.msra.gmra.mxu0 %v2483_v16  ;;  %v1878_v8 = vrot.slane %v1876_v61, 4  ;;  %v2543_v16 = vld [vmem:[%s3142_s20 + $0xf0] sm:$0x1] }
  0x8e   : > { %2893 = vmatmul.mubr.bf16.vlgmr.msra.gmra.mxu1 %v2519_v17  ;;  %2901 = vmatpush3.bf16.msra.mxu0 %v3030_v13  ;;  %v2545_v17 = vld [vmem:[%s3142_s20 + $0x110] sm:$0x1]  ;;  %v1868_v18 = vor.u32 %v1867_v7, %v1864_v6  ;;  %v1927_v24 = vshll.u32 %v2543_v16, 16 }
  0x8f   : > { %2932 = vmatpush3.bf16.msra.mxu1 %v3030_v13  ;;  %2902 = vmatprep.subr.bf16.mxu0 %v3031_v30  ;;  %v1923_v13 = vrot.slane %v1921_v1, 5  ;;  %v1882_v20 = vor.u32 %v1881_v10, %v1878_v8  ;;  %v1941_v26 = vshll.u32 %v2545_v17, 16 }
  0x90   : > { %2925 = vmatprep.subr.bf16.mxu1 %v3031_v30  ;;  %2872 = vmatprep.mubr.bf16.mxu0 %v2484_v31  ;;  %v1869_v27 = vrot.slane %v1868_v18, 4  ;;  %v3037_v31 = vld [vmem:[%s3536_s1 + $0x200] sm:$0xff]   ;;  %v1929_v33 = vrot.slane %v1927_v24, 5 }
  0x91   : > { %2896 = vmatprep.mubr.bf16.mxu1 %v2520_v32  ;;  %v1924_v23 = vor.u32 %v1923_v13, %v1920_v12  ;;  %v1883_v29 = vrot.slane %v1882_v20, 4  ;;  %v1943_v35 = vrot.slane %v1941_v26, 5 }
  0x92   : > { %2903 = vmatpush3.bf16.msra.mxu0 %v3031_v30  ;;  %v1874_v36 = vsel %vm3214_vm2, %v1869_v27, %v1873_v28 }
  0x93   : > { %2933 = vmatpush3.bf16.msra.mxu1 %v3031_v30  ;;  %2904 = vmatprep.subr.bf16.mxu0 %v3032_v43  ;;  %v1887_v30 = vrot.slane %v1885_v21, 5  ;;  %v1925_v32 = vrot.slane %v1924_v23, 4  ;;  %v1944_v39 = vsel %vm3214_vm2, %v1939_v34, %v1943_v35 }
  0x94   : > { %2926 = vmatprep.subr.bf16.mxu1 %v3032_v43 }
  0x95   : > { %2873 = vmatmul.mubr.bf16.gmra.mxu0 %v2485_v46  ;;  %v1888_v37 = vsel %vm3214_vm2, %v1883_v29, %v1887_v30  ;;  %v1930_v38 = vsel %vm3214_vm2, %v1925_v32, %v1929_v33 }
  0x96   : > { %2905 = vmatpush3.bf16.msra.mxu0 %v3032_v43  ;;  %2897 = vmatmul.mubr.bf16.gmra.mxu1 %v2521_v49  ;;  %v2563_v40 = vcombine.low %v1874_v36, %v1888_v37  ;;  %v2565_v41 = vcombine.low %v1930_v38, %v1944_v39 }
  0x97   : > { %2934 = vmatpush3.bf16.msra.mxu1 %v3032_v43  ;;  %2906 = vmatprep.subr.bf16.mxu0 %v3033_v52 }
  0x98   : > { %2927 = vmatprep.subr.bf16.mxu1 %v3033_v52  ;;  %2916 = vmatprep.mubr.bf16.mxu0 %v2562_v55 }
  0x99   : > { %2920 = vmatprep.mubr.bf16.mxu1 %v2564_v58 }
  0x9a   : > { %2907 = vmatpush3.bf16.msra.mxu0 %v3033_v52 }
  0x9b   : > { %2935 = vmatpush3.bf16.msra.mxu1 %v3033_v52  ;;  %2908 = vmatprep.subr.bf16.mxu0 %v3034_v63 }
  0x9c   : > { %2928 = vmatprep.subr.bf16.mxu1 %v3034_v63 }
  0x9e   : > { %2909 = vmatpush3.bf16.msra.mxu0 %v3034_v63 }
  0x9f   : > { %2936 = vmatpush3.bf16.msra.mxu1 %v3034_v63  ;;  %2910 = vmatprep.subr.bf16.mxu0 %v3035_v4 }
  0xa0   : > { %2929 = vmatprep.subr.bf16.mxu1 %v3035_v4 }
  0xa2   : > { %2911 = vmatpush3.bf16.msra.mxu0 %v3035_v4 }
  0xa3   : > { %2937 = vmatpush3.bf16.msra.mxu1 %v3035_v4  ;;  %2912 = vmatprep.subr.bf16.mxu0 %v3036_v22 }
  0xa4   : > { %2930 = vmatprep.subr.bf16.mxu1 %v3036_v22 }
  0xa6   : > { %2913 = vmatpush3.bf16.msra.mxu0 %v3036_v22 }
  0xa7   : > { %2938 = vmatpush3.bf16.msra.mxu1 %v3036_v22  ;;  %2914 = vmatprep.subr.bf16.mxu0 %v3037_v31 }
  0xa8   : > { %2931 = vmatprep.subr.bf16.mxu1 %v3037_v31 }
  0xaa   : > { %2915 = vmatpush3.bf16.msra.mxu0 %v3037_v31 }
  0xab   : > { %2939 = vmatpush3.bf16.msra.mxu1 %v3037_v31 }
  0xad   : > { %2917 = vmatmul.mubr.bf16.vlgmr.msra.gmra.mxu0 %v2563_v40 }
  0xae   : > { %2921 = vmatmul.mubr.bf16.vlgmr.msra.gmra.mxu1 %v2565_v41 }
  0xed   : > { %v2726_v42 = vpop.f32.mrf.mxu0 }
  0xee   : > { %v2750_v43 = vpop.f32.mrf.mxu1 }
  0xef   : > { %v398_v9 = vpop.f32.mrf.mxu0  ;;  %v544_v35 = vadd.f32 %v2750_v43, %v2726_v42 }
  0xf0   : > { %v535_v45 = vpop.f32.mrf.mxu1 }
  0xf1   : > { %v2727_v46 = vpop.f32.mrf.mxu0  ;;  %v536_v36 = vadd.f32 %v535_v45, %v398_v9 }
  0xf2   : > { %v2751_v47 = vpop.f32.mrf.mxu1 }
  0xf3   : > { %v401_v48 = vpop.f32.mrf.mxu0  ;;  %v547_v37 = vadd.f32 %v2751_v47, %v2727_v46 }
  0xf4   : > { %v538_v49 = vpop.f32.mrf.mxu1 }
  0xf5   : > { %v2730_v50 = vpop.f32.mrf.mxu0  ;;  %v539_v41 = vadd.f32 %v538_v49, %v401_v48 }
  0xf6   : > { %v2754_v51 = vpop.f32.mrf.mxu1 }
  0xf7   : > { %v414_v52 = vpop.f32.mrf.mxu0  ;;  %v560_v38 = vadd.f32 %v2754_v51, %v2730_v50 }
  0xf8   : > { %v551_v53 = vpop.f32.mrf.mxu1 }
  0xf9   : > { %v2731_v54 = vpop.f32.mrf.mxu0 }
  0xfa   : > { %v2755_v55 = vpop.f32.mrf.mxu1 }
  0xfb   : > { %v417_v56 = vpop.f32.mrf.mxu0  ;;  %v563_v39 = vadd.f32 %v2755_v55, %v2731_v54 }
  0xfc   : > { %v554_v57 = vpop.f32.mrf.mxu1 }
  0xfd   : > { %v555_v42 = vadd.f32 %v554_v57, %v417_v56 }
 0x10d   : > { %v2774_v58 = vpop.f32.mrf.mxu0 }
 0x10e   : > { %v2798_v59 = vpop.f32.mrf.mxu1  ;;  %v845_v44 = vadd.f32 %v2774_v58, %v544_v35 }
 0x10f   : > { %v812_v60 = vpop.f32.mrf.mxu0 }
 0x110   : > { %v982_v61 = vpop.f32.mrf.mxu1  ;;  %v1015_v51 = vadd.f32 %v2798_v59, %v845_v44 }
 0x111   : > { %v2775_v62 = vpop.f32.mrf.mxu0 }
 0x112   : > { %v2799_v63 = vpop.f32.mrf.mxu1 }
 0x113   : > { %v815_v0 = vpop.f32.mrf.mxu0 }
 0x114   : > { %v985_v1 = vpop.f32.mrf.mxu1  ;;  %v844_v45 = vadd.f32 %v815_v0, %v539_v41 }
 0x115   : > { %v2778_v2 = vpop.f32.mrf.mxu0 }
 0x116   : > { %v2802_v3 = vpop.f32.mrf.mxu1  ;;  %v849_v43 = vadd.f32 %v2778_v2, %v560_v38  ;;  %v1014_v58 = vadd.f32 %v985_v1, %v844_v45 }
 0x117   : > { %v828_v4 = vpop.f32.mrf.mxu0 }
 0x118   : > { %v998_v5 = vpop.f32.mrf.mxu1  ;;  %v1019_v49 = vadd.f32 %v2802_v3, %v849_v43 }
 0x119   : > { %v2779_v6 = vpop.f32.mrf.mxu0 }
 0x11a   : > { %v2803_v7 = vpop.f32.mrf.mxu1  ;;  %v850_v9 = vadd.f32 %v2779_v6, %v563_v39 }
 0x11b   : > { %v831_v8 = vpop.f32.mrf.mxu0 }
 0x11c   : > { %v1001_v10 = vpop.f32.mrf.mxu1  ;;  %v848_v47 = vadd.f32 %v831_v8, %v555_v42  ;;  %v1020_v35 = vadd.f32 %v2803_v7, %v850_v9 }
 0x12d   : > { %v2822_v11 = vpop.f32.mrf.mxu0 }
 0x12e   : > { %v2846_v12 = vpop.f32.mrf.mxu1 }
 0x12f   : > { %v1152_v13 = vpop.f32.mrf.mxu0 }
 0x130   : > { %v1434_v14 = vpop.f32.mrf.mxu1 }
 0x131   : > { %v2823_v15 = vpop.f32.mrf.mxu0 }
 0x132   : > { %v2847_v16 = vpop.f32.mrf.mxu1 }
 0x133   : > { %v1155_v17 = vpop.f32.mrf.mxu0 }
 0x134   : > { %v1437_v18 = vpop.f32.mrf.mxu1  ;;  %v1184_v2 = vadd.f32 %v1155_v17, %v1014_v58 }
 0x135   : > { %v2826_v19 = vpop.f32.mrf.mxu0 }
 0x136   : > { %v2850_v20 = vpop.f32.mrf.mxu1  ;;  %v1466_v7 = vadd.f32 %v1437_v18, %v1184_v2 }
 0x137   : > { %v1168_v21 = vpop.f32.mrf.mxu0 }
 0x138   : > { %v1450_v22 = vpop.f32.mrf.mxu1 }
 0x139   : > { %v2827_v23 = vpop.f32.mrf.mxu0 }
 0x13a   : > { %v2851_v24 = vpop.f32.mrf.mxu1  ;;  %v1190_v56 = vadd.f32 %v2827_v23, %v1020_v35 }
 0x13b   : > { %v1171_v25 = vpop.f32.mrf.mxu0 }
 0x13c   : > { %v1453_v26 = vpop.f32.mrf.mxu1 }
 0x14d   : > { %v2870_v27 = vpop.f32.mrf.mxu0 }
 0x14e   : > { %v3506_v28 = vpop.f32.mrf.mxu1 }
 0x14f   : > { %3542 = vst [vmem:[#allocation2_spill] sm:$0xff] %v3506_v28  ;;  %v1608_v29 = vpop.f32.mrf.mxu0  ;;  %v843_v28 = vadd.f32 %v812_v60, %v536_v36  ;;  %v1185_v36 = vadd.f32 %v2822_v11, %v1015_v51 }
 0x150   : > { %v3508_v30 = vpop.f32.mrf.mxu1 }
 0x151   : > { %3543 = vst [vmem:[#allocation3_spill] sm:$0xff] %v3508_v30  ;;  %v2871_v31 = vpop.f32.mrf.mxu0  ;;  %v846_v30 = vadd.f32 %v2775_v62, %v547_v37  ;;  %v1013_v54 = vadd.f32 %v982_v61, %v843_v28  ;;  %v1467_v8 = vadd.f32 %v2846_v12, %v1185_v36  ;;  %v1472_v28 = vadd.f32 %v2851_v24, %v1190_v56 }
 0x152   : > { %v3510_v32 = vpop.f32.mrf.mxu1 }
 0x153   : > { %3544 = vst [vmem:[#allocation4_spill] sm:$0xff] %v3510_v32  ;;  %v1611_v33 = vpop.f32.mrf.mxu0  ;;  %v1016_v55 = vadd.f32 %v2799_v63, %v846_v30  ;;  %v1183_v60 = vadd.f32 %v1152_v13, %v1013_v54  ;;  %v1641_v1 = vadd.f32 %v2870_v27, %v1467_v8 }
 0x154   : > { %v3512_v34 = vpop.f32.mrf.mxu1  ;;  %v1640_v30 = vadd.f32 %v1611_v33, %v1466_v7 }
 0x155   : > { %3545 = vst [vmem:[#allocation5_spill] sm:$0xff] %v3512_v34  ;;  %v2874_v40 = vpop.f32.mrf.mxu0  ;;  %v552_v34 = vadd.f32 %v551_v53, %v414_v52  ;;  %v1186_v37 = vadd.f32 %v2823_v15, %v1016_v55  ;;  %v1018_v52 = vadd.f32 %v1001_v10, %v848_v47  ;;  %v1189_v53 = vadd.f32 %v2826_v19, %v1019_v49 }
 0x156   : > { %v2898_v32 = vpop.f32.mrf.mxu1  ;;  %v1465_v59 = vadd.f32 %v1434_v14, %v1183_v60 }
 0x157   : > { %v847_v46 = vadd.f32 %v828_v4, %v552_v34  ;;  %v1624_v50 = vpop.f32.mrf.mxu0  ;;  %v1188_v6 = vadd.f32 %v1171_v25, %v1018_v52  ;;  %v1468_v61 = vadd.f32 %v2847_v16, %v1186_v37  ;;  %v1471_v63 = vadd.f32 %v2850_v20, %v1189_v53  ;;  %v3546_v16 = vld [vmem:[#allocation2_spill] sm:$0xff] }
 0x158   : > { %v1794_v48 = vpop.f32.mrf.mxu1  ;;  %v1639_v11 = vadd.f32 %v1608_v29, %v1465_v59  ;;  %v1811_v20 = vadd.f32 %v3546_v16, %v1641_v1  ;;  %v3547_v24 = vld [vmem:[#allocation3_spill] sm:$0xff] }
 0x159   : > { %v1017_v62 = vadd.f32 %v998_v5, %v847_v46  ;;  %v2875_v57 = vpop.f32.mrf.mxu0  ;;  %v1642_v13 = vadd.f32 %v2871_v31, %v1468_v61  ;;  %v1470_v15 = vadd.f32 %v1453_v26, %v1188_v6  ;;  %v1645_v19 = vadd.f32 %v2874_v40, %v1471_v63 }
 0x15a   : > { %v2899_v0 = vpop.f32.mrf.mxu1  ;;  %v1646_v23 = vadd.f32 %v2875_v57, %v1472_v28  ;;  %v1809_v34 = vadd.f32 %v3547_v24, %v1639_v11  ;;  %v3548_v18 = vld [vmem:[#allocation4_spill] sm:$0xff] }
 0x15b   : > { %v1187_v4 = vadd.f32 %v1168_v21, %v1017_v62  ;;  %v1627_v3 = vpop.f32.mrf.mxu0  ;;  %v1812_v27 = vadd.f32 %v3548_v18, %v1642_v13  ;;  %v1815_v31 = vadd.f32 %v2898_v32, %v1645_v19 }
 0x15c   : > { %v1797_v5 = vpop.f32.mrf.mxu1  ;;  %v1644_v12 = vadd.f32 %v1627_v3, %v1470_v15  ;;  %v1816_v38 = vadd.f32 %v2899_v0, %v1646_v23  ;;  %v3549_v26 = vld [vmem:[#allocation5_spill] sm:$0xff] }
 0x15d   : > { %v1469_v10 = vadd.f32 %v1450_v22, %v1187_v4  ;;  %v1810_v39 = vadd.f32 %v3549_v26, %v1640_v30 }
 0x15e   : > { %v1814_v43 = vadd.f32 %v1797_v5, %v1644_v12 }
 0x15f   : > { %v1643_v25 = vadd.f32 %v1624_v50, %v1469_v10 }
 0x161   : > { %v1813_v42 = vadd.f32 %v1794_v48, %v1643_v25 }
 0x16d   : > { %v2918_v17 = vpop.f32.mrf.mxu0 }
 0x16e   : > { %v2922_v21 = vpop.f32.mrf.mxu1  ;;  %v2093_v40 = vadd.f32 %v2918_v17, %v1811_v20 }
 0x16f   : > { %v2060_v14 = vpop.f32.mrf.mxu0  ;;  %v2097_v9 = vadd.f32 %v2922_v21, %v1815_v31  ;;  %v2121_v21 = vld [vmem:[%s3496_s19] sm:$0x1] }
 0x170   : > { %v2076_v29 = vpop.f32.mrf.mxu1  ;;  %v2091_v41 = vadd.f32 %v2060_v14, %v1809_v34  ;;  %v2140_v60 = vmul.f32 %v2093_v40, %v2093_v40  ;;  %v2137_v14 = vld [vmem:[%s3502_s23] sm:$0x1] }
 0x171   : > { %v2919_v22 = vpop.f32.mrf.mxu0  ;;  %v2095_v51 = vadd.f32 %v2076_v29, %v1813_v42  ;;  %v2144_v59 = vmul.f32 %v2097_v9, %v2097_v9 }
 0x172   : > { %v2094_v33 = vadd.f32 %v2919_v22, %v1812_v27  ;;  %v2923_v44 = vpop.f32.mrf.mxu1  ;;  %v2138_v49 = vmul.f32 %v2091_v41, %v2091_v41 }
 0x173   : > { %v2098_v45 = vadd.f32 %v2923_v44, %v1816_v38  ;;  %v2063_v46 = vpop.f32.mrf.mxu0  ;;  %v2142_v57 = vmul.f32 %v2095_v51, %v2095_v51 }
 0x174   : > { %v2585_v47 = vpack.c.bf16 %v2094_v33, %v2093_v40  ;;  %v2092_v50 = vadd.f32 %v2063_v46, %v1810_v39  ;;  %v2079_v32 = vpop.f32.mrf.mxu1  ;;  %v2141_v52 = vmul.f32 %v2094_v33, %v2094_v33 }
 0x175   : > { %v2595_v54 = vpack.c.bf16 %v2098_v45, %v2097_v9  ;;  %v2096_v55 = vadd.f32 %v2079_v32, %v1814_v43  ;;  %v2145_v28 = vmul.f32 %v2098_v45, %v2098_v45 }
 0x176   : > { %2597 = vst [vmem:[%s230_s27 + $0x8] sm:$0xff] %v2585_v47   ;;  %v2580_v35 = vpack.c.bf16 %v2092_v50, %v2091_v41  ;;  %v2122_v58 = vadd.f32 %v2092_v50, %v2091_v41  ;;  %v2139_v36 = vmul.f32 %v2092_v50, %v2092_v50 }
 0x177   : > { %2599 = vst [vmem:[%s230_s27 + $0x18] sm:$0xff] %v2595_v54   ;;  %v2590_v48 = vpack.c.bf16 %v2096_v55, %v2095_v51  ;;  %v2143_v6 = vmul.f32 %v2096_v55, %v2096_v55 }
 0x178   : > { %2581 = vst [vmem:[%s230_s27] sm:$0xff] %v2580_v35   ;;  %v2123_v37 = vadd.f32 %v2122_v58, %v2093_v40  ;;  %v2146_v62 = vadd.f32 %v2139_v36, %v2138_v49 }
 0x179   : > { %2598 = vst [vmem:[%s230_s27 + $0x10] sm:$0xff] %v2590_v48  }
 0x17a   : > { %v2147_v53 = vadd.f32 %v2146_v62, %v2140_v60  ;;  %v2124_v56 = vadd.f32 %v2123_v37, %v2094_v33 }
 0x17c   : > { %v2125_v2 = vadd.f32 %v2124_v56, %v2095_v51  ;;  %v2148_v0 = vadd.f32 %v2147_v53, %v2141_v52 }
 0x17e   : > { %v2126_v4 = vadd.f32 %v2125_v2, %v2096_v55  ;;  %v2149_v8 = vadd.f32 %v2148_v0, %v2142_v57 }
 0x180   : > { %v2127_v61 = vadd.f32 %v2126_v4, %v2097_v9  ;;  %v2150_v63 = vadd.f32 %v2149_v8, %v2143_v6 }
 0x182   : > { %v2128_v3 = vadd.f32 %v2127_v61, %v2098_v45  ;;  %v2151_v7 = vadd.f32 %v2150_v63, %v2144_v59 }
 0x184   : > { %v2129_v1 = vrot.slane %v2128_v3, 4  ;;  %v2152_v11 = vadd.f32 %v2151_v7, %v2145_v28 }
 0x186   : > { %v2130_v13 = vadd.f32 %v2129_v1, %v2128_v3  ;;  %v2153_v5 = vrot.slane %v2152_v11, 4 }
 0x188   : > { %v2131_v10 = vrot.slane %v2130_v13, 2  ;;  %v2154_v15 = vadd.f32 %v2153_v5, %v2152_v11 }
 0x18a   : > { %v2132_v19 = vadd.f32 %v2131_v10, %v2130_v13  ;;  %v2155_v23 = vrot.slane %v2154_v15, 2 }
 0x18c   : > { %v2133_v17 = vrot.slane %v2132_v19, 1  ;;  %v2156_v30 = vadd.f32 %v2155_v23, %v2154_v15 }
 0x18e   : > { %v2134_v25 = vadd.f32 %v2133_v17, %v2132_v19  ;;  %v2157_v12 = vrot.slane %v2156_v30, 1 }
 0x190   : > { %v2135_v16 = vadd.f32 %v2134_v25, %v2121_v21  ;;  %v2158_v20 = vadd.f32 %v2157_v12, %v2156_v30 }
 0x192   : > { %2136 = vst [vmem:[%s3496_s19] sm:$0x1] %v2135_v16  ;;  %v2159_v24 = vadd.f32 %v2158_v20, %v2137_v14 }
 0x194   : > { %2160 = vst [vmem:[%s3502_s23] sm:$0x1] %v2159_v24 }
 0x195 PF: > { %s15_s17 = sadd.s32 1, %s3060_s17   ;;  %s3550_s15 = smov %s3056_s16 }
 0x196   : > { %p12_p5 = scmp.ge.s32.totalorder %s15_s17, 4   ;;  %s3551_s16 = smov %s3553_s18 }
 0x198   :  { %14 = sbr.rel (!%p12_p5) target bundleno = 2 (0x2), region = 96 }

// kernel: bottleneck_forward.9
= control target key start
LH: loop header
LB: loop body
LE: loop exit
PB: predicated region body
PF: predicated region fallthrough
CT: control target
= control target key end

     0   :  { %v302_v24 = vlaneseq  ;;  %s742_s6 = inlined_call_operand.vmem [shape: bf16[128,128], index: 6, kind: input, shape index: {}]   ;;  %s743_s5 = inlined_call_operand.vmem [shape: bf16[128,128], index: 5, kind: input, shape index: {}]   ;;  %s744_s1 = inlined_call_operand.vmem [shape: f32[1,1,128], index: 1, kind: input, shape index: {}]   ;;  %s745_s2 = inlined_call_operand.vmem [shape: f32[1,1,128], index: 2, kind: input, shape index: {}]   ;;  %s746_s3 = inlined_call_operand.vmem [shape: f32[1,128], index: 3, kind: input, shape index: {}]   ;;  %s747_s0 = inlined_call_operand.vmem [shape: bf16[128,128], index: 0, kind: input, shape index: {}]   ;;  %s748_s4 = inlined_call_operand.vmem [shape: f32[1,128], index: 4, kind: input, shape index: {}]   ;;  %s749_s7 = inlined_call_operand.vmem [shape: f32[128,128], index: 7, kind: output, shape index: {}]  }
   0x1   :  { %v516_v0 = vld [vmem:[%s742_s6 + $0x38] sm:$0xff]   ;;  %v517_v1 = vld [vmem:[%s742_s6 + $0x30] sm:$0xff]   ;;  %v518_v2 = vld [vmem:[%s742_s6 + $0x28] sm:$0xff]  }
   0x2   :  { %468 = vmatprep.subr.bf16.mxu0 %v516_v0  ;;  %500 = vmatprep.subr.bf16.mxu1 %v516_v0  ;;  %v519_v3 = vld [vmem:[%s742_s6 + $0x20] sm:$0xff]   ;;  %v520_v6 = vld [vmem:[%s742_s6 + $0x18] sm:$0xff]   ;;  %v521_v7 = vld [vmem:[%s742_s6 + $0x10] sm:$0xff]   ;;  %v303_v27 = vshrl.u32 %v302_v24, 7 }
   0x3   :  { %469 = vmatpush3.bf16.msra.mxu0 %v516_v0  ;;  %508 = vmatpush3.bf16.msra.mxu1 %v516_v0  ;;  %v524_v4 = vld [vmem:[%s743_s5] sm:$0xff]   ;;  %v522_v8 = vld [vmem:[%s742_s6 + $0x8] sm:$0xff]   ;;  %v528_v12 = vld [vmem:[%s743_s5 + $0x10] sm:$0xff]  }
   0x4   :  { %470 = vmatprep.subr.bf16.mxu0 %v517_v1  ;;  %501 = vmatprep.subr.bf16.mxu1 %v517_v1  ;;  %v525_v5 = vld [vmem:[%s743_s5 + $0x20] sm:$0xff]   ;;  %v526_v10 = vld [vmem:[%s743_s5 + $0x8] sm:$0xff]   ;;  %v529_v13 = vld [vmem:[%s743_s5 + $0x30] sm:$0xff]   ;;  %v304_v29 = vsub.s32 0, %v303_v27 }
   0x5   :  { %484 = vmatprep.mubr.bf16.mxu0 %v524_v4  ;;  %492 = vmatprep.mubr.bf16.mxu1 %v525_v5  ;;  %v523_v9 = vld [vmem:[%s742_s6] sm:$0xff]   ;;  %v527_v11 = vld [vmem:[%s743_s5 + $0x28] sm:$0xff]   ;;  %v530_v14 = vld [vmem:[%s743_s5 + $0x18] sm:$0xff]  }
   0x6   :  { %v531_v15 = vld [vmem:[%s743_s5 + $0x38] sm:$0xff]   ;;  %v27_v16 = vld [vmem:[%s744_s1] sm:$0x1]  ;;  %v445_v31 = vld [vmem:[%s747_s0 + $0x8] sm:$0xff]  }
   0x7   :  { %471 = vmatpush3.bf16.msra.mxu0 %v517_v1  ;;  %509 = vmatpush3.bf16.msra.mxu1 %v517_v1  ;;  %v34_v17 = vmul.f32 0.0078125, %v27_v16  ;;  %v29_v18 = vld [vmem:[%s745_s2] sm:$0x1]  ;;  %v449_v33 = vld [vmem:[%s747_s0 + $0x28] sm:$0xff]   ;;  %v419_v34 = vunpack.c.l.bf16 %v445_v31  ;;  %v420_v42 = vunpack.c.h.bf16 %v445_v31  ;;  %v447_v49 = vld [vmem:[%s747_s0 + $0x18] sm:$0xff]  }
   0x8   :  { %472 = vmatprep.subr.bf16.mxu0 %v518_v2  ;;  %502 = vmatprep.subr.bf16.mxu1 %v518_v2  ;;  %v35_v19 = vmul.f32 0.0078125, %v29_v18  ;;  %v31_v26 = vld [vmem:[%s746_s3] sm:$0x1]  ;;  %v435_v39 = vunpack.c.l.bf16 %v449_v33  ;;  %v436_v43 = vunpack.c.h.bf16 %v449_v33  ;;  %v451_v50 = vld [vmem:[%s747_s0 + $0x38] sm:$0xff]   ;;  %v446_v55 = vld [vmem:[%s747_s0 + $0x10] sm:$0xff]   ;;  %v427_v57 = vunpack.c.l.bf16 %v447_v49 }
   0x9   :  { %v36_v20 = vmul.f32 %v34_v17, %v34_v17  ;;  %v32_v32 = vld [vmem:[%s748_s4] sm:$0x1]  ;;  %v450_v56 = vld [vmem:[%s747_s0 + $0x30] sm:$0xff]   ;;  %v443_v58 = vunpack.c.l.bf16 %v451_v50  ;;  %v423_v63 = vunpack.c.l.bf16 %v446_v55 }
   0xa   :  { %v414_v36 = vld [vmem:[%s747_s0] sm:$0xff]   ;;  %v439_v0 = vunpack.c.l.bf16 %v450_v56 }
   0xb   :  { %473 = vmatpush3.bf16.msra.mxu0 %v518_v2  ;;  %510 = vmatpush3.bf16.msra.mxu1 %v518_v2  ;;  %v37_v21 = vsub.f32 %v35_v19, %v36_v20  ;;  %v448_v37 = vld [vmem:[%s747_s0 + $0x20] sm:$0xff]   ;;  %v415_v40 = vunpack.c.l.bf16 %v414_v36  ;;  %v416_v47 = vunpack.c.h.bf16 %v414_v36  ;;  %v424_v19 = vunpack.c.h.bf16 %v446_v55 }
   0xc   :  { %474 = vmatprep.subr.bf16.mxu0 %v519_v3  ;;  %503 = vmatprep.subr.bf16.mxu1 %v519_v3  ;;  %v431_v41 = vunpack.c.l.bf16 %v448_v37  ;;  %v432_v48 = vunpack.c.h.bf16 %v448_v37  ;;  %v440_v20 = vunpack.c.h.bf16 %v450_v56 }
   0xd   :  { %v38_v22 = vmax.f32 %v37_v21, 0.0 }
   0xf   :  { %475 = vmatpush3.bf16.msra.mxu0 %v519_v3  ;;  %511 = vmatpush3.bf16.msra.mxu1 %v519_v3  ;;  %v39_v23 = vadd.f32 1e-05, %v38_v22 }
  0x10   :  { %476 = vmatprep.subr.bf16.mxu0 %v520_v6  ;;  %504 = vmatprep.subr.bf16.mxu1 %v520_v6 }
  0x11   :  { %532 = vrsqrt.f32 %v39_v23 }
  0x13   :  { %477 = vmatpush3.bf16.msra.mxu0 %v520_v6  ;;  %512 = vmatpush3.bf16.msra.mxu1 %v520_v6 }
  0x14   :  { %478 = vmatprep.subr.bf16.mxu0 %v521_v7  ;;  %505 = vmatprep.subr.bf16.mxu1 %v521_v7 }
  0x17   :  { %479 = vmatpush3.bf16.msra.mxu0 %v521_v7  ;;  %513 = vmatpush3.bf16.msra.mxu1 %v521_v7 }
  0x18   :  { %480 = vmatprep.subr.bf16.mxu0 %v522_v8  ;;  %506 = vmatprep.subr.bf16.mxu1 %v522_v8 }
  0x1b   :  { %481 = vmatpush3.bf16.msra.mxu0 %v522_v8  ;;  %514 = vmatpush3.bf16.msra.mxu1 %v522_v8 }
  0x1c   :  { %482 = vmatprep.subr.bf16.mxu0 %v523_v9  ;;  %507 = vmatprep.subr.bf16.mxu1 %v523_v9 }
  0x1e   :  { %v533_v25 = vpop.eup %532 }
  0x1f   :  { %483 = vmatpush3.bf16.msra.mxu0 %v523_v9  ;;  %515 = vmatpush3.bf16.msra.mxu1 %v523_v9  ;;  %v41_v28 = vmul.f32 %v533_v25, %v31_v26  ;;  %v428_v9 = vunpack.c.h.bf16 %v447_v49 }
  0x21   :  { %v42_v30 = vmul.f32 %v41_v28, %v34_v17  ;;  %v640_v35 = vrot.slane %v41_v28, %v304_v29 }
  0x22   :  { %485 = vmatmul.mubr.bf16.vlgmr.msra.gmra.mxu0 %v526_v10  ;;  %493 = vmatmul.mubr.bf16.vlgmr.msra.gmra.mxu1 %v527_v11  ;;  %v444_v10 = vunpack.c.h.bf16 %v451_v50 }
  0x23   :  { %488 = vmatprep.mubr.bf16.mxu0 %v528_v12  ;;  %496 = vmatprep.mubr.bf16.mxu1 %v529_v13  ;;  %v43_v38 = vsub.f32 %v32_v32, %v42_v30  ;;  %v309_v44 = vmul.f32 %v419_v34, %v640_v35  ;;  %v317_v46 = vmul.f32 %v435_v39, %v640_v35 }
  0x24   :  { %v307_v51 = vmul.f32 %v415_v40, %v640_v35  ;;  %v315_v52 = vmul.f32 %v431_v41, %v640_v35  ;;  %v310_v53 = vmul.f32 %v420_v42, %v640_v35  ;;  %v318_v54 = vmul.f32 %v436_v43, %v640_v35 }
  0x25   :  { %v649_v45 = vrot.slane %v43_v38, %v304_v29  ;;  %v308_v61 = vmul.f32 %v416_v47, %v640_v35  ;;  %v316_v62 = vmul.f32 %v432_v48, %v640_v35  ;;  %v313_v7 = vmul.f32 %v427_v57, %v640_v35 }
  0x26   :  { %v321_v8 = vmul.f32 %v443_v58, %v640_v35  ;;  %v311_v17 = vmul.f32 %v423_v63, %v640_v35  ;;  %v319_v18 = vmul.f32 %v439_v0, %v640_v35  ;;  %v314_v29 = vmul.f32 %v428_v9, %v640_v35 }
  0x27   :  { %v331_v59 = vadd.f32 %v649_v45, %v309_v44  ;;  %v339_v60 = vadd.f32 %v649_v45, %v317_v46  ;;  %v329_v1 = vadd.f32 %v649_v45, %v307_v51  ;;  %v337_v2 = vadd.f32 %v649_v45, %v315_v52 }
  0x28   :  { %v332_v3 = vadd.f32 %v649_v45, %v310_v53  ;;  %v340_v4 = vadd.f32 %v649_v45, %v318_v54  ;;  %v330_v13 = vadd.f32 %v649_v45, %v308_v61  ;;  %v335_v27 = vadd.f32 %v649_v45, %v313_v7 }
  0x29   :  { %v343_v28 = vadd.f32 %v649_v45, %v321_v8  ;;  %v322_v30 = vmul.f32 %v444_v10, %v640_v35  ;;  %v333_v38 = vadd.f32 %v649_v45, %v311_v17  ;;  %v341_v39 = vadd.f32 %v649_v45, %v319_v18 }
  0x2a   :  { %489 = vmatmul.mubr.bf16.gmra.mxu0 %v530_v14  ;;  %497 = vmatmul.mubr.bf16.gmra.mxu1 %v531_v15  ;;  %v338_v14 = vadd.f32 %v649_v45, %v316_v62  ;;  %v312_v40 = vmul.f32 %v424_v19, %v640_v35  ;;  %v320_v41 = vmul.f32 %v440_v20, %v640_v35 }
  0x2b   :  { %v336_v49 = vadd.f32 %v649_v45, %v314_v29  ;;  %v344_v50 = vadd.f32 %v649_v45, %v322_v30 }
  0x2c   :  { %v334_v56 = vadd.f32 %v649_v45, %v312_v40  ;;  %v342_v57 = vadd.f32 %v649_v45, %v320_v41 }
  0xe2   :  { %v486_v5 = vpop.f32.mrf.mxu0  ;;  %v494_v6 = vpop.f32.mrf.mxu1 }
  0xe3   :  { %v347_v11 = vadd.f32 %v486_v5, %v331_v59  ;;  %v355_v12 = vadd.f32 %v494_v6, %v339_v60 }
  0xe4   :  { %v206_v15 = vpop.f32.mrf.mxu0  ;;  %v238_v16 = vpop.f32.mrf.mxu1 }
  0xe5   :  { %v363_v21 = vmax.f32 %v347_v11, 0.0  ;;  %v371_v22 = vmax.f32 %v355_v12, 0.0  ;;  %v345_v23 = vadd.f32 %v329_v1, %v206_v15  ;;  %v353_v24 = vadd.f32 %v337_v2, %v238_v16 }
  0xe6   :  { %v487_v25 = vpop.f32.mrf.mxu0  ;;  %v495_v26 = vpop.f32.mrf.mxu1 }
  0xe7   :  { %379 = vst [vmem:[%s749_s7 + $0x10] sm:$0xff] %v363_v21  ;;  %387 = vst [vmem:[%s749_s7 + $0x50] sm:$0xff] %v371_v22  ;;  %v361_v31 = vmax.f32 %v345_v23, 0.0  ;;  %v369_v32 = vmax.f32 %v353_v24, 0.0  ;;  %v348_v33 = vadd.f32 %v487_v25, %v332_v3  ;;  %v356_v34 = vadd.f32 %v495_v26, %v340_v4 }
  0xe8   :  { %v209_v36 = vpop.f32.mrf.mxu0  ;;  %v241_v37 = vpop.f32.mrf.mxu1 }
  0xe9   :  { %377 = vst [vmem:[%s749_s7] sm:$0xff] %v361_v31  ;;  %385 = vst [vmem:[%s749_s7 + $0x40] sm:$0xff] %v369_v32  ;;  %v364_v42 = vmax.f32 %v348_v33, 0.0  ;;  %v372_v43 = vmax.f32 %v356_v34, 0.0  ;;  %v346_v44 = vadd.f32 %v330_v13, %v209_v36  ;;  %v354_v46 = vadd.f32 %v338_v14, %v241_v37 }
  0xea   :  { %v490_v47 = vpop.f32.mrf.mxu0  ;;  %v498_v48 = vpop.f32.mrf.mxu1 }
  0xeb   :  { %380 = vst [vmem:[%s749_s7 + $0x18] sm:$0xff] %v364_v42  ;;  %388 = vst [vmem:[%s749_s7 + $0x58] sm:$0xff] %v372_v43  ;;  %v362_v35 = vmax.f32 %v346_v44, 0.0  ;;  %v370_v51 = vmax.f32 %v354_v46, 0.0  ;;  %v351_v52 = vadd.f32 %v490_v47, %v335_v27  ;;  %v359_v53 = vadd.f32 %v498_v48, %v343_v28 }
  0xec   :  { %v222_v54 = vpop.f32.mrf.mxu0  ;;  %v254_v55 = vpop.f32.mrf.mxu1 }
  0xed   :  { %378 = vst [vmem:[%s749_s7 + $0x8] sm:$0xff] %v362_v35  ;;  %386 = vst [vmem:[%s749_s7 + $0x48] sm:$0xff] %v370_v51  ;;  %v367_v58 = vmax.f32 %v351_v52, 0.0  ;;  %v375_v59 = vmax.f32 %v359_v53, 0.0  ;;  %v349_v60 = vadd.f32 %v333_v38, %v222_v54  ;;  %v357_v61 = vadd.f32 %v341_v39, %v254_v55 }
  0xee   :  { %v491_v62 = vpop.f32.mrf.mxu0  ;;  %v499_v63 = vpop.f32.mrf.mxu1 }
  0xef   :  { %383 = vst [vmem:[%s749_s7 + $0x30] sm:$0xff] %v367_v58  ;;  %391 = vst [vmem:[%s749_s7 + $0x70] sm:$0xff] %v375_v59  ;;  %v365_v45 = vmax.f32 %v349_v60, 0.0  ;;  %v373_v0 = vmax.f32 %v357_v61, 0.0  ;;  %v352_v1 = vadd.f32 %v491_v62, %v336_v49  ;;  %v360_v2 = vadd.f32 %v499_v63, %v344_v50 }
  0xf0   :  { %v225_v3 = vpop.f32.mrf.mxu0  ;;  %v257_v4 = vpop.f32.mrf.mxu1 }
  0xf1   :  { %381 = vst [vmem:[%s749_s7 + $0x20] sm:$0xff] %v365_v45  ;;  %389 = vst [vmem:[%s749_s7 + $0x60] sm:$0xff] %v373_v0  ;;  %v368_v5 = vmax.f32 %v352_v1, 0.0  ;;  %v376_v6 = vmax.f32 %v360_v2, 0.0  ;;  %v350_v7 = vadd.f32 %v334_v56, %v225_v3  ;;  %v358_v8 = vadd.f32 %v342_v57, %v257_v4 }
  0xf3   :  { %384 = vst [vmem:[%s749_s7 + $0x38] sm:$0xff] %v368_v5  ;;  %392 = vst [vmem:[%s749_s7 + $0x78] sm:$0xff] %v376_v6  ;;  %v366_v9 = vmax.f32 %v350_v7, 0.0  ;;  %v374_v10 = vmax.f32 %v358_v8, 0.0 }
  0xf5   :  { %382 = vst [vmem:[%s749_s7 + $0x28] sm:$0xff] %v366_v9  ;;  %390 = vst [vmem:[%s749_s7 + $0x68] sm:$0xff] %v374_v10 }

</bundles_post_ra>
